<compile_context>
chip_gen: v7x
topology: tpu7x:2x2x1
jax: 0.10.0
libtpu: 0.0.40
codegen_flags: <defaults>
</compile_context>

<pallas_src>
import math
import functools

import jax
import jax.numpy as jnp
from jax import lax
from jax.experimental import pallas as pl
from jax.experimental.pallas import tpu as pltpu


# ----------------------------- tiled GEMM kernel -----------------------------

def _round_up(x, m):
    return (x + m - 1) // m * m


def _pick_tile(padded, candidates):
    for c in candidates:
        if padded % c == 0:
            return c
    return padded


@functools.lru_cache(maxsize=None)
def _make_gemm_kernel(silu_a, has_residual):
    def kernel(*refs):
        if has_residual:
            a_ref, b_ref, bias_ref, res_ref, o_ref, acc_ref = refs
        else:
            a_ref, b_ref, bias_ref, o_ref, acc_ref = refs
            res_ref = None

        @pl.when(pl.program_id(2) == 0)
        def _():
            acc_ref[...] = jnp.zeros_like(acc_ref)

        a = a_ref[...]
        if silu_a:
            # SiLU fused into the GEMM prologue (f32 math, EUP exp + reciprocal).
            af = a.astype(jnp.float32)
            af = af * pl.reciprocal(1.0 + jnp.exp(-af), approx=True)
            a = af.astype(a_ref.dtype)

        acc_ref[...] += jnp.dot(a, b_ref[...], preferred_element_type=jnp.float32)

        @pl.when(pl.program_id(2) == pl.num_programs(2) - 1)
        def _():
            y = acc_ref[...] + bias_ref[...]
            if has_residual:
                y = y + res_ref[...]
            o_ref[...] = y.astype(o_ref.dtype)

    return kernel


def pallas_matmul(a, b, bias=None, residual=None, silu_a=False):
    """(M,K)@(K,N) + bias [+ residual], optional fused SiLU on A.

    bf16 MXU inputs / f32 accumulation, tiled (M, N, K) grid, VMEM accumulator,
    megacore-parallel M/N dims.  Inputs are zero-padded to tile multiples and
    the result is sliced back to (M, N) float32.
    """
    M, K = a.shape
    K2, N = b.shape
    assert K == K2
    if bias is None:
        bias = jnp.zeros((N,), jnp.float32)

    Mp = _round_up(M, 8)
    Np = _round_up(N, 128)
    Kp = _round_up(K, 128)
    tm = _pick_tile(Mp, (256, 128, 64, 32, 16, 8))   # <=256 so M can split across TCs
    tn = _pick_tile(Np, (512, 256, 128))
    tk = _pick_tile(Kp, (512, 256, 128))

    a_p = jnp.pad(a.astype(jnp.bfloat16), ((0, Mp - M), (0, Kp - K)))
    b_p = jnp.pad(b.astype(jnp.bfloat16), ((0, Kp - K), (0, Np - N)))
    bias_p = jnp.pad(bias.astype(jnp.float32).reshape(1, N), ((0, 0), (0, Np - N)))

    inputs = [a_p, b_p, bias_p]
    in_specs = [
        pl.BlockSpec((tm, tk), lambda i, j, k: (i, k)),
        pl.BlockSpec((tk, tn), lambda i, j, k: (k, j)),
        pl.BlockSpec((1, tn), lambda i, j, k: (0, j)),
    ]
    has_residual = residual is not None
    if has_residual:
        res_p = jnp.pad(residual.astype(jnp.float32), ((0, Mp - M), (0, Np - N)))
        inputs.append(res_p)
        in_specs.append(pl.BlockSpec((tm, tn), lambda i, j, k: (i, j)))

    out = pl.pallas_call(
        _make_gemm_kernel(bool(silu_a), has_residual),
        out_shape=jax.ShapeDtypeStruct((Mp, Np), jnp.float32),
        grid=(Mp // tm, Np // tn, Kp // tk),
        in_specs=in_specs,
        out_specs=pl.BlockSpec((tm, tn), lambda i, j, k: (i, j)),
        scratch_shapes=[pltpu.VMEM((tm, tn), jnp.float32)],
        compiler_params=pltpu.CompilerParams(
            dimension_semantics=("parallel", "parallel", "arbitrary"),
            vmem_limit_bytes=48 * 1024 * 1024,
        ),
    )(*inputs)
    return out[:M, :N]


# ------------------------- GroupNorm (+SiLU, +emb add) ------------------------

@functools.lru_cache(maxsize=None)
def _make_gn_kernel(eps, silu, with_emb):
    def kernel(*refs):
        if with_emb:
            x_ref, g_ref, b_ref, p_ref, e_ref, o_ref = refs
        else:
            x_ref, g_ref, b_ref, p_ref, o_ref = refs

        x = x_ref[0]                                       # (HW, C) f32
        if with_emb:
            x = x + e_ref[0]                               # (1, C) broadcast, pre-stats

        s = jnp.sum(x, axis=0, keepdims=True)              # (1, C) per-channel sum
        sq = jnp.sum(x * x, axis=0, keepdims=True)         # (1, C) per-channel sumsq
        # Per-group mean / E[x^2], broadcast back to channels via a tiny matmul.
        mean = jnp.dot(s, p_ref[...], preferred_element_type=jnp.float32)
        ex2 = jnp.dot(sq, p_ref[...], preferred_element_type=jnp.float32)
        var = ex2 - mean * mean

        scale = lax.rsqrt(var + eps) * g_ref[...]
        shift = b_ref[...] - mean * scale
        y = x * scale + shift
        if silu:
            y = y * pl.reciprocal(1.0 + jnp.exp(-y), approx=True)
        o_ref[0] = y

    return kernel


def group_norm_silu(x, gamma, beta, *, groups=32, eps=1e-5, silu=True, emb=None):
    """GroupNorm(groups, C) on NHWC input, optional fused SiLU and fused
    per-(n, c) embedding add (applied before the statistics)."""
    N, H, W, C = x.shape
    assert C % groups == 0
    cg = C // groups
    hw = H * W

    gid = jnp.arange(C) // cg
    proj = (gid[:, None] == gid[None, :]).astype(jnp.float32) / float(cg * hw)

    x3 = x.reshape(N, hw, C).astype(jnp.float32)
    inputs = [x3,
              gamma.reshape(1, C).astype(jnp.float32),
              beta.reshape(1, C).astype(jnp.float32),
              proj]
    in_specs = [
        pl.BlockSpec((1, hw, C), lambda n: (n, 0, 0)),
        pl.BlockSpec((1, C), lambda n: (0, 0)),
        pl.BlockSpec((1, C), lambda n: (0, 0)),
        pl.BlockSpec((C, C), lambda n: (0, 0)),
    ]
    with_emb = emb is not None
    if with_emb:
        inputs.append(emb.reshape(N, 1, C).astype(jnp.float32))
        in_specs.append(pl.BlockSpec((1, 1, C), lambda n: (n, 0, 0)))

    y = pl.pallas_call(
        _make_gn_kernel(float(eps), bool(silu), with_emb),
        out_shape=jax.ShapeDtypeStruct((N, hw, C), jnp.float32),
        grid=(N,),
        in_specs=in_specs,
        out_specs=pl.BlockSpec((1, hw, C), lambda n: (n, 0, 0)),
        compiler_params=pltpu.CompilerParams(
            dimension_semantics=("parallel",)),
    )(*inputs)
    return y.reshape(N, H, W, C)


# ------------------------------- conv / glue ---------------------------------

def conv2d_nhwc(x, w, b, *, stride=1, pad=1, residual=None):
    """NHWC conv via im2col + tiled Pallas GEMM.  w is PyTorch (Cout, Cin, kh, kw).

    1x1/stride-1/pad-0 convs skip im2col and run as a plain flattened GEMM.
    An optional residual (N, Ho, Wo, Cout) is fused into the GEMM epilogue.
    """
    N, H, W, C = x.shape
    Cout, Cin, kh, kw = w.shape
    assert C == Cin

    if kh == 1 and kw == 1 and stride == 1 and pad == 0:
        res_flat = None if residual is None else residual.reshape(N * H * W, Cout)
        y = pallas_matmul(x.reshape(N * H * W, C), w.reshape(Cout, Cin).T, b,
                          residual=res_flat)
        return y.reshape(N, H, W, Cout)

    xp = jnp.pad(x, ((0, 0), (pad, pad), (pad, pad), (0, 0)))
    Ho = (H + 2 * pad - kh) // stride + 1
    Wo = (W + 2 * pad - kw) // stride + 1
    # TODO(synk): im2col patches are still materialized in HBM; fusing the patch
    # gather into the GEMM index_map (scalar-prefetched offsets) would remove
    # the kh*kw read amplification.
    cols = []
    for i in range(kh):
        for j in range(kw):
            cols.append(xp[:, i:i + stride * Ho:stride, j:j + stride * Wo:stride, :])
    patches = jnp.concatenate(cols, axis=-1).reshape(N * Ho * Wo, kh * kw * C)
    w2 = w.transpose(2, 3, 1, 0).reshape(kh * kw * Cin, Cout)
    res_flat = None if residual is None else residual.reshape(N * Ho * Wo, Cout)
    y = pallas_matmul(patches, w2, b, residual=res_flat)
    return y.reshape(N, Ho, Wo, Cout)


def resample_nhwc(x, mode):
    if mode == "up":      # nn.Upsample(scale_factor=2, mode='nearest')
        return jnp.repeat(jnp.repeat(x, 2, axis=1), 2, axis=2)
    if mode == "down":    # nn.AvgPool2d(2)
        N, H, W, C = x.shape
        return x.reshape(N, H // 2, 2, W // 2, 2, C).mean(axis=(2, 4))
    return x


# ------------------------------ ResBlock forward ------------------------------

def resblock_fwd(p, x_nchw, emb):
    """ResBlock.forward.  x_nchw: (N, C, H, W); emb: (N, emb_channels)."""
    mode = p["resample"]
    x = jnp.transpose(x_nchw, (0, 2, 3, 1))                  # NHWC internally

    # in_layers: GroupNorm(32) + SiLU (fused) -> resample -> 3x3 conv
    h = group_norm_silu(x, p["in_norm"]["g"], p["in_norm"]["b"], silu=True)
    h = resample_nhwc(h, mode)
    h = conv2d_nhwc(h, p["in_conv"]["w"], p["in_conv"]["b"], stride=1, pad=1)

    # emb_layers: Linear(SiLU(emb)); SiLU fused into the GEMM prologue.
    emb_out = pallas_matmul(emb, p["emb_lin"]["w"], p["emb_lin"]["b"], silu_a=True)

    # skip path: skip_connection(resample(x)); residual is fused into the final
    # conv GEMM epilogue below.
    xr = resample_nhwc(x, mode)
    if p["skip"] is not None:
        skip = conv2d_nhwc(xr, p["skip"]["w"], p["skip"]["b"], stride=1, pad=0)
    else:
        skip = xr

    # out_layers: GroupNorm(32) with the emb add fused in (pre-stats) + SiLU,
    # Dropout == identity at inference, then 3x3 conv with fused skip residual.
    h = group_norm_silu(h, p["out_norm"]["g"], p["out_norm"]["b"], silu=True,
                        emb=emb_out)
    h = conv2d_nhwc(h, p["out_conv"]["w"], p["out_conv"]["b"], stride=1, pad=1,
                    residual=skip)
    return jnp.transpose(h, (0, 3, 1, 2))                    # back to NCHW


# ------------------------------ parameter setup -------------------------------

def build_resblock_params(key, channels, out_channels, emb_channels,
                          up=False, down=False):
    assert not (up and down)
    keys = jax.random.split(key, 6)

    def dense(k, d_in, d_out):
        kw, kb = jax.random.split(k)
        return {"w": jax.random.normal(kw, (d_in, d_out), jnp.float32) / math.sqrt(d_in),
                "b": 0.02 * jax.random.normal(kb, (d_out,), jnp.float32)}

    def conv(k, c_in, c_out, ks):
        kw, kb = jax.random.split(k)
        return {"w": jax.random.normal(kw, (c_out, c_in, ks, ks), jnp.float32)
                        / math.sqrt(c_in * ks * ks),
                "b": 0.02 * jax.random.normal(kb, (c_out,), jnp.float32)}

    def norm(k, c):
        kg, kb = jax.random.split(k)
        return {"g": 1.0 + 0.05 * jax.random.normal(kg, (c,), jnp.float32),
                "b": 0.05 * jax.random.normal(kb, (c,), jnp.float32)}

    # NOTE: the PyTorch __init__ zero-inits all out_layers params; small
    # non-zero deterministic values are used here so those kernels are
    # actually exercised.
    return {
        "in_norm": norm(keys[0], channels),
        "in_conv": conv(keys[1], channels, out_channels, 3),
        "emb_lin": dense(keys[2], emb_channels, out_channels),
        "out_norm": norm(keys[3], out_channels),
        "out_conv": conv(keys[4], out_channels, out_channels, 3),
        "skip": conv(keys[5], channels, out_channels, 1)
                 if out_channels != channels else None,
        "resample": "up" if up else ("down" if down else "none"),
    }


# ----------------------------------- main --------------------------------------

if __name__ == "__main__":
    # GroupNorm(32, C) requires channel counts divisible by 32.
    channels, out_channels, emb_channels = 32, 64, 128
    B, H, W = 2, 16, 16

    root = jax.random.PRNGKey(0)
    pkey, xkey, ekey = jax.random.split(root, 3)
    params = build_resblock_params(pkey, channels, out_channels, emb_channels)

    x = jax.random.normal(xkey, (B, channels, H, W), jnp.float32)
    emb = jax.random.normal(ekey, (B, emb_channels), jnp.float32)

    fwd = jax.jit(lambda x_, e_: resblock_fwd(params, x_, e_))
    out = jax.block_until_ready(fwd(x, emb))

    assert out.shape == (B, out_channels, H, W), out.shape
    assert bool(jnp.all(jnp.isfinite(out)))
    print("KERNEL_OK")
</pallas_src>

<mosaic_0001>
module attributes {stable_mosaic.version = 11 : i64} {
  func.func @kernel(%arg0: i32, %arg1: memref<1x256x32xf32, #tpu.memory_space<vmem>>, %arg2: memref<1x32xf32, #tpu.memory_space<vmem>>, %arg3: memref<1x32xf32, #tpu.memory_space<vmem>>, %arg4: memref<32x32xf32, #tpu.memory_space<vmem>>, %arg5: memref<1x256x32xf32, #tpu.memory_space<vmem>>) attributes {dimension_semantics = [#tpu.dimension_semantics<parallel>], iteration_bounds = array<i64: 2>, scalar_prefetch = 0 : i64, scratch_operands = 0 : i64, tpu.core_type = #tpu.core_type<tc>, window_params = [{transform_indices = @transform_0, window_bounds = array<i64: 1, 256, 32>}, {pipeline_mode = #tpu.pipeline_mode<synchronous>, transform_indices = @transform_1, window_bounds = array<i64: 1, 32>}, {pipeline_mode = #tpu.pipeline_mode<synchronous>, transform_indices = @transform_2, window_bounds = array<i64: 1, 32>}, {pipeline_mode = #tpu.pipeline_mode<synchronous>, transform_indices = @transform_3, window_bounds = array<i64: 32, 32>}, {transform_indices = @transform_4, window_bounds = array<i64: 1, 256, 32>}]} {
    %c0 = arith.constant 0 : index
    %c0_0 = arith.constant 0 : index
    %c0_1 = arith.constant 0 : index
    %0 = vector.load %arg1[%c0, %c0_0, %c0_1] : memref<1x256x32xf32, #tpu.memory_space<vmem>>, vector<1x256x32xf32>
    %1 = vector.shape_cast %0 : vector<1x256x32xf32> to vector<256x32xf32>
    %cst = arith.constant dense<0.000000e+00> : vector<32xf32>
    %2 = vector.multi_reduction <add>, %1, %cst [0] : vector<256x32xf32> to vector<32xf32>
    %3 = vector.shape_cast %2 : vector<32xf32> to vector<1x32xf32>
    %4 = arith.mulf %1, %1 : vector<256x32xf32>
    %cst_2 = arith.constant dense<0.000000e+00> : vector<32xf32>
    %5 = vector.multi_reduction <add>, %4, %cst_2 [0] : vector<256x32xf32> to vector<32xf32>
    %6 = vector.shape_cast %5 : vector<32xf32> to vector<1x32xf32>
    %c0_3 = arith.constant 0 : index
    %c0_4 = arith.constant 0 : index
    %7 = vector.load %arg4[%c0_3, %c0_4] : memref<32x32xf32, #tpu.memory_space<vmem>>, vector<32x32xf32>
    %cst_5 = arith.constant dense<0.000000e+00> : vector<1x32xf32>
    %8 = tpu.matmul %3, %7, %cst_5 {dimension_numbers = #tpu.dot_dimension_numbers<[1], [0], [0], [1], [0, 0, 1, 1], [], []>} : vector<1x32xf32>, vector<32x32xf32>, vector<1x32xf32> -> vector<1x32xf32>
    %c0_6 = arith.constant 0 : index
    %c0_7 = arith.constant 0 : index
    %9 = vector.load %arg4[%c0_6, %c0_7] : memref<32x32xf32, #tpu.memory_space<vmem>>, vector<32x32xf32>
    %cst_8 = arith.constant dense<0.000000e+00> : vector<1x32xf32>
    %10 = tpu.matmul %6, %9, %cst_8 {dimension_numbers = #tpu.dot_dimension_numbers<[1], [0], [0], [1], [0, 0, 1, 1], [], []>} : vector<1x32xf32>, vector<32x32xf32>, vector<1x32xf32> -> vector<1x32xf32>
    %11 = arith.mulf %8, %8 : vector<1x32xf32>
    %12 = arith.subf %10, %11 : vector<1x32xf32>
    %cst_9 = arith.constant 9.99999974E-6 : f32
    %13 = vector.broadcast %cst_9 : f32 to vector<1x32xf32>
    %14 = arith.addf %12, %13 : vector<1x32xf32>
    %15 = math.rsqrt %14 : vector<1x32xf32>
    %c0_10 = arith.constant 0 : index
    %c0_11 = arith.constant 0 : index
    %16 = vector.load %arg2[%c0_10, %c0_11] : memref<1x32xf32, #tpu.memory_space<vmem>>, vector<1x32xf32>
    %17 = arith.mulf %15, %16 : vector<1x32xf32>
    %c0_12 = arith.constant 0 : index
    %c0_13 = arith.constant 0 : index
    %18 = vector.load %arg3[%c0_12, %c0_13] : memref<1x32xf32, #tpu.memory_space<vmem>>, vector<1x32xf32>
    %19 = arith.mulf %8, %17 : vector<1x32xf32>
    %20 = arith.subf %18, %19 : vector<1x32xf32>
    %21 = vector.broadcast %17 : vector<1x32xf32> to vector<256x32xf32>
    %22 = arith.mulf %1, %21 : vector<256x32xf32>
    %23 = vector.broadcast %20 : vector<1x32xf32> to vector<256x32xf32>
    %24 = arith.addf %22, %23 : vector<256x32xf32>
    %cst_14 = arith.constant 0.000000e+00 : f32
    %25 = vector.broadcast %cst_14 : f32 to vector<256x32xf32>
    %26 = arith.subf %25, %24 : vector<256x32xf32>
    %27 = math.exp %26 : vector<256x32xf32>
    %cst_15 = arith.constant 1.000000e+00 : f32
    %28 = vector.broadcast %cst_15 : f32 to vector<256x32xf32>
    %29 = arith.addf %28, %27 : vector<256x32xf32>
    %30 = tpu.reciprocal %29 {approx = true} : vector<256x32xf32> -> vector<256x32xf32>
    %31 = arith.mulf %24, %30 : vector<256x32xf32>
    %c0_16 = arith.constant 0 : index
    %c0_17 = arith.constant 0 : index
    %c0_18 = arith.constant 0 : index
    %32 = vector.load %arg5[%c0_16, %c0_17, %c0_18] : memref<1x256x32xf32, #tpu.memory_space<vmem>>, vector<1x256x32xf32>
    %33 = vector.shape_cast %32 : vector<1x256x32xf32> to vector<256x32xf32>
    %34 = vector.shape_cast %31 : vector<256x32xf32> to vector<1x256x32xf32>
    tpu.vector_store %arg5[%c0_16, %c0_17, %c0_18], %34 {strides = array<i32>} : memref<1x256x32xf32, #tpu.memory_space<vmem>>, vector<1x256x32xf32>,
    return
  }
  func.func @transform_0(%arg0: i32) -> (i32, i32, i32) {
    %c0_i32 = arith.constant 0 : i32
    %c0_i32_0 = arith.constant 0 : i32
    %c0_i32_1 = arith.constant 0 : i32
    return %arg0, %c0_i32, %c0_i32_0 : i32, i32, i32
  }
  func.func @transform_1(%arg0: i32) -> (i32, i32) {
    %c0_i32 = arith.constant 0 : i32
    %c0_i32_0 = arith.constant 0 : i32
    %c0_i32_1 = arith.constant 0 : i32
    return %c0_i32, %c0_i32_0 : i32, i32
  }
  func.func @transform_2(%arg0: i32) -> (i32, i32) {
    %c0_i32 = arith.constant 0 : i32
    %c0_i32_0 = arith.constant 0 : i32
    %c0_i32_1 = arith.constant 0 : i32
    return %c0_i32, %c0_i32_0 : i32, i32
  }
  func.func @transform_3(%arg0: i32) -> (i32, i32) {
    %c0_i32 = arith.constant 0 : i32
    %c0_i32_0 = arith.constant 0 : i32
    %c0_i32_1 = arith.constant 0 : i32
    return %c0_i32, %c0_i32_0 : i32, i32
  }
  func.func @transform_4(%arg0: i32) -> (i32, i32, i32) {
    %c0_i32 = arith.constant 0 : i32
    %c0_i32_0 = arith.constant 0 : i32
    %c0_i32_1 = arith.constant 0 : i32
    return %arg0, %c0_i32, %c0_i32_0 : i32, i32, i32
  }
}

module attributes {stable_mosaic.version = 11 : i64} {
  func.func @kernel(%arg0: i32, %arg1: i32, %arg2: i32, %arg3: memref<256x128xbf16, #tpu.memory_space<vmem>>, %arg4: memref<128x128xbf16, #tpu.memory_space<vmem>>, %arg5: memref<1x128xf32, #tpu.memory_space<vmem>>, %arg6: memref<256x128xf32, #tpu.memory_space<vmem>>, %arg7: memref<256x128xf32, #tpu.memory_space<vmem>>) attributes {dimension_semantics = [#tpu.dimension_semantics<parallel>, #tpu.dimension_semantics<parallel>, #tpu.dimension_semantics<arbitrary>], iteration_bounds = array<i64: 2, 1, 3>, scalar_prefetch = 0 : i64, scratch_operands = 1 : i64, tpu.core_type = #tpu.core_type<tc>, window_params = [{transform_indices = @transform_0, window_bounds = array<i64: 256, 128>}, {transform_indices = @transform_1, window_bounds = array<i64: 128, 128>}, {transform_indices = @transform_2, window_bounds = array<i64: 1, 128>}, {transform_indices = @transform_3, window_bounds = array<i64: 256, 128>}]} {
    %c0_i32 = arith.constant 0 : i32
    %0 = arith.cmpi eq, %arg2, %c0_i32 : i32
    %1 = arith.extui %0 : i1 to i32
    %c0_i32_0 = arith.constant 0 : i32
    %2 = arith.cmpi ne, %1, %c0_i32_0 : i32
    scf.if %2 {
      %cst_9 = arith.constant 0.000000e+00 : f32
      %12 = vector.broadcast %cst_9 : f32 to vector<256x128xf32>
      %c0_10 = arith.constant 0 : index
      %c0_11 = arith.constant 0 : index
      %13 = vector.load %arg7[%c0_10, %c0_11] : memref<256x128xf32, #tpu.memory_space<vmem>>, vector<256x128xf32>
      tpu.vector_store %arg7[%c0_10, %c0_11], %12 {strides = array<i32>} : memref<256x128xf32, #tpu.memory_space<vmem>>, vector<256x128xf32>,
    } else {
    }
    %c0 = arith.constant 0 : index
    %c0_1 = arith.constant 0 : index
    %3 = vector.load %arg3[%c0, %c0_1] : memref<256x128xbf16, #tpu.memory_space<vmem>>, vector<256x128xbf16>
    %c0_2 = arith.constant 0 : index
    %c0_3 = arith.constant 0 : index
    %4 = vector.load %arg7[%c0_2, %c0_3] : memref<256x128xf32, #tpu.memory_space<vmem>>, vector<256x128xf32>
    %c0_4 = arith.constant 0 : index
    %c0_5 = arith.constant 0 : index
    %5 = vector.load %arg4[%c0_4, %c0_5] : memref<128x128xbf16, #tpu.memory_space<vmem>>, vector<128x128xbf16>
    %cst = arith.constant dense<0.000000e+00> : vector<256x128xf32>
    %6 = tpu.matmul %3, %5, %cst {dimension_numbers = #tpu.dot_dimension_numbers<[1], [0], [0], [1], [0, 0, 1, 1], [], []>} : vector<256x128xbf16>, vector<128x128xbf16>, vector<256x128xf32> -> vector<256x128xf32>
    %7 = arith.addf %4, %6 : vector<256x128xf32>
    %c0_6 = arith.constant 0 : index
    %c0_7 = arith.constant 0 : index
    %8 = vector.load %arg7[%c0_6, %c0_7] : memref<256x128xf32, #tpu.memory_space<vmem>>, vector<256x128xf32>
    tpu.vector_store %arg7[%c0_6, %c0_7], %7 {strides = array<i32>} : memref<256x128xf32, #tpu.memory_space<vmem>>, vector<256x128xf32>,
    %c2_i32 = arith.constant 2 : i32
    %9 = arith.cmpi eq, %arg2, %c2_i32 : i32
    %10 = arith.extui %9 : i1 to i32
    %c0_i32_8 = arith.constant 0 : i32
    %11 = arith.cmpi ne, %10, %c0_i32_8 : i32
    scf.if %11 {
      %c0_9 = arith.constant 0 : index
      %c0_10 = arith.constant 0 : index
      %12 = vector.load %arg7[%c0_9, %c0_10] : memref<256x128xf32, #tpu.memory_space<vmem>>, vector<256x128xf32>
      %c0_11 = arith.constant 0 : index
      %c0_12 = arith.constant 0 : index
      %13 = vector.load %arg5[%c0_11, %c0_12] : memref<1x128xf32, #tpu.memory_space<vmem>>, vector<1x128xf32>
      %14 = vector.broadcast %13 : vector<1x128xf32> to vector<256x128xf32>
      %15 = arith.addf %12, %14 : vector<256x128xf32>
      %c0_13 = arith.constant 0 : index
      %c0_14 = arith.constant 0 : index
      %16 = vector.load %arg6[%c0_13, %c0_14] : memref<256x128xf32, #tpu.memory_space<vmem>>, vector<256x128xf32>
      tpu.vector_store %arg6[%c0_13, %c0_14], %15 {strides = array<i32>} : memref<256x128xf32, #tpu.memory_space<vmem>>, vector<256x128xf32>,
    } else {
    }
    return
  }
  func.func @transform_0(%arg0: i32, %arg1: i32, %arg2: i32) -> (i32, i32) {
    %c0_i32 = arith.constant 0 : i32
    return %arg0, %arg2 : i32, i32
  }
  func.func @transform_1(%arg0: i32, %arg1: i32, %arg2: i32) -> (i32, i32) {
    %c0_i32 = arith.constant 0 : i32
    return %arg2, %arg1 : i32, i32
  }
  func.func @transform_2(%arg0: i32, %arg1: i32, %arg2: i32) -> (i32, i32) {
    %c0_i32 = arith.constant 0 : i32
    %c0_i32_0 = arith.constant 0 : i32
    return %c0_i32, %arg1 : i32, i32
  }
  func.func @transform_3(%arg0: i32, %arg1: i32, %arg2: i32) -> (i32, i32) {
    %c0_i32 = arith.constant 0 : i32
    return %arg0, %arg1 : i32, i32
  }
}

module attributes {stable_mosaic.version = 11 : i64} {
  func.func @kernel(%arg0: i32, %arg1: memref<1x256x64xf32, #tpu.memory_space<vmem>>, %arg2: memref<1x64xf32, #tpu.memory_space<vmem>>, %arg3: memref<1x64xf32, #tpu.memory_space<vmem>>, %arg4: memref<64x64xf32, #tpu.memory_space<vmem>>, %arg5: memref<1x1x64xf32, #tpu.memory_space<vmem>>, %arg6: memref<1x256x64xf32, #tpu.memory_space<vmem>>) attributes {dimension_semantics = [#tpu.dimension_semantics<parallel>], iteration_bounds = array<i64: 2>, scalar_prefetch = 0 : i64, scratch_operands = 0 : i64, tpu.core_type = #tpu.core_type<tc>, window_params = [{transform_indices = @transform_0, window_bounds = array<i64: 1, 256, 64>}, {pipeline_mode = #tpu.pipeline_mode<synchronous>, transform_indices = @transform_1, window_bounds = array<i64: 1, 64>}, {pipeline_mode = #tpu.pipeline_mode<synchronous>, transform_indices = @transform_2, window_bounds = array<i64: 1, 64>}, {pipeline_mode = #tpu.pipeline_mode<synchronous>, transform_indices = @transform_3, window_bounds = array<i64: 64, 64>}, {transform_indices = @transform_4, window_bounds = array<i64: 1, 1, 64>}, {transform_indices = @transform_5, window_bounds = array<i64: 1, 256, 64>}]} {
    %c0 = arith.constant 0 : index
    %c0_0 = arith.constant 0 : index
    %c0_1 = arith.constant 0 : index
    %0 = vector.load %arg1[%c0, %c0_0, %c0_1] : memref<1x256x64xf32, #tpu.memory_space<vmem>>, vector<1x256x64xf32>
    %1 = vector.shape_cast %0 : vector<1x256x64xf32> to vector<256x64xf32>
    %c0_2 = arith.constant 0 : index
    %c0_3 = arith.constant 0 : index
    %c0_4 = arith.constant 0 : index
    %2 = vector.load %arg5[%c0_2, %c0_3, %c0_4] : memref<1x1x64xf32, #tpu.memory_space<vmem>>, vector<1x1x64xf32>
    %3 = vector.shape_cast %2 : vector<1x1x64xf32> to vector<1x64xf32>
    %4 = vector.broadcast %3 : vector<1x64xf32> to vector<256x64xf32>
    %5 = arith.addf %1, %4 : vector<256x64xf32>
    %cst = arith.constant dense<0.000000e+00> : vector<64xf32>
    %6 = vector.multi_reduction <add>, %5, %cst [0] : vector<256x64xf32> to vector<64xf32>
    %7 = vector.shape_cast %6 : vector<64xf32> to vector<1x64xf32>
    %8 = arith.mulf %5, %5 : vector<256x64xf32>
    %cst_5 = arith.constant dense<0.000000e+00> : vector<64xf32>
    %9 = vector.multi_reduction <add>, %8, %cst_5 [0] : vector<256x64xf32> to vector<64xf32>
    %10 = vector.shape_cast %9 : vector<64xf32> to vector<1x64xf32>
    %c0_6 = arith.constant 0 : index
    %c0_7 = arith.constant 0 : index
    %11 = vector.load %arg4[%c0_6, %c0_7] : memref<64x64xf32, #tpu.memory_space<vmem>>, vector<64x64xf32>
    %cst_8 = arith.constant dense<0.000000e+00> : vector<1x64xf32>
    %12 = tpu.matmul %7, %11, %cst_8 {dimension_numbers = #tpu.dot_dimension_numbers<[1], [0], [0], [1], [0, 0, 1, 1], [], []>} : vector<1x64xf32>, vector<64x64xf32>, vector<1x64xf32> -> vector<1x64xf32>
    %c0_9 = arith.constant 0 : index
    %c0_10 = arith.constant 0 : index
    %13 = vector.load %arg4[%c0_9, %c0_10] : memref<64x64xf32, #tpu.memory_space<vmem>>, vector<64x64xf32>
    %cst_11 = arith.constant dense<0.000000e+00> : vector<1x64xf32>
    %14 = tpu.matmul %10, %13, %cst_11 {dimension_numbers = #tpu.dot_dimension_numbers<[1], [0], [0], [1], [0, 0, 1, 1], [], []>} : vector<1x64xf32>, vector<64x64xf32>, vector<1x64xf32> -> vector<1x64xf32>
    %15 = arith.mulf %12, %12 : vector<1x64xf32>
    %16 = arith.subf %14, %15 : vector<1x64xf32>
    %cst_12 = arith.constant 9.99999974E-6 : f32
    %17 = vector.broadcast %cst_12 : f32 to vector<1x64xf32>
    %18 = arith.addf %16, %17 : vector<1x64xf32>
    %19 = math.rsqrt %18 : vector<1x64xf32>
    %c0_13 = arith.constant 0 : index
    %c0_14 = arith.constant 0 : index
    %20 = vector.load %arg2[%c0_13, %c0_14] : memref<1x64xf32, #tpu.memory_space<vmem>>, vector<1x64xf32>
    %21 = arith.mulf %19, %20 : vector<1x64xf32>
    %c0_15 = arith.constant 0 : index
    %c0_16 = arith.constant 0 : index
    %22 = vector.load %arg3[%c0_15, %c0_16] : memref<1x64xf32, #tpu.memory_space<vmem>>, vector<1x64xf32>
    %23 = arith.mulf %12, %21 : vector<1x64xf32>
    %24 = arith.subf %22, %23 : vector<1x64xf32>
    %25 = vector.broadcast %21 : vector<1x64xf32> to vector<256x64xf32>
    %26 = arith.mulf %5, %25 : vector<256x64xf32>
    %27 = vector.broadcast %24 : vector<1x64xf32> to vector<256x64xf32>
    %28 = arith.addf %26, %27 : vector<256x64xf32>
    %cst_17 = arith.constant 0.000000e+00 : f32
    %29 = vector.broadcast %cst_17 : f32 to vector<256x64xf32>
    %30 = arith.subf %29, %28 : vector<256x64xf32>
    %31 = math.exp %30 : vector<256x64xf32>
    %cst_18 = arith.constant 1.000000e+00 : f32
    %32 = vector.broadcast %cst_18 : f32 to vector<256x64xf32>
    %33 = arith.addf %32, %31 : vector<256x64xf32>
    %34 = tpu.reciprocal %33 {approx = true} : vector<256x64xf32> -> vector<256x64xf32>
    %35 = arith.mulf %28, %34 : vector<256x64xf32>
    %c0_19 = arith.constant 0 : index
    %c0_20 = arith.constant 0 : index
    %c0_21 = arith.constant 0 : index
    %36 = vector.load %arg6[%c0_19, %c0_20, %c0_21] : memref<1x256x64xf32, #tpu.memory_space<vmem>>, vector<1x256x64xf32>
    %37 = vector.shape_cast %36 : vector<1x256x64xf32> to vector<256x64xf32>
    %38 = vector.shape_cast %35 : vector<256x64xf32> to vector<1x256x64xf32>
    tpu.vector_store %arg6[%c0_19, %c0_20, %c0_21], %38 {strides = array<i32>} : memref<1x256x64xf32, #tpu.memory_space<vmem>>, vector<1x256x64xf32>,
    return
  }
  func.func @transform_0(%arg0: i32) -> (i32, i32, i32) {
    %c0_i32 = arith.constant 0 : i32
    %c0_i32_0 = arith.constant 0 : i32
    %c0_i32_1 = arith.constant 0 : i32
    return %arg0, %c0_i32, %c0_i32_0 : i32, i32, i32
  }
  func.func @transform_1(%arg0: i32) -> (i32, i32) {
    %c0_i32 = arith.constant 0 : i32
    %c0_i32_0 = arith.constant 0 : i32
    %c0_i32_1 = arith.constant 0 : i32
    return %c0_i32, %c0_i32_0 : i32, i32
  }
  func.func @transform_2(%arg0: i32) -> (i32, i32) {
    %c0_i32 = arith.constant 0 : i32
    %c0_i32_0 = arith.constant 0 : i32
    %c0_i32_1 = arith.constant 0 : i32
    return %c0_i32, %c0_i32_0 : i32, i32
  }
  func.func @transform_3(%arg0: i32) -> (i32, i32) {
    %c0_i32 = arith.constant 0 : i32
    %c0_i32_0 = arith.constant 0 : i32
    %c0_i32_1 = arith.constant 0 : i32
    return %c0_i32, %c0_i32_0 : i32, i32
  }
  func.func @transform_4(%arg0: i32) -> (i32, i32, i32) {
    %c0_i32 = arith.constant 0 : i32
    %c0_i32_0 = arith.constant 0 : i32
    %c0_i32_1 = arith.constant 0 : i32
    return %arg0, %c0_i32, %c0_i32_0 : i32, i32, i32
  }
  func.func @transform_5(%arg0: i32) -> (i32, i32, i32) {
    %c0_i32 = arith.constant 0 : i32
    %c0_i32_0 = arith.constant 0 : i32
    %c0_i32_1 = arith.constant 0 : i32
    return %arg0, %c0_i32, %c0_i32_0 : i32, i32, i32
  }
}

module attributes {stable_mosaic.version = 11 : i64} {
  func.func @kernel(%arg0: i32, %arg1: i32, %arg2: i32, %arg3: memref<8x128xbf16, #tpu.memory_space<vmem>>, %arg4: memref<128x128xbf16, #tpu.memory_space<vmem>>, %arg5: memref<1x128xf32, #tpu.memory_space<vmem>>, %arg6: memref<8x128xf32, #tpu.memory_space<vmem>>, %arg7: memref<8x128xf32, #tpu.memory_space<vmem>>) attributes {dimension_semantics = [#tpu.dimension_semantics<parallel>, #tpu.dimension_semantics<parallel>, #tpu.dimension_semantics<arbitrary>], iteration_bounds = array<i64: 1, 1, 1>, scalar_prefetch = 0 : i64, scratch_operands = 1 : i64, tpu.core_type = #tpu.core_type<tc>, window_params = [{transform_indices = @transform_0, window_bounds = array<i64: 8, 128>}, {transform_indices = @transform_1, window_bounds = array<i64: 128, 128>}, {transform_indices = @transform_2, window_bounds = array<i64: 1, 128>}, {transform_indices = @transform_3, window_bounds = array<i64: 8, 128>}]} {
    %c0_i32 = arith.constant 0 : i32
    %0 = arith.cmpi eq, %arg2, %c0_i32 : i32
    %1 = arith.extui %0 : i1 to i32
    %c0_i32_0 = arith.constant 0 : i32
    %2 = arith.cmpi ne, %1, %c0_i32_0 : i32
    scf.if %2 {
      %cst_12 = arith.constant 0.000000e+00 : f32
      %21 = vector.broadcast %cst_12 : f32 to vector<8x128xf32>
      %c0_13 = arith.constant 0 : index
      %c0_14 = arith.constant 0 : index
      %22 = vector.load %arg7[%c0_13, %c0_14] : memref<8x128xf32, #tpu.memory_space<vmem>>, vector<8x128xf32>
      tpu.vector_store %arg7[%c0_13, %c0_14], %21 {strides = array<i32>} : memref<8x128xf32, #tpu.memory_space<vmem>>, vector<8x128xf32>,
    } else {
    }
    %c0 = arith.constant 0 : index
    %c0_1 = arith.constant 0 : index
    %3 = vector.load %arg3[%c0, %c0_1] : memref<8x128xbf16, #tpu.memory_space<vmem>>, vector<8x128xbf16>
    %4 = arith.extf %3 : vector<8x128xbf16> to vector<8x128xf32>
    %cst = arith.constant 0.000000e+00 : f32
    %5 = vector.broadcast %cst : f32 to vector<8x128xf32>
    %6 = arith.subf %5, %4 : vector<8x128xf32>
    %7 = math.exp %6 : vector<8x128xf32>
    %cst_2 = arith.constant 1.000000e+00 : f32
    %8 = vector.broadcast %cst_2 : f32 to vector<8x128xf32>
    %9 = arith.addf %8, %7 : vector<8x128xf32>
    %10 = tpu.reciprocal %9 {approx = true} : vector<8x128xf32> -> vector<8x128xf32>
    %11 = arith.mulf %4, %10 : vector<8x128xf32>
    %12 = arith.truncf %11 : vector<8x128xf32> to vector<8x128xbf16>
    %c0_3 = arith.constant 0 : index
    %c0_4 = arith.constant 0 : index
    %13 = vector.load %arg7[%c0_3, %c0_4] : memref<8x128xf32, #tpu.memory_space<vmem>>, vector<8x128xf32>
    %c0_5 = arith.constant 0 : index
    %c0_6 = arith.constant 0 : index
    %14 = vector.load %arg4[%c0_5, %c0_6] : memref<128x128xbf16, #tpu.memory_space<vmem>>, vector<128x128xbf16>
    %cst_7 = arith.constant dense<0.000000e+00> : vector<8x128xf32>
    %15 = tpu.matmul %12, %14, %cst_7 {dimension_numbers = #tpu.dot_dimension_numbers<[1], [0], [0], [1], [0, 0, 1, 1], [], []>} : vector<8x128xbf16>, vector<128x128xbf16>, vector<8x128xf32> -> vector<8x128xf32>
    %16 = arith.addf %13, %15 : vector<8x128xf32>
    %c0_8 = arith.constant 0 : index
    %c0_9 = arith.constant 0 : index
    %17 = vector.load %arg7[%c0_8, %c0_9] : memref<8x128xf32, #tpu.memory_space<vmem>>, vector<8x128xf32>
    tpu.vector_store %arg7[%c0_8, %c0_9], %16 {strides = array<i32>} : memref<8x128xf32, #tpu.memory_space<vmem>>, vector<8x128xf32>,
    %c0_i32_10 = arith.constant 0 : i32
    %18 = arith.cmpi eq, %arg2, %c0_i32_10 : i32
    %19 = arith.extui %18 : i1 to i32
    %c0_i32_11 = arith.constant 0 : i32
    %20 = arith.cmpi ne, %19, %c0_i32_11 : i32
    scf.if %20 {
      %c0_12 = arith.constant 0 : index
      %c0_13 = arith.constant 0 : index
      %21 = vector.load %arg7[%c0_12, %c0_13] : memref<8x128xf32, #tpu.memory_space<vmem>>, vector<8x128xf32>
      %c0_14 = arith.constant 0 : index
      %c0_15 = arith.constant 0 : index
      %22 = vector.load %arg5[%c0_14, %c0_15] : memref<1x128xf32, #tpu.memory_space<vmem>>, vector<1x128xf32>
      %23 = vector.broadcast %22 : vector<1x128xf32> to vector<8x128xf32>
      %24 = arith.addf %21, %23 : vector<8x128xf32>
      %c0_16 = arith.constant 0 : index
      %c0_17 = arith.constant 0 : index
      %25 = vector.load %arg6[%c0_16, %c0_17] : memref<8x128xf32, #tpu.memory_space<vmem>>, vector<8x128xf32>
      tpu.vector_store %arg6[%c0_16, %c0_17], %24 {strides = array<i32>} : memref<8x128xf32, #tpu.memory_space<vmem>>, vector<8x128xf32>,
    } else {
    }
    return
  }
  func.func @transform_0(%arg0: i32, %arg1: i32, %arg2: i32) -> (i32, i32) {
    %c0_i32 = arith.constant 0 : i32
    return %arg0, %arg2 : i32, i32
  }
  func.func @transform_1(%arg0: i32, %arg1: i32, %arg2: i32) -> (i32, i32) {
    %c0_i32 = arith.constant 0 : i32
    return %arg2, %arg1 : i32, i32
  }
  func.func @transform_2(%arg0: i32, %arg1: i32, %arg2: i32) -> (i32, i32) {
    %c0_i32 = arith.constant 0 : i32
    %c0_i32_0 = arith.constant 0 : i32
    return %c0_i32, %arg1 : i32, i32
  }
  func.func @transform_3(%arg0: i32, %arg1: i32, %arg2: i32) -> (i32, i32) {
    %c0_i32 = arith.constant 0 : i32
    return %arg0, %arg1 : i32, i32
  }
}

module attributes {stable_mosaic.version = 11 : i64} {
  func.func @kernel(%arg0: i32, %arg1: i32, %arg2: i32, %arg3: memref<256x128xbf16, #tpu.memory_space<vmem>>, %arg4: memref<128x128xbf16, #tpu.memory_space<vmem>>, %arg5: memref<1x128xf32, #tpu.memory_space<vmem>>, %arg6: memref<256x128xf32, #tpu.memory_space<vmem>>, %arg7: memref<256x128xf32, #tpu.memory_space<vmem>>) attributes {dimension_semantics = [#tpu.dimension_semantics<parallel>, #tpu.dimension_semantics<parallel>, #tpu.dimension_semantics<arbitrary>], iteration_bounds = array<i64: 2, 1, 1>, scalar_prefetch = 0 : i64, scratch_operands = 1 : i64, tpu.core_type = #tpu.core_type<tc>, window_params = [{transform_indices = @transform_0, window_bounds = array<i64: 256, 128>}, {transform_indices = @transform_1, window_bounds = array<i64: 128, 128>}, {transform_indices = @transform_2, window_bounds = array<i64: 1, 128>}, {transform_indices = @transform_3, window_bounds = array<i64: 256, 128>}]} {
    %c0_i32 = arith.constant 0 : i32
    %0 = arith.cmpi eq, %arg2, %c0_i32 : i32
    %1 = arith.extui %0 : i1 to i32
    %c0_i32_0 = arith.constant 0 : i32
    %2 = arith.cmpi ne, %1, %c0_i32_0 : i32
    scf.if %2 {
      %cst_10 = arith.constant 0.000000e+00 : f32
      %12 = vector.broadcast %cst_10 : f32 to vector<256x128xf32>
      %c0_11 = arith.constant 0 : index
      %c0_12 = arith.constant 0 : index
      %13 = vector.load %arg7[%c0_11, %c0_12] : memref<256x128xf32, #tpu.memory_space<vmem>>, vector<256x128xf32>
      tpu.vector_store %arg7[%c0_11, %c0_12], %12 {strides = array<i32>} : memref<256x128xf32, #tpu.memory_space<vmem>>, vector<256x128xf32>,
    } else {
    }
    %c0 = arith.constant 0 : index
    %c0_1 = arith.constant 0 : index
    %3 = vector.load %arg3[%c0, %c0_1] : memref<256x128xbf16, #tpu.memory_space<vmem>>, vector<256x128xbf16>
    %c0_2 = arith.constant 0 : index
    %c0_3 = arith.constant 0 : index
    %4 = vector.load %arg7[%c0_2, %c0_3] : memref<256x128xf32, #tpu.memory_space<vmem>>, vector<256x128xf32>
    %c0_4 = arith.constant 0 : index
    %c0_5 = arith.constant 0 : index
    %5 = vector.load %arg4[%c0_4, %c0_5] : memref<128x128xbf16, #tpu.memory_space<vmem>>, vector<128x128xbf16>
    %cst = arith.constant dense<0.000000e+00> : vector<256x128xf32>
    %6 = tpu.matmul %3, %5, %cst {dimension_numbers = #tpu.dot_dimension_numbers<[1], [0], [0], [1], [0, 0, 1, 1], [], []>} : vector<256x128xbf16>, vector<128x128xbf16>, vector<256x128xf32> -> vector<256x128xf32>
    %7 = arith.addf %4, %6 : vector<256x128xf32>
    %c0_6 = arith.constant 0 : index
    %c0_7 = arith.constant 0 : index
    %8 = vector.load %arg7[%c0_6, %c0_7] : memref<256x128xf32, #tpu.memory_space<vmem>>, vector<256x128xf32>
    tpu.vector_store %arg7[%c0_6, %c0_7], %7 {strides = array<i32>} : memref<256x128xf32, #tpu.memory_space<vmem>>, vector<256x128xf32>,
    %c0_i32_8 = arith.constant 0 : i32
    %9 = arith.cmpi eq, %arg2, %c0_i32_8 : i32
    %10 = arith.extui %9 : i1 to i32
    %c0_i32_9 = arith.constant 0 : i32
    %11 = arith.cmpi ne, %10, %c0_i32_9 : i32
    scf.if %11 {
      %c0_10 = arith.constant 0 : index
      %c0_11 = arith.constant 0 : index
      %12 = vector.load %arg7[%c0_10, %c0_11] : memref<256x128xf32, #tpu.memory_space<vmem>>, vector<256x128xf32>
      %c0_12 = arith.constant 0 : index
      %c0_13 = arith.constant 0 : index
      %13 = vector.load %arg5[%c0_12, %c0_13] : memref<1x128xf32, #tpu.memory_space<vmem>>, vector<1x128xf32>
      %14 = vector.broadcast %13 : vector<1x128xf32> to vector<256x128xf32>
      %15 = arith.addf %12, %14 : vector<256x128xf32>
      %c0_14 = arith.constant 0 : index
      %c0_15 = arith.constant 0 : index
      %16 = vector.load %arg6[%c0_14, %c0_15] : memref<256x128xf32, #tpu.memory_space<vmem>>, vector<256x128xf32>
      tpu.vector_store %arg6[%c0_14, %c0_15], %15 {strides = array<i32>} : memref<256x128xf32, #tpu.memory_space<vmem>>, vector<256x128xf32>,
    } else {
    }
    return
  }
  func.func @transform_0(%arg0: i32, %arg1: i32, %arg2: i32) -> (i32, i32) {
    %c0_i32 = arith.constant 0 : i32
    return %arg0, %arg2 : i32, i32
  }
  func.func @transform_1(%arg0: i32, %arg1: i32, %arg2: i32) -> (i32, i32) {
    %c0_i32 = arith.constant 0 : i32
    return %arg2, %arg1 : i32, i32
  }
  func.func @transform_2(%arg0: i32, %arg1: i32, %arg2: i32) -> (i32, i32) {
    %c0_i32 = arith.constant 0 : i32
    %c0_i32_0 = arith.constant 0 : i32
    return %c0_i32, %arg1 : i32, i32
  }
  func.func @transform_3(%arg0: i32, %arg1: i32, %arg2: i32) -> (i32, i32) {
    %c0_i32 = arith.constant 0 : i32
    return %arg0, %arg1 : i32, i32
  }
}

module attributes {stable_mosaic.version = 11 : i64} {
  func.func @kernel(%arg0: i32, %arg1: i32, %arg2: i32, %arg3: memref<256x128xbf16, #tpu.memory_space<vmem>>, %arg4: memref<128x128xbf16, #tpu.memory_space<vmem>>, %arg5: memref<1x128xf32, #tpu.memory_space<vmem>>, %arg6: memref<256x128xf32, #tpu.memory_space<vmem>>, %arg7: memref<256x128xf32, #tpu.memory_space<vmem>>, %arg8: memref<256x128xf32, #tpu.memory_space<vmem>>) attributes {dimension_semantics = [#tpu.dimension_semantics<parallel>, #tpu.dimension_semantics<parallel>, #tpu.dimension_semantics<arbitrary>], iteration_bounds = array<i64: 2, 1, 5>, scalar_prefetch = 0 : i64, scratch_operands = 1 : i64, tpu.core_type = #tpu.core_type<tc>, window_params = [{transform_indices = @transform_0, window_bounds = array<i64: 256, 128>}, {transform_indices = @transform_1, window_bounds = array<i64: 128, 128>}, {transform_indices = @transform_2, window_bounds = array<i64: 1, 128>}, {transform_indices = @transform_3, window_bounds = array<i64: 256, 128>}, {transform_indices = @transform_4, window_bounds = array<i64: 256, 128>}]} {
    %c0_i32 = arith.constant 0 : i32
    %0 = arith.cmpi eq, %arg2, %c0_i32 : i32
    %1 = arith.extui %0 : i1 to i32
    %c0_i32_0 = arith.constant 0 : i32
    %2 = arith.cmpi ne, %1, %c0_i32_0 : i32
    scf.if %2 {
      %cst_9 = arith.constant 0.000000e+00 : f32
      %12 = vector.broadcast %cst_9 : f32 to vector<256x128xf32>
      %c0_10 = arith.constant 0 : index
      %c0_11 = arith.constant 0 : index
      %13 = vector.load %arg8[%c0_10, %c0_11] : memref<256x128xf32, #tpu.memory_space<vmem>>, vector<256x128xf32>
      tpu.vector_store %arg8[%c0_10, %c0_11], %12 {strides = array<i32>} : memref<256x128xf32, #tpu.memory_space<vmem>>, vector<256x128xf32>,
    } else {
    }
    %c0 = arith.constant 0 : index
    %c0_1 = arith.constant 0 : index
    %3 = vector.load %arg3[%c0, %c0_1] : memref<256x128xbf16, #tpu.memory_space<vmem>>, vector<256x128xbf16>
    %c0_2 = arith.constant 0 : index
    %c0_3 = arith.constant 0 : index
    %4 = vector.load %arg8[%c0_2, %c0_3] : memref<256x128xf32, #tpu.memory_space<vmem>>, vector<256x128xf32>
    %c0_4 = arith.constant 0 : index
    %c0_5 = arith.constant 0 : index
    %5 = vector.load %arg4[%c0_4, %c0_5] : memref<128x128xbf16, #tpu.memory_space<vmem>>, vector<128x128xbf16>
    %cst = arith.constant dense<0.000000e+00> : vector<256x128xf32>
    %6 = tpu.matmul %3, %5, %cst {dimension_numbers = #tpu.dot_dimension_numbers<[1], [0], [0], [1], [0, 0, 1, 1], [], []>} : vector<256x128xbf16>, vector<128x128xbf16>, vector<256x128xf32> -> vector<256x128xf32>
    %7 = arith.addf %4, %6 : vector<256x128xf32>
    %c0_6 = arith.constant 0 : index
    %c0_7 = arith.constant 0 : index
    %8 = vector.load %arg8[%c0_6, %c0_7] : memref<256x128xf32, #tpu.memory_space<vmem>>, vector<256x128xf32>
    tpu.vector_store %arg8[%c0_6, %c0_7], %7 {strides = array<i32>} : memref<256x128xf32, #tpu.memory_space<vmem>>, vector<256x128xf32>,
    %c4_i32 = arith.constant 4 : i32
    %9 = arith.cmpi eq, %arg2, %c4_i32 : i32
    %10 = arith.extui %9 : i1 to i32
    %c0_i32_8 = arith.constant 0 : i32
    %11 = arith.cmpi ne, %10, %c0_i32_8 : i32
    scf.if %11 {
      %c0_9 = arith.constant 0 : index
      %c0_10 = arith.constant 0 : index
      %12 = vector.load %arg8[%c0_9, %c0_10] : memref<256x128xf32, #tpu.memory_space<vmem>>, vector<256x128xf32>
      %c0_11 = arith.constant 0 : index
      %c0_12 = arith.constant 0 : index
      %13 = vector.load %arg5[%c0_11, %c0_12] : memref<1x128xf32, #tpu.memory_space<vmem>>, vector<1x128xf32>
      %14 = vector.broadcast %13 : vector<1x128xf32> to vector<256x128xf32>
      %15 = arith.addf %12, %14 : vector<256x128xf32>
      %c0_13 = arith.constant 0 : index
      %c0_14 = arith.constant 0 : index
      %16 = vector.load %arg6[%c0_13, %c0_14] : memref<256x128xf32, #tpu.memory_space<vmem>>, vector<256x128xf32>
      %17 = arith.addf %15, %16 : vector<256x128xf32>
      %c0_15 = arith.constant 0 : index
      %c0_16 = arith.constant 0 : index
      %18 = vector.load %arg7[%c0_15, %c0_16] : memref<256x128xf32, #tpu.memory_space<vmem>>, vector<256x128xf32>
      tpu.vector_store %arg7[%c0_15, %c0_16], %17 {strides = array<i32>} : memref<256x128xf32, #tpu.memory_space<vmem>>, vector<256x128xf32>,
    } else {
    }
    return
  }
  func.func @transform_0(%arg0: i32, %arg1: i32, %arg2: i32) -> (i32, i32) {
    %c0_i32 = arith.constant 0 : i32
    return %arg0, %arg2 : i32, i32
  }
  func.func @transform_1(%arg0: i32, %arg1: i32, %arg2: i32) -> (i32, i32) {
    %c0_i32 = arith.constant 0 : i32
    return %arg2, %arg1 : i32, i32
  }
  func.func @transform_2(%arg0: i32, %arg1: i32, %arg2: i32) -> (i32, i32) {
    %c0_i32 = arith.constant 0 : i32
    %c0_i32_0 = arith.constant 0 : i32
    return %c0_i32, %arg1 : i32, i32
  }
  func.func @transform_3(%arg0: i32, %arg1: i32, %arg2: i32) -> (i32, i32) {
    %c0_i32 = arith.constant 0 : i32
    return %arg0, %arg1 : i32, i32
  }
  func.func @transform_4(%arg0: i32, %arg1: i32, %arg2: i32) -> (i32, i32) {
    %c0_i32 = arith.constant 0 : i32
    return %arg0, %arg1 : i32, i32
  }
}

</mosaic_0001>

<bundles_post_ra>
// kernel: _lambda_.6
= control target key start
LH: loop header
LB: loop body
LE: loop exit
PB: predicated region body
PF: predicated region fallthrough
CT: control target
= control target key end

     0   :  { %9 = vsyncpa [#allocation3], 0  ;;  %s1951_s0 = inlined_call_operand.hbm [shape: f32[2,256,32], index: 0, kind: input, shape index: {}]   ;;  %s1952_s1 = inlined_call_operand.vmem [shape: f32[1,32], index: 1, kind: input, shape index: {}]   ;;  %s1953_s2 = inlined_call_operand.vmem [shape: f32[1,32], index: 2, kind: input, shape index: {}]   ;;  %s1954_s3 = inlined_call_operand.vmem [shape: f32[32,32], index: 3, kind: input, shape index: {}]   ;;  %s1955_s4 = inlined_call_operand.vmem [shape: f32[2,256,32], index: 4, kind: output, shape index: {}]  }
   0x1   :  { %11 = vsyncpa [#allocation3 + $0x1], 0  ;;  %s1276_s15 = smov 0   ;;  %s1278_s16 = smov 0  }
   0x2   :  { %s1280_s17 = smov 0   ;;  %s1282_s18 = smov 0  }
   0x3 LB: > { %s1295_s19 = sadd.s32 4294967295, %s1243_s18   ;;  %s1298_s20 = sadd.s32 1, %s1243_s18   ;;  %s1243_s18 = sphi %s1282_s18, %s1971_s18   ;;  %s1239_s17 = sphi %s1280_s17, %s1970_s17   ;;  %s1235_s16 = sphi %s1278_s16, %s1969_s16   ;;  %s1231_s15 = sphi %s1276_s15, %s1968_s15  }
   0x4   : > { %s21_s21 = ssub.s32 %s1243_s18, %s1298_s20  ;;  %s24_s22 = sadd.s32 1, %s1239_s17 }
   0x5   : > { %p22_p0 = scmp.eq.s32.totalorder %s21_s21, 0  ;;  %p31_p1 = scmp.ne.s32.totalorder %s1239_s17, %s1235_s16 }
   0x6   : > { %p32_p2 = scmp.eq.s32.totalorder %s1243_s18, 0  ;;  %p37_p3 = scmp.ne.s32.totalorder %s1235_s16, %s1231_s15 }
   0x7   : > { %s1308_s23 = scalar_select %p22_p0, %s1239_s17, %s24_s22  }
   0x8   : > { %p33_p4 = por %p32_p2, %p31_p1  ;;  %p38_p5 = scmp.eq.s32.totalorder %s1295_s19, 0 }
   0x9   : > { %p1011_p6 = scmp.lt.s32.totalorder %s1243_s18, 2  ;;  %s159_s25 = sand.u32 1, %s1239_s17  }
   0xa   : > { %p1312_p7 = por %p38_p5, %p37_p3  ;;  %s948_s26 = sshll.u32 %s159_s25, 8 }
   0xb   : > { %s959_s27 = sshll.u32 %s1243_s18, 12  ;;  %s163_s5 = scalar_lea.vmem [#allocation2], %s948_s26 }
   0xc   : > { %s1321_s30 = scalar_lea.hbm %s1951_s0, %s959_s27  ;;  %s170_s6 = sshll.u32 %s163_s5, 4  ;;  %s1323_s6 = int_to_ptr.vmem [resolvable:$true] %s170_s6 }
   0xd   : > { %p1325_p8 = pnand %p1011_p6, %p33_p4  ;;  %s1330_s8 = scalar_lea.sflag [#allocation3], %s159_s25 }
   0xe   : > { %s1179_s9 = scalar_lea.hbm %s1321_s30, 4096  ;;  %s1184_s12 = scalar_lea.hbm %s1951_s0, 8192 }
   0xf   : > { %p1180_p10 = scmp.ne.s32.totalorder %s1321_s30, %s1179_s9  ;;  %p1181_p11 = pneg %p1325_p8 }
  0x10   : > { %p1185_p0 = scmp.lt.u32.totalorder %s1321_s30, %s1951_s0  ;;  %p1186_p1 = scmp.lt.u32.totalorder %s1184_s12, %s1179_s9 }
  0x11   : > { %p1182_p12 = pnand %p1181_p11, %p1180_p10  ;;  %p1188_p3 = scmp.lt.u32.totalorder %s1179_s9, %s1321_s30 }
  0x12   : > { %p1187_p2 = por %p1186_p1, %p1185_p0 }
  0x13   : > { %p1183_p13 = pneg %p1182_p12 }
  0x14   : > { %p1189_p4 = por %p1188_p3, %p1187_p2 }
  0x16   : > { %p1190_p5 = pnand %p1189_p4, %p1183_p13 }
  0x18   : > { %1193 = shalt.err (!%p1190_p5)
}
  0x19   : > { %s1194_s15 = scalar_lea.vmem %s1323_s6, 4096  ;;  %s1245_s21 = smov [#allocation2]  }
  0x1a   : > { %p1195_p6 = scmp.ne.s32.totalorder %s1323_s6, %s1194_s15  ;;  %s1199_s22 = sshll.u32 %s1245_s21, 4  ;;  %s1200_s22 = int_to_ptr.vmem [resolvable:$false] %s1199_s22 }
  0x1b   : > { %s1201_s25 = scalar_lea.vmem %s1200_s22, 8192  ;;  %p1202_p9 = scmp.lt.s32.totalorder %s1323_s6, %s1200_s22 }
  0x1c   : > { %p1197_p10 = pnand %p1195_p6, %p1181_p11  ;;  %p1203_p0 = scmp.lt.s32.totalorder %s1201_s25, %s1194_s15 }
  0x1e   : > { %p1198_p12 = pneg %p1197_p10  ;;  %p1204_p1 = por %p1203_p0, %p1202_p9 }
  0x20   : > { %p1205_p2 = pnand %p1204_p1, %p1198_p12 }
  0x22   : > { %1208 = shalt.err (!%p1205_p2)
}
  0x23   : > { %s1246_s26 = smov 128   ;;  %s1247_s27 = smov 8  }
  0x24   : > { %1010 = dma.hbm_to_vmem [thread:$0]  (!%p1325_p8), %s1321_s30, 4096, %s1323_s6, %s1330_s8, %s1246_s26, %s1246_s26, %s1247_s27  }
  0x25   : > { %p178_p11 = scmp.lt.s32.totalorder %s1243_s18, 3  ;;  %p1961_p13 = scmp.ge.s32.totalorder %s1243_s18, 1 }
  0x27   : > { %p179_p3 = pnand %p1961_p13, %p178_p11 }
  0x29   : > { %182 = sbr.rel (%p179_p3) target bundleno = 467 (0x1d3), region = 36 }
  0x30   : > { %s184_s28 = sand.u32 1, %s1235_s16  }
  0x31   : > { %s952_s29 = sshll.u32 %s184_s28, 8  ;;  %s185_s5 = scalar_lea.sflag [#allocation3], %s184_s28 }
  0x32   : > { %s1362_s9 = scalar_lea.vmem [#allocation2], %s952_s29 }
  0x33   : > { %1226 = dma.done.wait (%p1312_p7), %s185_s5, 4096  }
  0x34   : > { %1228 = vsyncadd (%p1312_p7), %s185_s5, 4294963200  ;;  %v1248_v0 = vmov 0.0|0.0   ;;  %vm1249_vm0 = vmmov 0   ;;  %v1250_v1 = vmov 0.0   ;;  %vm250_vm1 = vcmask 261120   ;;  %v421_v2 = vld [vmem:[%s1954_s3] sm:$0xff] }
  0x35   : > { %993 = vmatprep.subr.bf16.mxu0 %v1248_v0  ;;  %999 = vmatprep.subr.bf16.mxu1 %v1248_v0  ;;  %v422_v3 = vld [vmem:[%s1954_s3 + $0x8] sm:$0xff]  ;;  %v423_v4 = vld [vmem:[%s1954_s3 + $0x10] sm:$0xff]  ;;  %v424_v6 = vld [vmem:[%s1954_s3 + $0x18] sm:$0xff]  ;;  %p213_p7 = scmp.lt.s32.totalorder %s1295_s19, 1 }
  0x36   : > { %979 = vmatprep.mubr.msk.f32.mxu0 %vm1249_vm0, %v1250_v1  ;;  %990 = vmatprep.mubr.msk.f32.mxu1 %vm1249_vm0, %v1250_v1  ;;  %v994_v5 = vpack.c.bf16 %v422_v3, %v421_v2  ;;  %v1381_v7 = vld [vmem:[%s1362_s9] sm:$0xff]  ;;  %v1384_v8 = vld [vmem:[%s1362_s9 + $0x8] sm:$0xff]  ;;  %v1387_v9 = vld [vmem:[%s1362_s9 + $0x10] sm:$0xff]  ;;  %v997_v13 = vpack.c.bf16 %v424_v6, %v423_v4 }
  0x37   : > { %v1390_v10 = vld [vmem:[%s1362_s9 + $0x18] sm:$0xff]  ;;  %v251_v11 = vsel %vm250_vm1, %v1381_v7, 0.0  ;;  %v252_v12 = vsel %vm250_vm1, %v1384_v8, 0.0  ;;  %v1397_v14 = vld [vmem:[%s1362_s9 + $0x20] sm:$0xff]  ;;  %v254_v16 = vsel %vm250_vm1, %v1387_v9, 0.0  ;;  %v1404_v18 = vld [vmem:[%s1362_s9 + $0x28] sm:$0xff]  ;;  %v320_v36 = vmul.f32 %v1381_v7, %v1381_v7 }
  0x38   : > { %995 = vmatpush3.bf16.msra.mxu0 %v994_v5  ;;  %1001 = vmatpush3.bf16.msra.mxu1 %v994_v5  ;;  %v253_v15 = vadd.f32 %v252_v12, %v251_v11  ;;  %v256_v17 = vsel %vm250_vm1, %v1390_v10, 0.0  ;;  %v258_v20 = vsel %vm250_vm1, %v1397_v14, 0.0  ;;  %v1409_v21 = vld [vmem:[%s1362_s9 + $0x30] sm:$0xff]  ;;  %v260_v23 = vsel %vm250_vm1, %v1404_v18, 0.0  ;;  %v1414_v24 = vld [vmem:[%s1362_s9 + $0x38] sm:$0xff]  ;;  %v1419_v27 = vld [vmem:[%s1362_s9 + $0x40] sm:$0xff] }
  0x39   : > { %996 = vmatprep.subr.bf16.mxu0 %v1248_v0  ;;  %1002 = vmatprep.subr.bf16.mxu1 %v1248_v0  ;;  %v262_v26 = vsel %vm250_vm1, %v1409_v21, 0.0  ;;  %v264_v29 = vsel %vm250_vm1, %v1414_v24, 0.0  ;;  %v1424_v30 = vld [vmem:[%s1362_s9 + $0x48] sm:$0xff]  ;;  %v266_v32 = vsel %vm250_vm1, %v1419_v27, 0.0  ;;  %v1429_v33 = vld [vmem:[%s1362_s9 + $0x50] sm:$0xff]  ;;  %v321_v37 = vmul.f32 %v1384_v8, %v1384_v8  ;;  %v1438_v38 = vld [vmem:[%s1362_s9 + $0x58] sm:$0xff] }
  0x3a   : > { %v255_v19 = vadd.f32 %v254_v16, %v253_v15  ;;  %v268_v35 = vsel %vm250_vm1, %v1424_v30, 0.0  ;;  %v322_v40 = vmul.f32 %v1387_v9, %v1387_v9  ;;  %v270_v41 = vsel %vm250_vm1, %v1429_v33, 0.0  ;;  %v1447_v43 = vld [vmem:[%s1362_s9 + $0x60] sm:$0xff]  ;;  %v1456_v49 = vld [vmem:[%s1362_s9 + $0x68] sm:$0xff]  ;;  %v1465_v56 = vld [vmem:[%s1362_s9 + $0x70] sm:$0xff]  ;;  %s1973_s19 = smov (!%p213_p7, %s1295_s19), 1 }
  0x3b   : > { %v323_v42 = vmul.f32 %v1390_v10, %v1390_v10  ;;  %v272_v45 = vsel %vm250_vm1, %v1438_v38, 0.0  ;;  %v324_v46 = vmul.f32 %v1397_v14, %v1397_v14  ;;  %v352_v47 = vsel %vm250_vm1, %v320_v36, 0.0  ;;  %v1473_v62 = vld [vmem:[%s1362_s9 + $0x78] sm:$0xff]  ;;  %v1481_v4 = vld [vmem:[%s1362_s9 + $0x80] sm:$0xff]  ;;  %v1489_v15 = vld [vmem:[%s1362_s9 + $0x88] sm:$0xff]  ;;  %s960_s21 = sshll.u32 %s1973_s19, 8 }
  0x3c   : > { %998 = vmatpush3.bf16.msra.mxu0 %v997_v13  ;;  %1004 = vmatpush3.bf16.msra.mxu1 %v997_v13  ;;  %v257_v22 = vadd.f32 %v256_v17, %v255_v19  ;;  %v353_v48 = vsel %vm250_vm1, %v321_v37, 0.0  ;;  %v355_v52 = vsel %vm250_vm1, %v322_v40, 0.0  ;;  %v274_v53 = vsel %vm250_vm1, %v1447_v43, 0.0  ;;  %v1513_v40 = vld [vmem:[%s1362_s9 + $0xa0] sm:$0xff]  ;;  %s1827_s26 = scalar_lea.vmem %s1955_s4, %s960_s21 }
  0x3d   : > { %v354_v51 = vadd.f32 %v353_v48, %v352_v47  ;;  %v325_v54 = vmul.f32 %v1404_v18, %v1404_v18  ;;  %v357_v55 = vsel %vm250_vm1, %v323_v42, 0.0  ;;  %v276_v59 = vsel %vm250_vm1, %v1456_v49, 0.0  ;;  %v1521_v47 = vld [vmem:[%s1362_s9 + $0xa8] sm:$0xff] }
  0x3e   : > { %v259_v25 = vadd.f32 %v258_v20, %v257_v22  ;;  %v326_v60 = vmul.f32 %v1409_v21, %v1409_v21  ;;  %v359_v61 = vsel %vm250_vm1, %v324_v46, 0.0  ;;  %v278_v1 = vsel %vm250_vm1, %v1465_v56, 0.0 }
  0x3f   : > { %v356_v58 = vadd.f32 %v355_v52, %v354_v51  ;;  %v327_v2 = vmul.f32 %v1414_v24, %v1414_v24  ;;  %v361_v3 = vsel %vm250_vm1, %v325_v54, 0.0  ;;  %v280_v11 = vsel %vm250_vm1, %v1473_v62, 0.0  ;;  %v1529_v54 = vld [vmem:[%s1362_s9 + $0xb0] sm:$0xff] }
  0x40   : > { %v261_v28 = vadd.f32 %v260_v23, %v259_v25  ;;  %v328_v12 = vmul.f32 %v1419_v27, %v1419_v27  ;;  %v363_v13 = vsel %vm250_vm1, %v326_v60, 0.0  ;;  %v282_v19 = vsel %vm250_vm1, %v1481_v4, 0.0  ;;  %v1497_v23 = vld [vmem:[%s1362_s9 + $0x90] sm:$0xff] }
  0x41   : > { %v358_v0 = vadd.f32 %v357_v55, %v356_v58  ;;  %v329_v20 = vmul.f32 %v1424_v30, %v1424_v30  ;;  %v365_v22 = vsel %vm250_vm1, %v327_v2, 0.0  ;;  %v286_v36 = vsel %vm250_vm1, %v1497_v23, 0.0 }
  0x42   : > { %v263_v31 = vadd.f32 %v262_v26, %v261_v28  ;;  %v284_v28 = vsel %vm250_vm1, %v1489_v15, 0.0  ;;  %v331_v37 = vmul.f32 %v1438_v38, %v1438_v38  ;;  %v290_v51 = vsel %vm250_vm1, %v1513_v40, 0.0 }
  0x43   : > { %v360_v6 = vadd.f32 %v359_v61, %v358_v0  ;;  %v333_v52 = vmul.f32 %v1456_v49, %v1456_v49  ;;  %v292_v58 = vsel %vm250_vm1, %v1521_v47, 0.0  ;;  %v1537_v61 = vld [vmem:[%s1362_s9 + $0xb8] sm:$0xff]  ;;  %v335_v2 = vmul.f32 %v1473_v62, %v1473_v62 }
  0x44   : > { %v265_v34 = vadd.f32 %v264_v29, %v263_v31  ;;  %v330_v29 = vmul.f32 %v1429_v33, %v1429_v33  ;;  %v367_v31 = vsel %vm250_vm1, %v328_v12, 0.0  ;;  %v296_v12 = vsel %vm250_vm1, %v1537_v61, 0.0 }
  0x45   : > { %v362_v17 = vadd.f32 %v361_v3, %v360_v6  ;;  %v377_v3 = vsel %vm250_vm1, %v333_v52, 0.0  ;;  %v340_v52 = vmul.f32 %v1513_v40, %v1513_v40 }
  0x46   : > { %v267_v39 = vadd.f32 %v266_v32, %v265_v34  ;;  %v1505_v32 = vld [vmem:[%s1362_s9 + $0x98] sm:$0xff]  ;;  %v371_v46 = vsel %vm250_vm1, %v330_v29, 0.0 }
  0x47   : > { %v364_v26 = vadd.f32 %v363_v13, %v362_v17  ;;  %v336_v13 = vmul.f32 %v1481_v4, %v1481_v4  ;;  %v1553_v17 = vld [vmem:[%s1362_s9 + $0xc8] sm:$0xff] }
  0x48   : > { %v269_v44 = vadd.f32 %v268_v35, %v267_v39  ;;  %v369_v39 = vsel %vm250_vm1, %v329_v20, 0.0 }
  0x49   : > { %v366_v35 = vadd.f32 %v365_v22, %v364_v26  ;;  %v381_v26 = vsel %vm250_vm1, %v335_v2, 0.0 }
  0x4a   : > { %v271_v50 = vadd.f32 %v270_v41, %v269_v44  ;;  %v288_v44 = vsel %vm250_vm1, %v1505_v32, 0.0 }
  0x4b   : > { %v368_v42 = vadd.f32 %v367_v31, %v366_v35  ;;  %v338_v35 = vmul.f32 %v1497_v23, %v1497_v23 }
  0x4c   : > { %v273_v57 = vadd.f32 %v272_v45, %v271_v50  ;;  %v332_v45 = vmul.f32 %v1447_v43, %v1447_v43 }
  0x4d   : > { %v370_v50 = vadd.f32 %v369_v39, %v368_v42 }
  0x4e   : > { %v275_v63 = vadd.f32 %v274_v53, %v273_v57  ;;  %v373_v53 = vsel %vm250_vm1, %v331_v37, 0.0  ;;  %v375_v60 = vsel %vm250_vm1, %v332_v45, 0.0  ;;  %v1569_v37 = vld [vmem:[%s1362_s9 + $0xd8] sm:$0xff] }
  0x4f   : > { %v372_v57 = vadd.f32 %v371_v46, %v370_v50  ;;  %v1577_v46 = vld [vmem:[%s1362_s9 + $0xe0] sm:$0xff] }
  0x50   : > { %v277_v5 = vadd.f32 %v276_v59, %v275_v63  ;;  %v334_v59 = vmul.f32 %v1465_v56, %v1465_v56 }
  0x51   : > { %v374_v0 = vadd.f32 %v373_v53, %v372_v57  ;;  %v387_v53 = vsel %vm250_vm1, %v338_v35, 0.0 }
  0x52   : > { %v279_v16 = vadd.f32 %v278_v1, %v277_v5  ;;  %v294_v1 = vsel %vm250_vm1, %v1529_v54, 0.0  ;;  %v1545_v5 = vld [vmem:[%s1362_s9 + $0xc0] sm:$0xff] }
  0x53   : > { %v298_v22 = vsel %vm250_vm1, %v1545_v5, 0.0 }
  0x54   : > { %v281_v25 = vadd.f32 %v280_v11, %v279_v16  ;;  %v376_v11 = vadd.f32 %v375_v60, %v374_v0  ;;  %v379_v16 = vsel %vm250_vm1, %v334_v59, 0.0  ;;  %v306_v59 = vsel %vm250_vm1, %v1577_v46, 0.0  ;;  %v1593_v0 = vld [vmem:[%s1362_s9 + $0xf0] sm:$0xff] }
  0x55   : > { %v341_v60 = vmul.f32 %v1521_v47, %v1521_v47 }
  0x56   : > { %v283_v34 = vadd.f32 %v282_v19, %v281_v25  ;;  %v378_v20 = vadd.f32 %v377_v3, %v376_v11  ;;  %v337_v25 = vmul.f32 %v1489_v15, %v1489_v15  ;;  %v391_v11 = vsel %vm250_vm1, %v340_v52, 0.0 }
  0x57   : > { %v347_v52 = vmul.f32 %v1569_v37, %v1569_v37 }
  0x58   : > { %v285_v41 = vadd.f32 %v284_v28, %v283_v34  ;;  %v1561_v28 = vld [vmem:[%s1362_s9 + $0xd0] sm:$0xff]  ;;  %v380_v31 = vadd.f32 %v379_v16, %v378_v20  ;;  %v300_v34 = vsel %vm250_vm1, %v1553_v17, 0.0  ;;  %v385_v45 = vsel %vm250_vm1, %v337_v25, 0.0 }
  0x59   : > { %v302_v42 = vsel %vm250_vm1, %v1561_v28, 0.0  ;;  %v343_v20 = vmul.f32 %v1537_v61, %v1537_v61 }
  0x5a   : > { %v287_v48 = vadd.f32 %v286_v36, %v285_v41  ;;  %v383_v36 = vsel %vm250_vm1, %v336_v13, 0.0  ;;  %v382_v41 = vadd.f32 %v381_v26, %v380_v31  ;;  %v344_v31 = vmul.f32 %v1545_v5, %v1545_v5 }
  0x5c   : > { %v289_v55 = vadd.f32 %v288_v44, %v287_v48  ;;  %v339_v44 = vmul.f32 %v1505_v32, %v1505_v32  ;;  %v384_v50 = vadd.f32 %v383_v36, %v382_v41  ;;  %v397_v41 = vsel %vm250_vm1, %v343_v20, 0.0 }
  0x5e   : > { %v291_v63 = vadd.f32 %v290_v51, %v289_v55  ;;  %v304_v51 = vsel %vm250_vm1, %v1569_v37, 0.0  ;;  %v1585_v55 = vld [vmem:[%s1362_s9 + $0xe8] sm:$0xff] }
  0x5f   : > { %v308_v3 = vsel %vm250_vm1, %v1585_v55, 0.0 }
  0x60   : > { %v293_v6 = vadd.f32 %v292_v58, %v291_v63  ;;  %v386_v58 = vadd.f32 %v385_v45, %v384_v50  ;;  %v389_v63 = vsel %vm250_vm1, %v339_v44, 0.0  ;;  %v346_v45 = vmul.f32 %v1561_v28, %v1561_v28 }
  0x62   : > { %v295_v19 = vadd.f32 %v294_v1, %v293_v6  ;;  %v388_v2 = vadd.f32 %v387_v53, %v386_v58  ;;  %v342_v6 = vmul.f32 %v1529_v54, %v1529_v54 }
  0x64   : > { %v297_v29 = vadd.f32 %v296_v12, %v295_v19  ;;  %v1601_v12 = vld [vmem:[%s1362_s9 + $0xf8] sm:$0xff]  ;;  %v390_v16 = vadd.f32 %v389_v63, %v388_v2  ;;  %v310_v19 = vsel %vm250_vm1, %v1593_v0, 0.0  ;;  %v349_v2 = vmul.f32 %v1585_v55, %v1585_v55 }
  0x66   : > { %v299_v39 = vadd.f32 %v298_v22, %v297_v29  ;;  %v393_v22 = vsel %vm250_vm1, %v341_v60, 0.0  ;;  %v392_v26 = vadd.f32 %v391_v11, %v390_v16  ;;  %v312_v29 = vsel %vm250_vm1, %v1601_v12, 0.0 }
  0x67   : > { %v403_v60 = vsel %vm250_vm1, %v346_v45, 0.0 }
  0x68   : > { %v301_v48 = vadd.f32 %v300_v34, %v299_v39  ;;  %v395_v34 = vsel %vm250_vm1, %v342_v6, 0.0  ;;  %v394_v36 = vadd.f32 %v393_v22, %v392_v26  ;;  %v345_v39 = vmul.f32 %v1553_v17, %v1553_v17 }
  0x69   : > { %v351_v22 = vmul.f32 %v1601_v12, %v1601_v12 }
  0x6a   : > { %v303_v57 = vadd.f32 %v302_v42, %v301_v48  ;;  %v396_v44 = vadd.f32 %v395_v34, %v394_v36  ;;  %v399_v48 = vsel %vm250_vm1, %v344_v31, 0.0  ;;  %v401_v53 = vsel %vm250_vm1, %v345_v39, 0.0 }
  0x6c   : > { %v305_v1 = vadd.f32 %v304_v51, %v303_v57  ;;  %v398_v51 = vadd.f32 %v397_v41, %v396_v44 }
  0x6e   : > { %v307_v13 = vadd.f32 %v306_v59, %v305_v1  ;;  %v400_v58 = vadd.f32 %v399_v48, %v398_v51  ;;  %v348_v59 = vmul.f32 %v1577_v46, %v1577_v46 }
  0x70   : > { %v309_v25 = vadd.f32 %v308_v3, %v307_v13  ;;  %v402_v1 = vadd.f32 %v401_v53, %v400_v58  ;;  %v405_v3 = vsel %vm250_vm1, %v347_v52, 0.0  ;;  %v350_v13 = vmul.f32 %v1593_v0, %v1593_v0 }
  0x71   : > { %v407_v16 = vsel %vm250_vm1, %v348_v59, 0.0 }
  0x72   : > { %v311_v35 = vadd.f32 %v310_v19, %v309_v25  ;;  %v404_v11 = vadd.f32 %v403_v60, %v402_v1  ;;  %v409_v25 = vsel %vm250_vm1, %v349_v2, 0.0  ;;  %v411_v31 = vsel %vm250_vm1, %v350_v13, 0.0  ;;  %v575_v2 = vld [vmem:[%s1952_s1] sm:$0x1] }
  0x73   : > { %v577_v13 = vld [vmem:[%s1953_s2] sm:$0x1] }
  0x74   : > { %v313_v42 = vadd.f32 %v312_v29, %v311_v35  ;;  %v406_v20 = vadd.f32 %v405_v3, %v404_v11  ;;  %v413_v35 = vsel %vm250_vm1, %v351_v22, 0.0 }
  0x76   : > { %v314_v50 = vrot.slane %v313_v42, 4  ;;  %v408_v29 = vadd.f32 %v407_v16, %v406_v20 }
  0x78   : > { %v315_v57 = vadd.f32 %v314_v50, %v313_v42  ;;  %v410_v34 = vadd.f32 %v409_v25, %v408_v29 }
  0x7a   : > { %v316_v63 = vrot.slane %v315_v57, 2  ;;  %v412_v36 = vadd.f32 %v411_v31, %v410_v34 }
  0x7c   : > { %v317_v6 = vadd.f32 %v316_v63, %v315_v57  ;;  %v414_v39 = vadd.f32 %v413_v35, %v412_v36  ;;  %v580_v63 = vlaneseq }
  0x7e   : > { %v318_v19 = vrot.slane %v317_v6, 1  ;;  %v415_v41 = vrot.slane %v414_v39, 4  ;;  %v581_v1 = vshrl.u32 %v580_v63, 7 }
  0x80   : > { %v319_v26 = vadd.f32 %v318_v19, %v317_v6  ;;  %v416_v42 = vadd.f32 %v415_v41, %v414_v39  ;;  %v582_v3 = vsub.s32 0, %v581_v1 }
  0x82   : > { %980 = vmatmul.mubr.msk.f32.vlgmr.msra.gmra.mrb[0].mxu0 %vm250_vm1, %v319_v26  ;;  %v417_v44 = vrot.slane %v416_v42, 2 }
  0x84   : > { %v418_v45 = vadd.f32 %v417_v44, %v416_v42 }
  0x86   : > { %v419_v48 = vrot.slane %v418_v45, 1 }
  0x88   : > { %v420_v50 = vadd.f32 %v419_v48, %v418_v45 }
  0x8a   : > { %991 = vmatmul.mubr.msk.f32.vlgmr.msra.gmra.mrb[0].mxu1 %vm250_vm1, %v420_v50 }
 0x155   : > { %v494_v51 = vpop.f32.mrb[0].mxu0 }
 0x156   : > { %v981_v52 = vpop.f32.mrb[1].mxu0  ;;  %v571_v53 = vmul.f32 %v494_v51, %v494_v51 }
 0x15d   : > { %v567_v57 = vpop.f32.mrb[0].mxu1 }
 0x15e   : > { %v572_v58 = vsub.f32 %v567_v57, %v571_v53  ;;  %v992_v59 = vpop.f32.mrb[1].mxu1 }
 0x160   : > { %v573_v60 = vadd.f32 1e-05, %v572_v58 }
 0x162   : > { %1049 = vrsqrt.f32 %v573_v60 }
 0x16c   : > { %v1050_v6 = vpop.eup %1049 }
 0x16d   : > { %v576_v11 = vmul.f32 %v1050_v6, %v575_v2 }
 0x16f   : > { %v578_v16 = vmul.f32 %v576_v11, %v494_v51  ;;  %v583_v19 = vrot.slane %v576_v11, %v582_v3 }
 0x171   : > { %v579_v20 = vsub.f32 %v577_v13, %v578_v16  ;;  %v584_v22 = vmul.f32 %v583_v19, %v1381_v7  ;;  %v585_v25 = vmul.f32 %v583_v19, %v1384_v8  ;;  %v586_v26 = vmul.f32 %v583_v19, %v1387_v9 }
 0x172   : > { %v587_v29 = vmul.f32 %v583_v19, %v1390_v10  ;;  %v588_v31 = vmul.f32 %v583_v19, %v1397_v14  ;;  %v589_v34 = vmul.f32 %v583_v19, %v1404_v18  ;;  %v590_v35 = vmul.f32 %v583_v19, %v1409_v21 }
 0x173   : > { %v591_v36 = vmul.f32 %v583_v19, %v1414_v24  ;;  %v592_v39 = vmul.f32 %v583_v19, %v1419_v27  ;;  %v593_v41 = vmul.f32 %v583_v19, %v1424_v30  ;;  %v594_v7 = vmul.f32 %v583_v19, %v1429_v33 }
 0x174   : > { %v595_v8 = vmul.f32 %v583_v19, %v1438_v38  ;;  %v596_v9 = vmul.f32 %v583_v19, %v1447_v43  ;;  %v597_v10 = vmul.f32 %v583_v19, %v1456_v49  ;;  %v598_v14 = vmul.f32 %v583_v19, %v1465_v56 }
 0x175   : > { %v599_v18 = vmul.f32 %v583_v19, %v1473_v62  ;;  %v600_v21 = vmul.f32 %v583_v19, %v1481_v4  ;;  %v601_v24 = vmul.f32 %v583_v19, %v1489_v15  ;;  %v602_v27 = vmul.f32 %v583_v19, %v1497_v23 }
 0x176   : > { %v603_v30 = vmul.f32 %v583_v19, %v1505_v32  ;;  %v604_v33 = vmul.f32 %v583_v19, %v1513_v40  ;;  %v605_v38 = vmul.f32 %v583_v19, %v1521_v47  ;;  %v606_v43 = vmul.f32 %v583_v19, %v1529_v54 }
 0x177   : > { %v607_v49 = vmul.f32 %v583_v19, %v1537_v61  ;;  %v608_v56 = vmul.f32 %v583_v19, %v1545_v5  ;;  %v609_v62 = vmul.f32 %v583_v19, %v1553_v17  ;;  %v610_v4 = vmul.f32 %v583_v19, %v1561_v28 }
 0x178   : > { %v611_v15 = vmul.f32 %v583_v19, %v1569_v37  ;;  %v620_v42 = vrot.slane %v579_v20, %v582_v3  ;;  %v612_v23 = vmul.f32 %v583_v19, %v1577_v46  ;;  %v613_v32 = vmul.f32 %v583_v19, %v1585_v55 }
 0x179   : > { %v614_v40 = vmul.f32 %v583_v19, %v1593_v0  ;;  %v615_v47 = vmul.f32 %v583_v19, %v1601_v12 }
 0x17a   : > { %v1676_v54 = vadd.f32 %v620_v42, %v584_v22  ;;  %v1678_v61 = vadd.f32 %v620_v42, %v585_v25  ;;  %v1680_v5 = vadd.f32 %v620_v42, %v586_v26  ;;  %v1682_v17 = vadd.f32 %v620_v42, %v587_v29 }
 0x17b   : > { %v1684_v28 = vadd.f32 %v620_v42, %v588_v31  ;;  %v1686_v37 = vadd.f32 %v620_v42, %v589_v34  ;;  %v1688_v44 = vadd.f32 %v620_v42, %v590_v35  ;;  %v1690_v46 = vadd.f32 %v620_v42, %v591_v36 }
 0x17c   : > { %v1692_v55 = vadd.f32 %v620_v42, %v592_v39  ;;  %v1694_v0 = vadd.f32 %v620_v42, %v593_v41  ;;  %v1696_v12 = vadd.f32 %v620_v42, %v594_v7  ;;  %v1698_v45 = vadd.f32 %v620_v42, %v595_v8 }
 0x17d   : > { %v1700_v48 = vadd.f32 %v620_v42, %v596_v9  ;;  %v1702_v50 = vadd.f32 %v620_v42, %v597_v10  ;;  %v1704_v51 = vadd.f32 %v620_v42, %v598_v14  ;;  %v1706_v52 = vadd.f32 %v620_v42, %v599_v18 }
 0x17e   : > { %v1708_v53 = vadd.f32 %v620_v42, %v600_v21  ;;  %v1710_v57 = vadd.f32 %v620_v42, %v601_v24  ;;  %v1712_v58 = vadd.f32 %v620_v42, %v602_v27  ;;  %v1714_v59 = vadd.f32 %v620_v42, %v603_v30 }
 0x17f   : > { %v1716_v60 = vadd.f32 %v620_v42, %v604_v33  ;;  %v1718_v63 = vadd.f32 %v620_v42, %v605_v38  ;;  %v1720_v1 = vadd.f32 %v620_v42, %v606_v43  ;;  %v1722_v2 = vadd.f32 %v620_v42, %v607_v49 }
 0x180   : > { %v1724_v3 = vadd.f32 %v620_v42, %v608_v56  ;;  %v1726_v6 = vadd.f32 %v620_v42, %v609_v62  ;;  %v1728_v11 = vadd.f32 %v620_v42, %v610_v4  ;;  %v1730_v13 = vadd.f32 %v620_v42, %v611_v15 }
 0x181   : > { %v1732_v16 = vadd.f32 %v620_v42, %v612_v23  ;;  %v1734_v19 = vadd.f32 %v620_v42, %v613_v32  ;;  %v1736_v20 = vadd.f32 %v620_v42, %v614_v40  ;;  %v1738_v22 = vadd.f32 %v620_v42, %v615_v47 }
 0x182   : > { %v654_v25 = vsub.f32 0.0, %v1676_v54  ;;  %v655_v26 = vsub.f32 0.0, %v1678_v61  ;;  %v656_v29 = vsub.f32 0.0, %v1680_v5  ;;  %v657_v31 = vsub.f32 0.0, %v1682_v17 }
 0x183   : > { %1962 = vst [vmem:[#allocation5_spill] sm:$0xff] %v1732_v16  ;;  %1963 = vst [vmem:[#allocation6_spill] sm:$0xff] %v1736_v20  ;;  %v658_v34 = vsub.f32 0.0, %v1684_v28  ;;  %v659_v35 = vsub.f32 0.0, %v1686_v37  ;;  %v660_v36 = vsub.f32 0.0, %v1688_v44  ;;  %v661_v8 = vsub.f32 0.0, %v1690_v46 }
 0x184   : > { %1964 = vst [vmem:[#allocation7_spill] sm:$0xff] %v1738_v22  ;;  %v686_v39 = vmul.f32 1.442695, %v654_v25  ;;  %v688_v41 = vmul.f32 1.442695, %v655_v26  ;;  %v662_v10 = vsub.f32 0.0, %v1692_v55 }
 0x185   : > { %v690_v7 = vmul.f32 1.442695, %v656_v29  ;;  %v692_v9 = vmul.f32 1.442695, %v657_v31  ;;  %v694_v14 = vmul.f32 1.442695, %v658_v34 }
 0x186   : > { %1051 = vpow2.f32 %v686_v39  ;;  %v663_v18 = vsub.f32 0.0, %v1694_v0  ;;  %v696_v21 = vmul.f32 1.442695, %v659_v35  ;;  %v664_v24 = vsub.f32 0.0, %v1696_v12 }
 0x187   : > { %1053 = vpow2.f32 %v688_v41  ;;  %v698_v27 = vmul.f32 1.442695, %v660_v36  ;;  %v665_v30 = vsub.f32 0.0, %v1698_v45  ;;  %v700_v33 = vmul.f32 1.442695, %v661_v8 }
 0x188   : > { %1055 = vpow2.f32 %v690_v7  ;;  %v666_v38 = vsub.f32 0.0, %v1700_v48  ;;  %v702_v43 = vmul.f32 1.442695, %v662_v10  ;;  %v667_v49 = vsub.f32 0.0, %v1702_v50 }
 0x189   : > { %1057 = vpow2.f32 %v692_v9  ;;  %v704_v56 = vmul.f32 1.442695, %v663_v18  ;;  %v668_v62 = vsub.f32 0.0, %v1704_v51  ;;  %v706_v4 = vmul.f32 1.442695, %v664_v24 }
 0x18a   : > { %1059 = vpow2.f32 %v694_v14  ;;  %v669_v15 = vsub.f32 0.0, %v1706_v52  ;;  %v708_v42 = vmul.f32 1.442695, %v665_v30  ;;  %v670_v23 = vsub.f32 0.0, %v1708_v53 }
 0x18b   : > { %1061 = vpow2.f32 %v696_v21  ;;  %v710_v32 = vmul.f32 1.442695, %v666_v38  ;;  %v671_v40 = vsub.f32 0.0, %v1710_v57  ;;  %v712_v47 = vmul.f32 1.442695, %v667_v49 }
 0x18c   : > { %1063 = vpow2.f32 %v698_v27  ;;  %v672_v26 = vsub.f32 0.0, %v1712_v58  ;;  %v714_v29 = vmul.f32 1.442695, %v668_v62  ;;  %v673_v34 = vsub.f32 0.0, %v1714_v59 }
 0x18d   : > { %1065 = vpow2.f32 %v700_v33  ;;  %v716_v35 = vmul.f32 1.442695, %v669_v15  ;;  %v674_v39 = vsub.f32 0.0, %v1716_v60  ;;  %v718_v41 = vmul.f32 1.442695, %v670_v23 }
 0x18e   : > { %1067 = vpow2.f32 %v702_v43  ;;  %v675_v8 = vsub.f32 0.0, %v1718_v63  ;;  %v720_v9 = vmul.f32 1.442695, %v671_v40  ;;  %v676_v14 = vsub.f32 0.0, %v1720_v1 }
 0x18f   : > { %1069 = vpow2.f32 %v704_v56  ;;  %v722_v18 = vmul.f32 1.442695, %v672_v26  ;;  %v677_v24 = vsub.f32 0.0, %v1722_v2  ;;  %v724_v27 = vmul.f32 1.442695, %v673_v34 }
 0x190   : > { %v1758_v25 = vpop.eup %1051  ;;  %1071 = vpow2.f32 %v706_v4  ;;  %v678_v33 = vsub.f32 0.0, %v1724_v3  ;;  %v726_v38 = vmul.f32 1.442695, %v674_v39  ;;  %v679_v49 = vsub.f32 0.0, %v1726_v6 }
 0x191   : > { %v1761_v31 = vpop.eup %1053  ;;  %1073 = vpow2.f32 %v708_v42  ;;  %v728_v56 = vmul.f32 1.442695, %v675_v8  ;;  %v680_v4 = vsub.f32 0.0, %v1728_v11  ;;  %v730_v15 = vmul.f32 1.442695, %v676_v14 }
 0x192   : > { %v1764_v36 = vpop.eup %1055  ;;  %1075 = vpow2.f32 %v710_v32  ;;  %v681_v23 = vsub.f32 0.0, %v1730_v13  ;;  %v732_v32 = vmul.f32 1.442695, %v677_v24  ;;  %v734_v26 = vmul.f32 1.442695, %v678_v33 }
 0x193   : > { %v1767_v7 = vpop.eup %1057  ;;  %1077 = vpow2.f32 %v712_v47  ;;  %v682_v47 = vsub.f32 0.0, %v1732_v16  ;;  %v683_v34 = vsub.f32 0.0, %v1734_v19  ;;  %v738_v8 = vmul.f32 1.442695, %v680_v4 }
 0x194   : > { %v1770_v10 = vpop.eup %1059  ;;  %1079 = vpow2.f32 %v714_v29  ;;  %v685_v14 = vsub.f32 0.0, %v1738_v22  ;;  %v750_v4 = vadd.f32 1.0, %v1758_v25 }
 0x195   : > { %v1773_v21 = vpop.eup %1061  ;;  %1081 = vpow2.f32 %v716_v35  ;;  %v736_v35 = vmul.f32 1.442695, %v679_v49  ;;  %v744_v33 = vmul.f32 1.442695, %v683_v34  ;;  %v753_v34 = vadd.f32 1.0, %v1767_v7 }
 0x196   : > { %v1776_v30 = vpop.eup %1063  ;;  %1083 = vpow2.f32 %v718_v41  ;;  %v684_v41 = vsub.f32 0.0, %v1736_v20  ;;  %v748_v20 = vmul.f32 1.442695, %v685_v14  ;;  %v754_v25 = vadd.f32 1.0, %v1770_v10 }
 0x197   : > { %v1779_v43 = vpop.eup %1065  ;;  %1085 = vpow2.f32 %v720_v9 }
 0x198   : > { %v1068_v62 = vpop.eup %1067  ;;  %1087 = vpow2.f32 %v722_v18  ;;  %v740_v18 = vmul.f32 1.442695, %v681_v23  ;;  %v746_v49 = vmul.f32 1.442695, %v684_v41  ;;  %v751_v23 = vadd.f32 1.0, %v1761_v31 }
 0x199   : > { %v1070_v42 = vpop.eup %1069  ;;  %1089 = vpow2.f32 %v724_v27  ;;  %v742_v27 = vmul.f32 1.442695, %v682_v47  ;;  %v752_v47 = vadd.f32 1.0, %v1764_v36  ;;  %v755_v31 = vadd.f32 1.0, %v1773_v21 }
 0x19a   : > { %v1072_v40 = vpop.eup %1071  ;;  %1091 = vpow2.f32 %v726_v38  ;;  %v756_v36 = vadd.f32 1.0, %v1776_v30  ;;  %v758_v10 = vadd.f32 1.0, %v1068_v62 }
 0x19b   : > { %v1074_v29 = vpop.eup %1073  ;;  %1093 = vpow2.f32 %v728_v56 }
 0x19c   : > { %v1076_v39 = vpop.eup %1075  ;;  %1095 = vpow2.f32 %v730_v15 }
 0x19d   : > { %v1078_v9 = vpop.eup %1077  ;;  %1097 = vpow2.f32 %v732_v32 }
 0x19e   : > { %v1080_v24 = vpop.eup %1079  ;;  %1099 = vpow2.f32 %v734_v26  ;;  %v763_v62 = vadd.f32 1.0, %v1078_v9 }
 0x19f   : > { %v1082_v38 = vpop.eup %1081  ;;  %1101 = vpow2.f32 %v736_v35 }
 0x1a0   : > { %v1084_v16 = vpop.eup %1083  ;;  %1103 = vpow2.f32 %v738_v8 }
 0x1a1   : > { %v1086_v56 = vpop.eup %1085  ;;  %1105 = vpow2.f32 %v740_v18 }
 0x1a2   : > { %v1088_v15 = vpop.eup %1087  ;;  %1107 = vpow2.f32 %v742_v27  ;;  %v759_v27 = vadd.f32 1.0, %v1070_v42  ;;  %v764_v42 = vadd.f32 1.0, %v1080_v24 }
 0x1a3   : > { %v1789_v22 = vpop.eup %1089  ;;  %1109 = vpow2.f32 %v744_v33  ;;  %v760_v33 = vadd.f32 1.0, %v1072_v40 }
 0x1a4   : > { %v1792_v32 = vpop.eup %1091  ;;  %1111 = vpow2.f32 %v746_v49  ;;  %v761_v49 = vadd.f32 1.0, %v1074_v29  ;;  %v765_v29 = vadd.f32 1.0, %v1082_v38  ;;  %v768_v38 = vadd.f32 1.0, %v1088_v15 }
 0x1a5   : > { %v1795_v26 = vpop.eup %1093  ;;  %1113 = vpow2.f32 %v748_v20  ;;  %v757_v20 = vadd.f32 1.0, %v1779_v43  ;;  %v762_v43 = vadd.f32 1.0, %v1076_v39 }
 0x1a6   : > { %v1799_v35 = vpop.eup %1095  ;;  %1115 = vrcp.f32 %v750_v4 }
 0x1a7   : > { %v1802_v41 = vpop.eup %1097  ;;  %1117 = vrcp.f32 %v751_v23 }
 0x1a8   : > { %v1805_v8 = vpop.eup %1099  ;;  %1119 = vrcp.f32 %v752_v47 }
 0x1a9   : > { %v1808_v14 = vpop.eup %1101  ;;  %1121 = vrcp.f32 %v753_v34 }
 0x1aa   : > { %v1812_v7 = vpop.eup %1103  ;;  %1123 = vrcp.f32 %v754_v25  ;;  %v766_v25 = vadd.f32 1.0, %v1084_v16  ;;  %v769_v16 = vadd.f32 1.0, %v1789_v22 }
 0x1ab   : > { %v1814_v18 = vpop.eup %1105  ;;  %1125 = vrcp.f32 %v755_v31 }
 0x1ac   : > { %v1816_v21 = vpop.eup %1107  ;;  %1127 = vrcp.f32 %v756_v36  ;;  %v767_v36 = vadd.f32 1.0, %v1086_v56  ;;  %v770_v56 = vadd.f32 1.0, %v1792_v32 }
 0x1ad   : > { %v1818_v30 = vpop.eup %1109  ;;  %1129 = vrcp.f32 %v757_v20 }
 0x1ae   : > { %v1820_v4 = vpop.eup %1111  ;;  %1131 = vrcp.f32 %v758_v10 }
 0x1af   : > { %v1822_v23 = vpop.eup %1113  ;;  %1133 = vrcp.f32 %v759_v27  ;;  %v771_v27 = vadd.f32 1.0, %v1795_v26 }
 0x1b0   : > { %v1116_v47 = vpop.eup %1115  ;;  %1135 = vrcp.f32 %v760_v33  ;;  %v772_v33 = vadd.f32 1.0, %v1799_v35 }
 0x1b1   : > { %v1118_v40 = vpop.eup %1117  ;;  %1137 = vrcp.f32 %v761_v49  ;;  %v814_v39 = vmul.f32 %v1116_v47, %v1676_v54  ;;  %v773_v49 = vadd.f32 1.0, %v1802_v41  ;;  %v776_v47 = vadd.f32 1.0, %v1812_v7 }
 0x1b2   : > { %v1120_v34 = vpop.eup %1119  ;;  %1139 = vrcp.f32 %v762_v43  ;;  %v815_v9 = vmul.f32 %v1118_v40, %v1678_v61  ;;  %v774_v43 = vadd.f32 1.0, %v1805_v8  ;;  %v778_v40 = vadd.f32 1.0, %v1816_v21 }
 0x1b3   : > { %v1122_v31 = vpop.eup %1121  ;;  %1141 = vrcp.f32 %v763_v62  ;;  %v816_v20 = vmul.f32 %v1120_v34, %v1680_v5  ;;  %846 = vst.msk [vmem:[%s1827_s26] sm:$0xff] %vm250_vm1, %v814_v39  ;;  %v775_v62 = vadd.f32 1.0, %v1808_v14  ;;  %v780_v39 = vadd.f32 1.0, %v1820_v4 }
 0x1b4   : > { %v1124_v24 = vpop.eup %1123  ;;  %1143 = vrcp.f32 %v764_v42  ;;  %v817_v10 = vmul.f32 %v1122_v31, %v1682_v17  ;;  %847 = vst.msk [vmem:[%s1827_s26 + $0x8] sm:$0xff] %vm250_vm1, %v815_v9  ;;  %v777_v42 = vadd.f32 1.0, %v1814_v18  ;;  %v781_v34 = vadd.f32 1.0, %v1822_v23 }
 0x1b5   : > { %v1126_v54 = vpop.eup %1125  ;;  %1145 = vrcp.f32 %v765_v29  ;;  %v818_v61 = vmul.f32 %v1124_v24, %v1684_v28  ;;  %848 = vst.msk [vmem:[%s1827_s26 + $0x10] sm:$0xff] %vm250_vm1, %v816_v20  ;;  %v779_v29 = vadd.f32 1.0, %v1818_v30 }
 0x1b6   : > { %v1128_v5 = vpop.eup %1127  ;;  %1147 = vrcp.f32 %v766_v25  ;;  %v819_v15 = vmul.f32 %v1126_v54, %v1686_v37  ;;  %849 = vst.msk [vmem:[%s1827_s26 + $0x18] sm:$0xff] %vm250_vm1, %v817_v10 }
 0x1b7   : > { %v1130_v17 = vpop.eup %1129  ;;  %1149 = vrcp.f32 %v767_v36  ;;  %v820_v22 = vmul.f32 %v1128_v5, %v1688_v44  ;;  %850 = vst.msk [vmem:[%s1827_s26 + $0x20] sm:$0xff] %vm250_vm1, %v818_v61  ;;  %v1965_v61 = vld [vmem:[#allocation5_spill] sm:$0xff] }
 0x1b8   : > { %v1132_v28 = vpop.eup %1131  ;;  %1151 = vrcp.f32 %v768_v38  ;;  %v821_v32 = vmul.f32 %v1130_v17, %v1690_v46  ;;  %851 = vst.msk [vmem:[%s1827_s26 + $0x28] sm:$0xff] %vm250_vm1, %v819_v15  ;;  %v1966_v15 = vld [vmem:[#allocation6_spill] sm:$0xff] }
 0x1b9   : > { %v1134_v37 = vpop.eup %1133  ;;  %1153 = vrcp.f32 %v769_v16  ;;  %v822_v26 = vmul.f32 %v1132_v28, %v1692_v55  ;;  %852 = vst.msk [vmem:[%s1827_s26 + $0x30] sm:$0xff] %vm250_vm1, %v820_v22 }
 0x1ba   : > { %v1136_v44 = vpop.eup %1135  ;;  %1155 = vrcp.f32 %v770_v56  ;;  %v823_v35 = vmul.f32 %v1134_v37, %v1694_v0  ;;  %853 = vst.msk [vmem:[%s1827_s26 + $0x38] sm:$0xff] %vm250_vm1, %v821_v32 }
 0x1bb   : > { %v1138_v46 = vpop.eup %1137  ;;  %1157 = vrcp.f32 %v771_v27  ;;  %v824_v41 = vmul.f32 %v1136_v44, %v1696_v12  ;;  %854 = vst.msk [vmem:[%s1827_s26 + $0x40] sm:$0xff] %vm250_vm1, %v822_v26  ;;  %v1967_v27 = vld [vmem:[#allocation7_spill] sm:$0xff] }
 0x1bc   : > { %v1140_v55 = vpop.eup %1139  ;;  %1159 = vrcp.f32 %v772_v33  ;;  %v825_v8 = vmul.f32 %v1138_v46, %v1698_v45  ;;  %855 = vst.msk [vmem:[%s1827_s26 + $0x48] sm:$0xff] %vm250_vm1, %v823_v35 }
 0x1bd   : > { %v1142_v0 = vpop.eup %1141  ;;  %1161 = vrcp.f32 %v773_v49  ;;  %v826_v14 = vmul.f32 %v1140_v55, %v1700_v48  ;;  %856 = vst.msk [vmem:[%s1827_s26 + $0x50] sm:$0xff] %vm250_vm1, %v824_v41 }
 0x1be   : > { %v1144_v12 = vpop.eup %1143  ;;  %1163 = vrcp.f32 %v774_v43  ;;  %v827_v7 = vmul.f32 %v1142_v0, %v1702_v50  ;;  %857 = vst.msk [vmem:[%s1827_s26 + $0x58] sm:$0xff] %vm250_vm1, %v825_v8 }
 0x1bf   : > { %v1146_v45 = vpop.eup %1145  ;;  %1165 = vrcp.f32 %v775_v62  ;;  %v828_v18 = vmul.f32 %v1144_v12, %v1704_v51  ;;  %858 = vst.msk [vmem:[%s1827_s26 + $0x60] sm:$0xff] %vm250_vm1, %v826_v14 }
 0x1c0   : > { %v1148_v48 = vpop.eup %1147  ;;  %1167 = vrcp.f32 %v776_v47  ;;  %v829_v21 = vmul.f32 %v1146_v45, %v1706_v52  ;;  %859 = vst.msk [vmem:[%s1827_s26 + $0x68] sm:$0xff] %vm250_vm1, %v827_v7 }
 0x1c1   : > { %v1150_v50 = vpop.eup %1149  ;;  %1169 = vrcp.f32 %v777_v42  ;;  %v830_v30 = vmul.f32 %v1148_v48, %v1708_v53  ;;  %860 = vst.msk [vmem:[%s1827_s26 + $0x70] sm:$0xff] %vm250_vm1, %v828_v18 }
 0x1c2   : > { %v1152_v51 = vpop.eup %1151  ;;  %1171 = vrcp.f32 %v778_v40  ;;  %v831_v4 = vmul.f32 %v1150_v50, %v1710_v57  ;;  %861 = vst.msk [vmem:[%s1827_s26 + $0x78] sm:$0xff] %vm250_vm1, %v829_v21 }
 0x1c3   : > { %v1154_v52 = vpop.eup %1153  ;;  %1173 = vrcp.f32 %v779_v29  ;;  %v832_v25 = vmul.f32 %v1152_v51, %v1712_v58  ;;  %862 = vst.msk [vmem:[%s1827_s26 + $0x80] sm:$0xff] %vm250_vm1, %v830_v30 }
 0x1c4   : > { %v1156_v23 = vpop.eup %1155  ;;  %1175 = vrcp.f32 %v780_v39  ;;  %v833_v53 = vmul.f32 %v1154_v52, %v1714_v59  ;;  %863 = vst.msk [vmem:[%s1827_s26 + $0x88] sm:$0xff] %vm250_vm1, %v831_v4 }
 0x1c5   : > { %v1158_v9 = vpop.eup %1157  ;;  %1177 = vrcp.f32 %v781_v34  ;;  %v834_v57 = vmul.f32 %v1156_v23, %v1716_v60  ;;  %864 = vst.msk [vmem:[%s1827_s26 + $0x90] sm:$0xff] %vm250_vm1, %v832_v25 }
 0x1c6   : > { %v1160_v31 = vpop.eup %1159  ;;  %v835_v58 = vmul.f32 %v1158_v9, %v1718_v63  ;;  %865 = vst.msk [vmem:[%s1827_s26 + $0x98] sm:$0xff] %vm250_vm1, %v833_v53 }
 0x1c7   : > { %v1162_v36 = vpop.eup %1161  ;;  %v836_v20 = vmul.f32 %v1160_v31, %v1720_v1  ;;  %866 = vst.msk [vmem:[%s1827_s26 + $0xa0] sm:$0xff] %vm250_vm1, %v834_v57 }
 0x1c8   : > { %v1164_v59 = vpop.eup %1163  ;;  %v837_v24 = vmul.f32 %v1162_v36, %v1722_v2  ;;  %867 = vst.msk [vmem:[%s1827_s26 + $0xa8] sm:$0xff] %vm250_vm1, %v835_v58 }
 0x1c9   : > { %v1166_v60 = vpop.eup %1165  ;;  %v838_v38 = vmul.f32 %v1164_v59, %v1724_v3  ;;  %868 = vst.msk [vmem:[%s1827_s26 + $0xb0] sm:$0xff] %vm250_vm1, %v836_v20 }
 0x1ca   : > { %v1168_v63 = vpop.eup %1167  ;;  %v839_v10 = vmul.f32 %v1166_v60, %v1726_v6  ;;  %869 = vst.msk [vmem:[%s1827_s26 + $0xb8] sm:$0xff] %vm250_vm1, %v837_v24 }
 0x1cb   : > { %v1170_v1 = vpop.eup %1169  ;;  %v840_v54 = vmul.f32 %v1168_v63, %v1728_v11  ;;  %870 = vst.msk [vmem:[%s1827_s26 + $0xc0] sm:$0xff] %vm250_vm1, %v838_v38 }
 0x1cc   : > { %v1172_v2 = vpop.eup %1171  ;;  %v841_v3 = vmul.f32 %v1170_v1, %v1730_v13  ;;  %871 = vst.msk [vmem:[%s1827_s26 + $0xc8] sm:$0xff] %vm250_vm1, %v839_v10 }
 0x1cd   : > { %v1174_v16 = vpop.eup %1173  ;;  %v842_v5 = vmul.f32 %v1172_v2, %v1965_v61  ;;  %872 = vst.msk [vmem:[%s1827_s26 + $0xd0] sm:$0xff] %vm250_vm1, %v840_v54 }
 0x1ce   : > { %v1176_v6 = vpop.eup %1175  ;;  %v843_v56 = vmul.f32 %v1174_v16, %v1734_v19  ;;  %873 = vst.msk [vmem:[%s1827_s26 + $0xd8] sm:$0xff] %vm250_vm1, %v841_v3 }
 0x1cf   : > { %v1178_v11 = vpop.eup %1177  ;;  %v844_v17 = vmul.f32 %v1176_v6, %v1966_v15  ;;  %874 = vst.msk [vmem:[%s1827_s26 + $0xe0] sm:$0xff] %vm250_vm1, %v842_v5 }
 0x1d0   : > { %v845_v22 = vmul.f32 %v1178_v11, %v1967_v27  ;;  %875 = vst.msk [vmem:[%s1827_s26 + $0xe8] sm:$0xff] %vm250_vm1, %v843_v56 }
 0x1d1   : > { %876 = vst.msk [vmem:[%s1827_s26 + $0xf0] sm:$0xff] %vm250_vm1, %v844_v17 }
 0x1d2   : > { %877 = vst.msk [vmem:[%s1827_s26 + $0xf8] sm:$0xff] %vm250_vm1, %v845_v22 }
 0x1d3 PF: > { %p14_p8 = scmp.ge.s32.totalorder %s1298_s20, 4   ;;  %s1968_s15 = smov %s1235_s16 }
 0x1d4   : > { %s1969_s16 = smov %s1239_s17  ;;  %s1970_s17 = smov %s1308_s23 }
 0x1d5   : > { %s1971_s18 = smov %s1298_s20  ;;  %16 = sbr.rel (!%p14_p8) target bundleno = 3 (0x3), region = 76 }
 0x1dc   :  { %899 = vsyncpa [#allocation3], 1 }
 0x1dd   :  { %901 = vsyncpa [#allocation3 + $0x1], 1 }

// kernel: _lambda_.7
= control target key start
LH: loop header
LB: loop body
LE: loop exit
PB: predicated region body
PF: predicated region fallthrough
CT: control target
= control target key end

     0   :  { %s1417_s12 = smov 0   ;;  %s1419_s13 = smov 0   ;;  %s1678_s0 = inlined_call_operand.vmem [shape: bf16[512,384], index: 0, kind: input, shape index: {}]   ;;  %s1679_s1 = inlined_call_operand.vmem [shape: bf16[384,128], index: 1, kind: input, shape index: {}]   ;;  %s1680_s2 = inlined_call_operand.vmem [shape: f32[1,128], index: 2, kind: input, shape index: {}]   ;;  %s1681_s3 = inlined_call_operand.vmem [shape: f32[512,128], index: 3, kind: output, shape index: {}]  }
   0x1   :  { %s1421_s14 = smov 0   ;;  %s1423_s15 = smov 0  }
   0x2   :  { %s1425_s16 = smov 0   ;;  %s1427_s17 = smov 0  }
   0x3   :  { %s1429_s18 = smov 0  }
   0x4 LB: > { %s25_s19 = sadd.s32 1, %s1386_s16  ;;  %s32_s20 = sadd.s32 1, %s1390_s17  ;;  %s1394_s18 = sphi %s1429_s18, %s13_s18   ;;  %s1390_s17 = sphi %s1427_s17, %s1687_s17   ;;  %s1386_s16 = sphi %s1425_s16, %s1686_s16   ;;  %s1382_s15 = sphi %s1423_s15, %s1685_s15   ;;  %s1378_s14 = sphi %s1421_s14, %s1684_s14   ;;  %s1374_s13 = sphi %s1419_s13, %s1683_s13   ;;  %s1370_s12 = sphi %s1417_s12, %s1682_s12  }
   0x5   : > { %p26_p0 = scmp.ge.s32.totalorder %s25_s19, 3  ;;  %p48_p1 = scmp.ne.s32.totalorder %s1374_s13, %s1370_s12 }
   0x6   : > { %p49_p2 = scmp.eq.s32.totalorder %s1394_s18, 0  ;;  %s41_s24 = sadd.s32 1, %s1374_s13 }
   0x7   : > { %s1689_s19 = smov (%p26_p0, %s25_s19), 0  ;;  %s1691_s20 = smov (!%p26_p0, %s32_s20), %s1390_s17 }
   0x8   : > { %p50_p3 = por %p49_p2, %p48_p1  ;;  %p34_p4 = scmp.ge.s32.totalorder %s1691_s20, 2 }
   0x9   : > { %s37_s21 = ssub.s32 %s1386_s16, %s1689_s19  ;;  %p1130_p6 = scmp.ge.s32.totalorder %s1394_s18, 6 }
   0xa   : > { %s1693_s20 = smov (%p34_p4, %s1691_s20), 0 }
   0xb   : > { %s36_s22 = ssub.s32 %s1390_s17, %s1693_s20  ;;  %162 = sbr.rel (%p1130_p6) target bundleno = 46 (0x2e), region = 20 }
   0xc   : > { %s38_s23 = sor.u32 %s37_s21, %s36_s22 }
   0xd   : > { %p39_p5 = scmp.eq.s32.totalorder %s38_s23, 0 }
   0xf   : > { %s1468_s25 = scalar_select %p39_p5, %s1374_s13, %s41_s24  }
  0x12   : > { %165 = sbr.rel (!%p50_p3) target bundleno = 46 (0x2e), region = 24  ;;  %s167_s26 = sand.u32 (%p50_p3), 1, %s1374_s13  }
  0x13   : > { %s1258_s27 = smul.u32 (%p50_p3), 96, %s1390_s17  ;;  %s1131_s28 = sshll.u32 (%p50_p3), %s167_s26, 7 }
  0x14   : > { %s1482_s7 = scalar_lea.vmem (%p50_p3), [#allocation3], %s1131_s28 }
  0x15   : > { %s172_s29 = sadd.s32 (%p50_p3), %s1386_s16, %s1258_s27 }
  0x16   : > { %s1134_s30 = sshll.u32 (%p50_p3), %s172_s29, 2 }
  0x17   : > { %s1477_s6 = scalar_lea.vmem (%p50_p3), %s1678_s0, %s1134_s30 }
  0x18   : > { %v190_v0 = vld [vmem:[%s1477_s6] sm:$0xf] (%p50_p3)  ;;  %v192_v1 = vld [vmem:[%s1477_s6 + $0xc] sm:$0xf] (%p50_p3)  ;;  %v194_v2 = vld [vmem:[%s1477_s6 + $0x18] sm:$0xf] (%p50_p3) }
  0x19   : > { %191 = vst [vmem:[%s1482_s7] sm:$0xf] %v190_v0  ;;  %193 = vst [vmem:[%s1482_s7 + $0x4] sm:$0xf] %v192_v1  ;;  %v196_v3 = vld [vmem:[%s1477_s6 + $0x24] sm:$0xf] }
  0x1a   : > { %195 = vst [vmem:[%s1482_s7 + $0x8] sm:$0xf] %v194_v2  ;;  %v198_v4 = vld [vmem:[%s1477_s6 + $0x30] sm:$0xf]  ;;  %v200_v5 = vld [vmem:[%s1477_s6 + $0x3c] sm:$0xf] }
  0x1b   : > { %197 = vst [vmem:[%s1482_s7 + $0xc] sm:$0xf] %v196_v3  ;;  %199 = vst [vmem:[%s1482_s7 + $0x10] sm:$0xf] %v198_v4  ;;  %v202_v6 = vld [vmem:[%s1477_s6 + $0x48] sm:$0xf] }
  0x1c   : > { %201 = vst [vmem:[%s1482_s7 + $0x14] sm:$0xf] %v200_v5  ;;  %v204_v7 = vld [vmem:[%s1477_s6 + $0x54] sm:$0xf]  ;;  %v206_v8 = vld [vmem:[%s1477_s6 + $0x60] sm:$0xf] }
  0x1d   : > { %203 = vst [vmem:[%s1482_s7 + $0x18] sm:$0xf] %v202_v6  ;;  %205 = vst [vmem:[%s1482_s7 + $0x1c] sm:$0xf] %v204_v7  ;;  %v208_v9 = vld [vmem:[%s1477_s6 + $0x6c] sm:$0xf] }
  0x1e   : > { %207 = vst [vmem:[%s1482_s7 + $0x20] sm:$0xf] %v206_v8  ;;  %v210_v10 = vld [vmem:[%s1477_s6 + $0x78] sm:$0xf]  ;;  %v212_v11 = vld [vmem:[%s1477_s6 + $0x84] sm:$0xf] }
  0x1f   : > { %209 = vst [vmem:[%s1482_s7 + $0x24] sm:$0xf] %v208_v9  ;;  %211 = vst [vmem:[%s1482_s7 + $0x28] sm:$0xf] %v210_v10  ;;  %v214_v12 = vld [vmem:[%s1477_s6 + $0x90] sm:$0xf] }
  0x20   : > { %213 = vst [vmem:[%s1482_s7 + $0x2c] sm:$0xf] %v212_v11  ;;  %v216_v13 = vld [vmem:[%s1477_s6 + $0x9c] sm:$0xf]  ;;  %v218_v14 = vld [vmem:[%s1477_s6 + $0xa8] sm:$0xf] }
  0x21   : > { %215 = vst [vmem:[%s1482_s7 + $0x30] sm:$0xf] %v214_v12  ;;  %217 = vst [vmem:[%s1482_s7 + $0x34] sm:$0xf] %v216_v13  ;;  %v220_v15 = vld [vmem:[%s1477_s6 + $0xb4] sm:$0xf] }
  0x22   : > { %219 = vst [vmem:[%s1482_s7 + $0x38] sm:$0xf] %v218_v14  ;;  %v222_v16 = vld [vmem:[%s1477_s6 + $0xc0] sm:$0xf]  ;;  %v224_v17 = vld [vmem:[%s1477_s6 + $0xcc] sm:$0xf] }
  0x23   : > { %221 = vst [vmem:[%s1482_s7 + $0x3c] sm:$0xf] %v220_v15  ;;  %223 = vst [vmem:[%s1482_s7 + $0x40] sm:$0xf] %v222_v16  ;;  %v226_v18 = vld [vmem:[%s1477_s6 + $0xd8] sm:$0xf] }
  0x24   : > { %225 = vst [vmem:[%s1482_s7 + $0x44] sm:$0xf] %v224_v17  ;;  %v228_v19 = vld [vmem:[%s1477_s6 + $0xe4] sm:$0xf]  ;;  %v230_v20 = vld [vmem:[%s1477_s6 + $0xf0] sm:$0xf] }
  0x25   : > { %227 = vst [vmem:[%s1482_s7 + $0x48] sm:$0xf] %v226_v18  ;;  %229 = vst [vmem:[%s1482_s7 + $0x4c] sm:$0xf] %v228_v19  ;;  %v232_v21 = vld [vmem:[%s1477_s6 + $0xfc] sm:$0xf] }
  0x26   : > { %231 = vst [vmem:[%s1482_s7 + $0x50] sm:$0xf] %v230_v20  ;;  %v234_v22 = vld [vmem:[%s1477_s6 + $0x108] sm:$0xf]  ;;  %v236_v23 = vld [vmem:[%s1477_s6 + $0x114] sm:$0xf] }
  0x27   : > { %233 = vst [vmem:[%s1482_s7 + $0x54] sm:$0xf] %v232_v21  ;;  %235 = vst [vmem:[%s1482_s7 + $0x58] sm:$0xf] %v234_v22  ;;  %v238_v24 = vld [vmem:[%s1477_s6 + $0x120] sm:$0xf] }
  0x28   : > { %237 = vst [vmem:[%s1482_s7 + $0x5c] sm:$0xf] %v236_v23  ;;  %v240_v25 = vld [vmem:[%s1477_s6 + $0x12c] sm:$0xf]  ;;  %v242_v26 = vld [vmem:[%s1477_s6 + $0x138] sm:$0xf] }
  0x29   : > { %239 = vst [vmem:[%s1482_s7 + $0x60] sm:$0xf] %v238_v24  ;;  %241 = vst [vmem:[%s1482_s7 + $0x64] sm:$0xf] %v240_v25  ;;  %v244_v27 = vld [vmem:[%s1477_s6 + $0x144] sm:$0xf] }
  0x2a   : > { %243 = vst [vmem:[%s1482_s7 + $0x68] sm:$0xf] %v242_v26  ;;  %v246_v28 = vld [vmem:[%s1477_s6 + $0x150] sm:$0xf]  ;;  %v248_v29 = vld [vmem:[%s1477_s6 + $0x15c] sm:$0xf] }
  0x2b   : > { %245 = vst [vmem:[%s1482_s7 + $0x6c] sm:$0xf] %v244_v27  ;;  %247 = vst [vmem:[%s1482_s7 + $0x70] sm:$0xf] %v246_v28  ;;  %v250_v30 = vld [vmem:[%s1477_s6 + $0x168] sm:$0xf] }
  0x2c   : > { %249 = vst [vmem:[%s1482_s7 + $0x74] sm:$0xf] %v248_v29  ;;  %v252_v31 = vld [vmem:[%s1477_s6 + $0x174] sm:$0xf]  ;;  %251 = vst [vmem:[%s1482_s7 + $0x78] sm:$0xf] %v250_v30 }
  0x2d   : > { %253 = vst [vmem:[%s1482_s7 + $0x7c] sm:$0xf] %v252_v31 }
  0x2e PF: > { %p1135_p7 = scmp.ge.s32.totalorder %s1394_s18, 1  ;;  %p351_p8 = scmp.lt.s32.totalorder %s1394_s18, 7 }
  0x30   : > { %p352_p9 = pnand %p1135_p7, %p351_p8 }
  0x31   : > { %s358_s8 = sand.u32 (!%p352_p9), 1, %s1370_s12   ;;  %s1137_s9 = sshll.u32 (!%p352_p9), %s1378_s14, 4 }
  0x32   : > { %355 = sbr.rel (%p352_p9) target bundleno = 361 (0x169), region = 69  ;;  %s1136_s10 = sshll.u32 (!%p352_p9), %s358_s8, 7 }
  0x33   : > { %p397_p10 = scmp.lt.s32.totalorder (!%p352_p9), %s1137_s9, 47  ;;  %s1139_s11 = sshll.u32 (!%p352_p9), %s1382_s15, 5 }
  0x34   : > { %p409_p11 = scmp.lt.s32.totalorder (!%p352_p9), %s1139_s11, 63  ;;  %s1560_s12 = scalar_lea.vmem (!%p352_p9), [#allocation3], %s1136_s10 }
  0x35   : > { %p1141_p12 = scmp.ne.s32.totalorder (!%p352_p9), %s1378_s14, 0 }
  0x39   : > { %s1695_s9 = smov (!%p397_p10, %s1137_s9), 47  ;;  %s1697_s11 = smov (!%p409_p11, %s1139_s11), 63 }
  0x3a   : > { %s1138_s21 = sshll.u32 %s1695_s9, 2  ;;  %s1140_s26 = sshll.u32 %s1697_s11, 3  ;;  %v1396_v32 = vmov (!%p1141_p12), 0.0  }
  0x3b   : > { %s1553_s24 = scalar_lea.vmem %s1679_s1, %s1138_s21  ;;  %s1558_s29 = scalar_lea.vmem %s1681_s3, %s1140_s26  ;;  %422 = vst [vmem:[#allocation2] sm:$0xff] (!%p1141_p12), %v1396_v32  ;;  %423 = vst [vmem:[#allocation2 + $0x8] sm:$0xff] (!%p1141_p12), %v1396_v32 }
  0x3c   : > { %421 = sbr.rel (%p1141_p12) target bundleno = 75 (0x4b), region = 77  ;;  %424 = vst [vmem:[#allocation2 + $0x10] sm:$0xff] (!%p1141_p12), %v1396_v32  ;;  %425 = vst [vmem:[#allocation2 + $0x18] sm:$0xff] (!%p1141_p12), %v1396_v32 }
  0x3d   : > { %426 = vst [vmem:[#allocation2 + $0x20] sm:$0xff] (!%p1141_p12), %v1396_v32  ;;  %427 = vst [vmem:[#allocation2 + $0x28] sm:$0xff] (!%p1141_p12), %v1396_v32 }
  0x3e   : > { %428 = vst [vmem:[#allocation2 + $0x30] sm:$0xff] (!%p1141_p12), %v1396_v32  ;;  %429 = vst [vmem:[#allocation2 + $0x38] sm:$0xff] (!%p1141_p12), %v1396_v32 }
  0x3f   : > { %430 = vst [vmem:[#allocation2 + $0x40] sm:$0xff] (!%p1141_p12), %v1396_v32  ;;  %431 = vst [vmem:[#allocation2 + $0x48] sm:$0xff] (!%p1141_p12), %v1396_v32 }
  0x40   : > { %432 = vst [vmem:[#allocation2 + $0x50] sm:$0xff] (!%p1141_p12), %v1396_v32  ;;  %433 = vst [vmem:[#allocation2 + $0x58] sm:$0xff] (!%p1141_p12), %v1396_v32 }
  0x41   : > { %434 = vst [vmem:[#allocation2 + $0x60] sm:$0xff] (!%p1141_p12), %v1396_v32  ;;  %435 = vst [vmem:[#allocation2 + $0x68] sm:$0xff] (!%p1141_p12), %v1396_v32 }
  0x42   : > { %436 = vst [vmem:[#allocation2 + $0x70] sm:$0xff] (!%p1141_p12), %v1396_v32  ;;  %437 = vst [vmem:[#allocation2 + $0x78] sm:$0xff] (!%p1141_p12), %v1396_v32 }
  0x43   : > { %438 = vst [vmem:[#allocation2 + $0x80] sm:$0xff] %v1396_v32  ;;  %439 = vst [vmem:[#allocation2 + $0x88] sm:$0xff] %v1396_v32 }
  0x44   : > { %440 = vst [vmem:[#allocation2 + $0x90] sm:$0xff] %v1396_v32  ;;  %441 = vst [vmem:[#allocation2 + $0x98] sm:$0xff] %v1396_v32 }
  0x45   : > { %442 = vst [vmem:[#allocation2 + $0xa0] sm:$0xff] %v1396_v32  ;;  %443 = vst [vmem:[#allocation2 + $0xa8] sm:$0xff] %v1396_v32 }
  0x46   : > { %444 = vst [vmem:[#allocation2 + $0xb0] sm:$0xff] %v1396_v32  ;;  %445 = vst [vmem:[#allocation2 + $0xb8] sm:$0xff] %v1396_v32 }
  0x47   : > { %446 = vst [vmem:[#allocation2 + $0xc0] sm:$0xff] %v1396_v32  ;;  %447 = vst [vmem:[#allocation2 + $0xc8] sm:$0xff] %v1396_v32 }
  0x48   : > { %448 = vst [vmem:[#allocation2 + $0xd0] sm:$0xff] %v1396_v32  ;;  %449 = vst [vmem:[#allocation2 + $0xd8] sm:$0xff] %v1396_v32 }
  0x49   : > { %450 = vst [vmem:[#allocation2 + $0xe0] sm:$0xff] %v1396_v32  ;;  %451 = vst [vmem:[#allocation2 + $0xe8] sm:$0xff] %v1396_v32 }
  0x4a   : > { %452 = vst [vmem:[#allocation2 + $0xf0] sm:$0xff] %v1396_v32  ;;  %453 = vst [vmem:[#allocation2 + $0xf8] sm:$0xff] %v1396_v32 }
  0x4b PF: > { %v1316_v33 = vld [vmem:[%s1553_s24] sm:$0xff]   ;;  %v1317_v34 = vld [vmem:[%s1553_s24 + $0x8] sm:$0xff]   ;;  %v1318_v35 = vld [vmem:[%s1553_s24 + $0x10] sm:$0xff]   ;;  %p1166_p13 = scmp.ne.s32.totalorder %s1378_s14, 2 }
  0x4c   : > { %1194 = vmatprep.subr.bf16.mxu0 %v1316_v33  ;;  %1242 = vmatprep.subr.bf16.mxu1 %v1316_v33  ;;  %v1319_v36 = vld [vmem:[%s1553_s24 + $0x18] sm:$0xff]   ;;  %v1324_v37 = vld [vmem:[%s1560_s12] sm:$0xff]   ;;  %v1321_v40 = vld [vmem:[%s1553_s24 + $0x28] sm:$0xff]  }
  0x4d   : > { %1195 = vmatpush3.bf16.msra.mxu0 %v1316_v33  ;;  %1250 = vmatpush3.bf16.msra.mxu1 %v1316_v33  ;;  %v1325_v38 = vld [vmem:[%s1560_s12 + $0x40] sm:$0xff]   ;;  %v1322_v41 = vld [vmem:[%s1553_s24 + $0x30] sm:$0xff]   ;;  %v1323_v42 = vld [vmem:[%s1553_s24 + $0x38] sm:$0xff]  }
  0x4e   : > { %1196 = vmatprep.subr.bf16.mxu0 %v1317_v34  ;;  %1243 = vmatprep.subr.bf16.mxu1 %v1317_v34  ;;  %v1320_v39 = vld [vmem:[%s1553_s24 + $0x20] sm:$0xff]   ;;  %v1326_v43 = vld [vmem:[%s1560_s12 + $0x8] sm:$0xff]   ;;  %v1328_v45 = vld [vmem:[%s1560_s12 + $0x10] sm:$0xff]  }
  0x4f   : > { %1210 = vmatprep.mubr.bf16.mxu0 %v1324_v37  ;;  %1226 = vmatprep.mubr.bf16.mxu1 %v1325_v38  ;;  %v1327_v44 = vld [vmem:[%s1560_s12 + $0x48] sm:$0xff]   ;;  %v1329_v46 = vld [vmem:[%s1560_s12 + $0x50] sm:$0xff]   ;;  %v1330_v47 = vld [vmem:[%s1560_s12 + $0x18] sm:$0xff]  }
  0x50   : > { %v1331_v48 = vld [vmem:[%s1560_s12 + $0x58] sm:$0xff]   ;;  %v1332_v49 = vld [vmem:[%s1560_s12 + $0x20] sm:$0xff]   ;;  %v1334_v51 = vld [vmem:[%s1560_s12 + $0x28] sm:$0xff]  }
  0x51   : > { %1197 = vmatpush3.bf16.msra.mxu0 %v1317_v34  ;;  %1251 = vmatpush3.bf16.msra.mxu1 %v1317_v34  ;;  %v1333_v50 = vld [vmem:[%s1560_s12 + $0x60] sm:$0xff]   ;;  %v1335_v52 = vld [vmem:[%s1560_s12 + $0x68] sm:$0xff]   ;;  %v1336_v53 = vld [vmem:[%s1560_s12 + $0x30] sm:$0xff]  }
  0x52   : > { %1198 = vmatprep.subr.bf16.mxu0 %v1318_v35  ;;  %1244 = vmatprep.subr.bf16.mxu1 %v1318_v35  ;;  %v1337_v54 = vld [vmem:[%s1560_s12 + $0x70] sm:$0xff]   ;;  %v1338_v55 = vld [vmem:[%s1560_s12 + $0x38] sm:$0xff]   ;;  %v486_v59 = vld [vmem:[#allocation2] sm:$0xff] }
  0x53   : > { %v1339_v56 = vld [vmem:[%s1560_s12 + $0x78] sm:$0xff]   ;;  %v488_v57 = vld [vmem:[#allocation2 + $0x10] sm:$0xff]  ;;  %v502_v60 = vld [vmem:[#allocation2 + $0x80] sm:$0xff] }
  0x54   : > { %v504_v58 = vld [vmem:[#allocation2 + $0x90] sm:$0xff]  ;;  %v489_v63 = vld [vmem:[#allocation2 + $0x18] sm:$0xff]  ;;  %v487_v5 = vld [vmem:[#allocation2 + $0x8] sm:$0xff] }
  0x55   : > { %1199 = vmatpush3.bf16.msra.mxu0 %v1318_v35  ;;  %1252 = vmatpush3.bf16.msra.mxu1 %v1318_v35  ;;  %v505_v0 = vld [vmem:[#allocation2 + $0x98] sm:$0xff]  ;;  %v503_v6 = vld [vmem:[#allocation2 + $0x88] sm:$0xff]  ;;  %v492_v17 = vld [vmem:[#allocation2 + $0x30] sm:$0xff] }
  0x56   : > { %1200 = vmatprep.subr.bf16.mxu0 %v1319_v36  ;;  %1245 = vmatprep.subr.bf16.mxu1 %v1319_v36  ;;  %v508_v18 = vld [vmem:[#allocation2 + $0xb0] sm:$0xff]  ;;  %v490_v19 = vld [vmem:[#allocation2 + $0x20] sm:$0xff]  ;;  %v493_v23 = vld [vmem:[#allocation2 + $0x38] sm:$0xff] }
  0x57   : > { %v506_v20 = vld [vmem:[#allocation2 + $0xa0] sm:$0xff]  ;;  %v509_v24 = vld [vmem:[#allocation2 + $0xb8] sm:$0xff]  ;;  %v491_v29 = vld [vmem:[#allocation2 + $0x28] sm:$0xff] }
  0x58   : > { %v507_v30 = vld [vmem:[#allocation2 + $0xa8] sm:$0xff] }
  0x59   : > { %1201 = vmatpush3.bf16.msra.mxu0 %v1319_v36  ;;  %1253 = vmatpush3.bf16.msra.mxu1 %v1319_v36 }
  0x5a   : > { %1202 = vmatprep.subr.bf16.mxu0 %v1320_v39  ;;  %1246 = vmatprep.subr.bf16.mxu1 %v1320_v39 }
  0x5d   : > { %1203 = vmatpush3.bf16.msra.mxu0 %v1320_v39  ;;  %1254 = vmatpush3.bf16.msra.mxu1 %v1320_v39 }
  0x5e   : > { %1204 = vmatprep.subr.bf16.mxu0 %v1321_v40  ;;  %1247 = vmatprep.subr.bf16.mxu1 %v1321_v40 }
  0x61   : > { %1205 = vmatpush3.bf16.msra.mxu0 %v1321_v40  ;;  %1255 = vmatpush3.bf16.msra.mxu1 %v1321_v40 }
  0x62   : > { %1206 = vmatprep.subr.bf16.mxu0 %v1322_v41  ;;  %1248 = vmatprep.subr.bf16.mxu1 %v1322_v41 }
  0x65   : > { %1207 = vmatpush3.bf16.msra.mxu0 %v1322_v41  ;;  %1256 = vmatpush3.bf16.msra.mxu1 %v1322_v41  ;;  %v496_v41 = vld [vmem:[#allocation2 + $0x50] sm:$0xff] }
  0x66   : > { %1208 = vmatprep.subr.bf16.mxu0 %v1323_v42  ;;  %1249 = vmatprep.subr.bf16.mxu1 %v1323_v42 }
  0x69   : > { %1209 = vmatpush3.bf16.msra.mxu0 %v1323_v42  ;;  %1257 = vmatpush3.bf16.msra.mxu1 %v1323_v42  ;;  %v512_v42 = vld [vmem:[#allocation2 + $0xd0] sm:$0xff] }
  0x6c   : > { %1211 = vmatmul.mubr.bf16.vlgmr.msra.gmra.mrb[0].mxu0 %v1326_v43  ;;  %1227 = vmatmul.mubr.bf16.vlgmr.msra.gmra.mrb[0].mxu1 %v1327_v44  ;;  %v494_v43 = vld [vmem:[#allocation2 + $0x40] sm:$0xff] }
  0x6d   : > { %1214 = vmatprep.mubr.bf16.mxu0 %v1328_v45  ;;  %1230 = vmatprep.mubr.bf16.mxu1 %v1329_v46  ;;  %v510_v44 = vld [vmem:[#allocation2 + $0xc0] sm:$0xff] }
  0x74   : > { %1215 = vmatmul.mubr.bf16.gmra.mrb[4].mxu0 %v1330_v47  ;;  %1231 = vmatmul.mubr.bf16.gmra.mrb[4].mxu1 %v1331_v48  ;;  %v497_v47 = vld [vmem:[#allocation2 + $0x58] sm:$0xff] }
  0x75   : > { %1218 = vmatprep.mubr.bf16.mxu0 %v1332_v49  ;;  %1234 = vmatprep.mubr.bf16.mxu1 %v1333_v50  ;;  %v513_v48 = vld [vmem:[#allocation2 + $0xd8] sm:$0xff] }
  0x7c   : > { %1219 = vmatmul.mubr.bf16.gmra.mrb[8].mxu0 %v1334_v51  ;;  %1235 = vmatmul.mubr.bf16.gmra.mrb[8].mxu1 %v1335_v52 }
  0x7d   : > { %1222 = vmatprep.mubr.bf16.mxu0 %v1336_v53  ;;  %1238 = vmatprep.mubr.bf16.mxu1 %v1337_v54  ;;  %v495_v53 = vld [vmem:[#allocation2 + $0x48] sm:$0xff] }
  0x7e   : > { %v511_v54 = vld [vmem:[#allocation2 + $0xc8] sm:$0xff] }
  0x84   : > { %1223 = vmatmul.mubr.bf16.gmra.mrb[12].mxu0 %v1338_v55  ;;  %1239 = vmatmul.mubr.bf16.gmra.mrb[12].mxu1 %v1339_v56 }
 0x13f   : > { %v1212_v61 = vpop.f32.mrb[0].mxu0  ;;  %v1228_v62 = vpop.f32.mrb[0].mxu1 }
 0x140   : > { %v841_v1 = vadd.f32 %v1212_v61, %v488_v57  ;;  %v857_v2 = vadd.f32 %v1228_v62, %v504_v58  ;;  %v712_v3 = vpop.f32.mrb[1].mxu0  ;;  %v776_v4 = vpop.f32.mrb[1].mxu1 }
 0x141   : > { %v839_v7 = vadd.f32 %v712_v3, %v486_v59  ;;  %v855_v8 = vadd.f32 %v776_v4, %v502_v60  ;;  %v1213_v9 = vpop.f32.mrb[2].mxu0  ;;  %v1229_v10 = vpop.f32.mrb[2].mxu1  ;;  %v498_v3 = vld [vmem:[#allocation2 + $0x60] sm:$0xff] }
 0x142   : > { %873 = vst [vmem:[#allocation2 + $0x10] sm:$0xff] %v841_v1  ;;  %889 = vst [vmem:[#allocation2 + $0x90] sm:$0xff] %v857_v2  ;;  %v842_v11 = vadd.f32 %v1213_v9, %v489_v63  ;;  %v858_v12 = vadd.f32 %v1229_v10, %v505_v0  ;;  %v715_v13 = vpop.f32.mrb[3].mxu0  ;;  %v779_v14 = vpop.f32.mrb[3].mxu1  ;;  %v500_v1 = vld [vmem:[#allocation2 + $0x70] sm:$0xff]  ;;  %v514_v4 = vld [vmem:[#allocation2 + $0xe0] sm:$0xff] }
 0x143   : > { %871 = vst [vmem:[#allocation2] sm:$0xff] %v839_v7  ;;  %887 = vst [vmem:[#allocation2 + $0x80] sm:$0xff] %v855_v8  ;;  %v840_v15 = vadd.f32 %v715_v13, %v487_v5  ;;  %v856_v16 = vadd.f32 %v779_v14, %v503_v6  ;;  %v516_v2 = vld [vmem:[#allocation2 + $0xf0] sm:$0xff]  ;;  %v501_v7 = vld [vmem:[#allocation2 + $0x78] sm:$0xff] }
 0x144   : > { %874 = vst [vmem:[#allocation2 + $0x18] sm:$0xff] %v842_v11  ;;  %890 = vst [vmem:[#allocation2 + $0x98] sm:$0xff] %v858_v12  ;;  %v517_v8 = vld [vmem:[#allocation2 + $0xf8] sm:$0xff]  ;;  %v499_v13 = vld [vmem:[#allocation2 + $0x68] sm:$0xff] }
 0x145   : > { %872 = vst [vmem:[#allocation2 + $0x8] sm:$0xff] %v840_v15  ;;  %888 = vst [vmem:[#allocation2 + $0x88] sm:$0xff] %v856_v16  ;;  %v515_v14 = vld [vmem:[#allocation2 + $0xe8] sm:$0xff] }
 0x147   : > { %v1216_v21 = vpop.f32.mrb[4].mxu0  ;;  %v1232_v22 = vpop.f32.mrb[4].mxu1 }
 0x148   : > { %v845_v25 = vadd.f32 %v1216_v21, %v492_v17  ;;  %v861_v26 = vadd.f32 %v1232_v22, %v508_v18  ;;  %v728_v27 = vpop.f32.mrb[5].mxu0  ;;  %v792_v28 = vpop.f32.mrb[5].mxu1 }
 0x149   : > { %v843_v31 = vadd.f32 %v728_v27, %v490_v19  ;;  %v859_v32 = vadd.f32 %v792_v28, %v506_v20  ;;  %v1217_v33 = vpop.f32.mrb[6].mxu0  ;;  %v1233_v34 = vpop.f32.mrb[6].mxu1 }
 0x14a   : > { %877 = vst [vmem:[#allocation2 + $0x30] sm:$0xff] %v845_v25  ;;  %893 = vst [vmem:[#allocation2 + $0xb0] sm:$0xff] %v861_v26  ;;  %v846_v35 = vadd.f32 %v1217_v33, %v493_v23  ;;  %v862_v36 = vadd.f32 %v1233_v34, %v509_v24  ;;  %v731_v37 = vpop.f32.mrb[7].mxu0  ;;  %v795_v38 = vpop.f32.mrb[7].mxu1  ;;  %v907_v25 = vld [vmem:[#allocation2] sm:$0xff] (!%p1166_p13) }
 0x14b   : > { %875 = vst [vmem:[#allocation2 + $0x20] sm:$0xff] %v843_v31  ;;  %891 = vst [vmem:[#allocation2 + $0xa0] sm:$0xff] %v859_v32  ;;  %v844_v39 = vadd.f32 %v731_v37, %v491_v29  ;;  %v860_v40 = vadd.f32 %v795_v38, %v507_v30  ;;  %v1591_v26 = vld [vmem:[%s1680_s2] ss:$0 sm:$0xff] (!%p1166_p13)  ;;  %v909_v30 = vld [vmem:[#allocation2 + $0x10] sm:$0xff] (!%p1166_p13) }
 0x14c   : > { %878 = vst [vmem:[#allocation2 + $0x38] sm:$0xff] %v846_v35  ;;  %894 = vst [vmem:[#allocation2 + $0xb8] sm:$0xff] %v862_v36  ;;  %v908_v27 = vld [vmem:[#allocation2 + $0x8] sm:$0xff] (!%p1166_p13)  ;;  %v946_v28 = vadd.f32 (!%p1166_p13), %v1591_v26, %v907_v25  ;;  %v910_v31 = vld [vmem:[#allocation2 + $0x18] sm:$0xff] (!%p1166_p13)  ;;  %v948_v33 = vadd.f32 (!%p1166_p13), %v1591_v26, %v909_v30 }
 0x14d   : > { %876 = vst [vmem:[#allocation2 + $0x28] sm:$0xff] %v844_v39  ;;  %892 = vst [vmem:[#allocation2 + $0xa8] sm:$0xff] %v860_v40  ;;  %v947_v29 = vadd.f32 (!%p1166_p13), %v1591_v26, %v908_v27  ;;  %v949_v34 = vadd.f32 (!%p1166_p13), %v1591_v26, %v910_v31 }
 0x14e   : > { %978 = vst [vmem:[%s1558_s29] sm:$0xff] (!%p1166_p13), %v946_v28  ;;  %980 = vst [vmem:[%s1558_s29 + $0x10] sm:$0xff] (!%p1166_p13), %v948_v33 }
 0x14f   : > { %v1220_v45 = vpop.f32.mrb[8].mxu0  ;;  %v1236_v46 = vpop.f32.mrb[8].mxu1  ;;  %979 = vst [vmem:[%s1558_s29 + $0x8] sm:$0xff] (!%p1166_p13), %v947_v29  ;;  %981 = vst [vmem:[%s1558_s29 + $0x18] sm:$0xff] (!%p1166_p13), %v949_v34 }
 0x150   : > { %v849_v49 = vadd.f32 %v1220_v45, %v496_v41  ;;  %v865_v50 = vadd.f32 %v1236_v46, %v512_v42  ;;  %v744_v51 = vpop.f32.mrb[9].mxu0  ;;  %v808_v52 = vpop.f32.mrb[9].mxu1 }
 0x151   : > { %v847_v55 = vadd.f32 %v744_v51, %v494_v43  ;;  %v863_v56 = vadd.f32 %v808_v52, %v510_v44  ;;  %v1221_v57 = vpop.f32.mrb[10].mxu0  ;;  %v1237_v58 = vpop.f32.mrb[10].mxu1  ;;  %v913_v37 = vld [vmem:[#allocation2 + $0x30] sm:$0xff] (!%p1166_p13) }
 0x152   : > { %881 = vst [vmem:[#allocation2 + $0x50] sm:$0xff] %v849_v49  ;;  %897 = vst [vmem:[#allocation2 + $0xd0] sm:$0xff] %v865_v50  ;;  %v850_v59 = vadd.f32 %v1221_v57, %v497_v47  ;;  %v866_v60 = vadd.f32 %v1237_v58, %v513_v48  ;;  %v747_v61 = vpop.f32.mrb[11].mxu0  ;;  %v811_v62 = vpop.f32.mrb[11].mxu1  ;;  %v911_v32 = vld [vmem:[#allocation2 + $0x20] sm:$0xff] (!%p1166_p13)  ;;  %v952_v40 = vadd.f32 (!%p1166_p13), %v1591_v26, %v913_v37 }
 0x153   : > { %879 = vst [vmem:[#allocation2 + $0x40] sm:$0xff] %v847_v55  ;;  %895 = vst [vmem:[#allocation2 + $0xc0] sm:$0xff] %v863_v56  ;;  %v848_v63 = vadd.f32 %v747_v61, %v495_v53  ;;  %v864_v0 = vadd.f32 %v811_v62, %v511_v54  ;;  %v950_v35 = vadd.f32 (!%p1166_p13), %v1591_v26, %v911_v32  ;;  %v914_v38 = vld [vmem:[#allocation2 + $0x38] sm:$0xff] (!%p1166_p13)  ;;  %v923_v56 = vld [vmem:[#allocation2 + $0x80] sm:$0xff] (!%p1166_p13) }
 0x154   : > { %882 = vst [vmem:[#allocation2 + $0x58] sm:$0xff] %v850_v59  ;;  %898 = vst [vmem:[#allocation2 + $0xd8] sm:$0xff] %v866_v60  ;;  %v912_v36 = vld [vmem:[#allocation2 + $0x28] sm:$0xff] (!%p1166_p13)  ;;  %v953_v41 = vadd.f32 (!%p1166_p13), %v1591_v26, %v914_v38  ;;  %v962_v59 = vadd.f32 (!%p1166_p13), %v1591_v26, %v923_v56  ;;  %v925_v61 = vld [vmem:[#allocation2 + $0x90] sm:$0xff] (!%p1166_p13) }
 0x155   : > { %880 = vst [vmem:[#allocation2 + $0x48] sm:$0xff] %v848_v63  ;;  %896 = vst [vmem:[#allocation2 + $0xc8] sm:$0xff] %v864_v0  ;;  %v951_v39 = vadd.f32 (!%p1166_p13), %v1591_v26, %v912_v36  ;;  %v924_v60 = vld [vmem:[#allocation2 + $0x88] sm:$0xff] (!%p1166_p13)  ;;  %v926_v62 = vld [vmem:[#allocation2 + $0x98] sm:$0xff] (!%p1166_p13)  ;;  %v964_v0 = vadd.f32 (!%p1166_p13), %v1591_v26, %v925_v61 }
 0x156   : > { %982 = vst [vmem:[%s1558_s29 + $0x20] sm:$0xff] (!%p1166_p13), %v950_v35  ;;  %984 = vst [vmem:[%s1558_s29 + $0x30] sm:$0xff] (!%p1166_p13), %v952_v40  ;;  %v963_v63 = vadd.f32 (!%p1166_p13), %v1591_v26, %v924_v60 }
 0x157   : > { %v1224_v5 = vpop.f32.mrb[12].mxu0  ;;  %v1240_v6 = vpop.f32.mrb[12].mxu1  ;;  %906 = sbr.rel (%p1166_p13) target bundleno = 361 (0x169), region = 81  ;;  %983 = vst [vmem:[%s1558_s29 + $0x28] sm:$0xff] (!%p1166_p13), %v951_v39  ;;  %985 = vst [vmem:[%s1558_s29 + $0x38] sm:$0xff] (!%p1166_p13), %v953_v41 }
 0x158   : > { %v853_v9 = vadd.f32 %v1224_v5, %v500_v1  ;;  %v869_v10 = vadd.f32 %v1240_v6, %v516_v2  ;;  %v760_v11 = vpop.f32.mrb[13].mxu0  ;;  %v824_v12 = vpop.f32.mrb[13].mxu1  ;;  %v965_v1 = vadd.f32 (!%p1166_p13), %v1591_v26, %v926_v62  ;;  %v927_v2 = vld [vmem:[#allocation2 + $0xa0] sm:$0xff] (!%p1166_p13)  ;;  %994 = vst [vmem:[%s1558_s29 + $0x80] sm:$0xff] (!%p1166_p13), %v962_v59  ;;  %995 = vst [vmem:[%s1558_s29 + $0x88] sm:$0xff] (!%p1166_p13), %v963_v63 }
 0x159   : > { %v851_v15 = vadd.f32 %v760_v11, %v498_v3  ;;  %v867_v16 = vadd.f32 %v824_v12, %v514_v4  ;;  %v1225_v17 = vpop.f32.mrb[14].mxu0  ;;  %v1241_v18 = vpop.f32.mrb[14].mxu1  ;;  %v917_v44 = vld [vmem:[#allocation2 + $0x50] sm:$0xff] (!%p1166_p13)  ;;  %v928_v3 = vld [vmem:[#allocation2 + $0xa8] sm:$0xff] (!%p1166_p13)  ;;  %v966_v5 = vadd.f32 (!%p1166_p13), %v1591_v26, %v927_v2  ;;  %996 = vst [vmem:[%s1558_s29 + $0x90] sm:$0xff] (!%p1166_p13), %v964_v0 }
 0x15a   : > { %885 = vst [vmem:[#allocation2 + $0x70] sm:$0xff] %v853_v9  ;;  %901 = vst [vmem:[#allocation2 + $0xf0] sm:$0xff] %v869_v10  ;;  %v854_v19 = vadd.f32 %v1225_v17, %v501_v7  ;;  %v870_v20 = vadd.f32 %v1241_v18, %v517_v8  ;;  %v763_v21 = vpop.f32.mrb[15].mxu0  ;;  %v827_v22 = vpop.f32.mrb[15].mxu1  ;;  %v915_v42 = vld [vmem:[#allocation2 + $0x40] sm:$0xff] (!%p1166_p13)  ;;  %v956_v47 = vadd.f32 (!%p1166_p13), %v1591_v26, %v917_v44  ;;  %v929_v4 = vld [vmem:[#allocation2 + $0xb0] sm:$0xff] (!%p1166_p13) }
 0x15b   : > { %883 = vst [vmem:[#allocation2 + $0x60] sm:$0xff] %v851_v15  ;;  %899 = vst [vmem:[#allocation2 + $0xe0] sm:$0xff] %v867_v16  ;;  %v852_v23 = vadd.f32 %v763_v21, %v499_v13  ;;  %v868_v24 = vadd.f32 %v827_v22, %v515_v14  ;;  %v954_v45 = vadd.f32 (!%p1166_p13), %v1591_v26, %v915_v42  ;;  %v918_v48 = vld [vmem:[#allocation2 + $0x58] sm:$0xff] (!%p1166_p13)  ;;  %v931_v9 = vld [vmem:[#allocation2 + $0xc0] sm:$0xff] (!%p1166_p13) }
 0x15c   : > { %886 = vst [vmem:[#allocation2 + $0x78] sm:$0xff] %v854_v19  ;;  %902 = vst [vmem:[#allocation2 + $0xf8] sm:$0xff] %v870_v20  ;;  %v916_v43 = vld [vmem:[#allocation2 + $0x48] sm:$0xff] (!%p1166_p13)  ;;  %v957_v51 = vadd.f32 (!%p1166_p13), %v1591_v26, %v918_v48  ;;  %v967_v6 = vadd.f32 (!%p1166_p13), %v1591_v26, %v928_v3  ;;  %v968_v7 = vadd.f32 (!%p1166_p13), %v1591_v26, %v929_v4  ;;  %v930_v8 = vld [vmem:[#allocation2 + $0xb8] sm:$0xff] (!%p1166_p13) }
 0x15d   : > { %884 = vst [vmem:[#allocation2 + $0x68] sm:$0xff] %v852_v23  ;;  %900 = vst [vmem:[#allocation2 + $0xe8] sm:$0xff] %v868_v24  ;;  %v955_v46 = vadd.f32 (!%p1166_p13), %v1591_v26, %v916_v43  ;;  %v932_v10 = vld [vmem:[#allocation2 + $0xc8] sm:$0xff] (!%p1166_p13)  ;;  %v969_v11 = vadd.f32 (!%p1166_p13), %v1591_v26, %v930_v8  ;;  %v970_v12 = vadd.f32 (!%p1166_p13), %v1591_v26, %v931_v9  ;;  %v933_v14 = vld [vmem:[#allocation2 + $0xd0] sm:$0xff] (!%p1166_p13) }
 0x15e   : > { %986 = vst [vmem:[%s1558_s29 + $0x40] sm:$0xff] %v954_v45  ;;  %988 = vst [vmem:[%s1558_s29 + $0x50] sm:$0xff] %v956_v47  ;;  %v971_v13 = vadd.f32 %v1591_v26, %v932_v10  ;;  %v934_v15 = vld [vmem:[#allocation2 + $0xd8] sm:$0xff]  ;;  %v972_v17 = vadd.f32 %v1591_v26, %v933_v14 }
 0x15f   : > { %987 = vst [vmem:[%s1558_s29 + $0x48] sm:$0xff] %v955_v46  ;;  %989 = vst [vmem:[%s1558_s29 + $0x58] sm:$0xff] %v957_v51  ;;  %v973_v18 = vadd.f32 %v1591_v26, %v934_v15 }
 0x160   : > { %997 = vst [vmem:[%s1558_s29 + $0x98] sm:$0xff] %v965_v1  ;;  %998 = vst [vmem:[%s1558_s29 + $0xa0] sm:$0xff] %v966_v5 }
 0x161   : > { %v921_v54 = vld [vmem:[#allocation2 + $0x70] sm:$0xff]  ;;  %999 = vst [vmem:[%s1558_s29 + $0xa8] sm:$0xff] %v967_v6  ;;  %1000 = vst [vmem:[%s1558_s29 + $0xb0] sm:$0xff] %v968_v7 }
 0x162   : > { %v919_v49 = vld [vmem:[#allocation2 + $0x60] sm:$0xff]  ;;  %v960_v57 = vadd.f32 %v1591_v26, %v921_v54  ;;  %v937_v21 = vld [vmem:[#allocation2 + $0xf0] sm:$0xff]  ;;  %1001 = vst [vmem:[%s1558_s29 + $0xb8] sm:$0xff] %v969_v11  ;;  %1002 = vst [vmem:[%s1558_s29 + $0xc0] sm:$0xff] %v970_v12 }
 0x163   : > { %v958_v52 = vadd.f32 %v1591_v26, %v919_v49  ;;  %v922_v55 = vld [vmem:[#allocation2 + $0x78] sm:$0xff]  ;;  %v935_v16 = vld [vmem:[#allocation2 + $0xe0] sm:$0xff]  ;;  %1003 = vst [vmem:[%s1558_s29 + $0xc8] sm:$0xff] %v971_v13  ;;  %v976_v24 = vadd.f32 %v1591_v26, %v937_v21  ;;  %1004 = vst [vmem:[%s1558_s29 + $0xd0] sm:$0xff] %v972_v17 }
 0x164   : > { %v920_v50 = vld [vmem:[#allocation2 + $0x68] sm:$0xff]  ;;  %v961_v58 = vadd.f32 %v1591_v26, %v922_v55  ;;  %992 = vst [vmem:[%s1558_s29 + $0x70] sm:$0xff] %v960_v57  ;;  %v974_v19 = vadd.f32 %v1591_v26, %v935_v16  ;;  %v938_v22 = vld [vmem:[#allocation2 + $0xf8] sm:$0xff]  ;;  %1005 = vst [vmem:[%s1558_s29 + $0xd8] sm:$0xff] %v973_v18 }
 0x165   : > { %v959_v53 = vadd.f32 %v1591_v26, %v920_v50  ;;  %990 = vst [vmem:[%s1558_s29 + $0x60] sm:$0xff] %v958_v52  ;;  %v936_v20 = vld [vmem:[#allocation2 + $0xe8] sm:$0xff]  ;;  %v977_v25 = vadd.f32 %v1591_v26, %v938_v22  ;;  %1008 = vst [vmem:[%s1558_s29 + $0xf0] sm:$0xff] %v976_v24 }
 0x166   : > { %993 = vst [vmem:[%s1558_s29 + $0x78] sm:$0xff] %v961_v58  ;;  %v975_v23 = vadd.f32 %v1591_v26, %v936_v20  ;;  %1006 = vst [vmem:[%s1558_s29 + $0xe0] sm:$0xff] %v974_v19 }
 0x167   : > { %991 = vst [vmem:[%s1558_s29 + $0x68] sm:$0xff] %v959_v53  ;;  %1009 = vst [vmem:[%s1558_s29 + $0xf8] sm:$0xff] %v977_v25 }
 0x168   : > { %1007 = vst [vmem:[%s1558_s29 + $0xe8] sm:$0xff] %v975_v23 }
 0x169 PF: > { %s13_s18 = sadd.s32 1, %s1394_s18   ;;  %s1682_s12 = smov %s1374_s13 }
 0x16a   : > { %p10_p0 = scmp.ge.s32.totalorder %s13_s18, 8   ;;  %s1683_s13 = smov %s1468_s25 }
 0x16b   : > { %s1684_s14 = smov %s1386_s16  ;;  %s1685_s15 = smov %s1390_s17 }
 0x16c   : > { %s1686_s16 = smov %s1689_s19  ;;  %s1687_s17 = smov %s1693_s20 }
 0x16d   :  { %12 = sbr.rel (!%p10_p0) target bundleno = 4 (0x4), region = 122 }

// kernel: _lambda_.8
= control target key start
LH: loop header
LB: loop body
LE: loop exit
PB: predicated region body
PF: predicated region fallthrough
CT: control target
= control target key end

     0   :  { %v205_v0 = vmov 0.0   ;;  %vm206_vm0 = vmmov 0   ;;  %s260_s1 = inlined_call_operand.vmem [shape: bf16[128,128], index: 1, kind: input, shape index: {}]   ;;  %s261_s0 = inlined_call_operand.vmem [shape: bf16[8,128], index: 0, kind: input, shape index: {}]   ;;  %s262_s2 = inlined_call_operand.vmem [shape: f32[1,128], index: 2, kind: input, shape index: {}]   ;;  %s263_s3 = inlined_call_operand.vmem [shape: f32[8,128], index: 3, kind: output, shape index: {}]  }
   0x1   :  { %171 = vmatprep.subr.bf16.mxu0 %v205_v0  ;;  %v193_v1 = vld [vmem:[%s260_s1] sm:$0xff]   ;;  %187 = vmatprep.mubr.msk.bf16.mxu0 %vm206_vm0, %v205_v0  ;;  %v194_v2 = vld [vmem:[%s260_s1 + $0x8] sm:$0xff]   ;;  %v195_v3 = vld [vmem:[%s260_s1 + $0x10] sm:$0xff]  }
   0x2   :  { %172 = vmatpush3.bf16.msra.mxu0 %v193_v1  ;;  %v20_v4 = vld [vmem:[%s261_s0] sm:$0xf]  ;;  %v196_v6 = vld [vmem:[%s260_s1 + $0x18] sm:$0xff]   ;;  %v198_v10 = vld [vmem:[%s260_s1 + $0x28] sm:$0xff]  }
   0x3   :  { %173 = vmatprep.subr.bf16.mxu0 %v205_v0  ;;  %v21_v5 = vunpack.c.l.bf16 %v20_v4  ;;  %v197_v9 = vld [vmem:[%s260_s1 + $0x20] sm:$0xff]   ;;  %v199_v11 = vld [vmem:[%s260_s1 + $0x30] sm:$0xff]   ;;  %v200_v13 = vld [vmem:[%s260_s1 + $0x38] sm:$0xff]  }
   0x4   :  { %v161_v18 = vld [vmem:[%s262_s2] ss:$0 sm:$0xff] }
   0x5   :  { %v22_v7 = vsub.f32 0.0, %v21_v5 }
   0x6   :  { %174 = vmatpush3.bf16.msra.mxu0 %v194_v2 }
   0x7   :  { %175 = vmatprep.subr.bf16.mxu0 %v205_v0  ;;  %v23_v8 = vmul.f32 1.442695, %v22_v7 }
   0x9   :  { %201 = vpow2.f32 %v23_v8 }
   0xa   :  { %176 = vmatpush3.bf16.msra.mxu0 %v195_v3 }
   0xb   :  { %177 = vmatprep.subr.bf16.mxu0 %v205_v0 }
   0xe   :  { %178 = vmatpush3.bf16.msra.mxu0 %v196_v6 }
   0xf   :  { %179 = vmatprep.subr.bf16.mxu0 %v205_v0 }
  0x12   :  { %180 = vmatpush3.bf16.msra.mxu0 %v197_v9 }
  0x13   :  { %181 = vmatprep.subr.bf16.mxu0 %v205_v0  ;;  %v202_v12 = vpop.eup %201 }
  0x14   :  { %v25_v14 = vadd.f32 1.0, %v202_v12 }
  0x16   :  { %182 = vmatpush3.bf16.msra.mxu0 %v198_v10  ;;  %203 = vrcp.f32 %v25_v14 }
  0x17   :  { %183 = vmatprep.subr.bf16.mxu0 %v205_v0 }
  0x1a   :  { %184 = vmatpush3.bf16.msra.mxu0 %v199_v11 }
  0x1b   :  { %185 = vmatprep.subr.bf16.mxu0 %v205_v0 }
  0x1e   :  { %186 = vmatpush3.bf16.msra.mxu0 %v200_v13 }
  0x20   :  { %v204_v15 = vpop.eup %203 }
  0x21   :  { %v27_v16 = vmul.f32 %v204_v15, %v21_v5 }
  0x23   :  { %v28_v17 = vpack.c.bf16 %v27_v16, %v27_v16 }
  0x25   :  { %188 = vmatmul.mubr.bf16.vlgmr.msra.gmra.mrb[0].mxu0 %v28_v17 }
  0xf8   :  { %v128_v19 = vpop.f32.mrb[0].mxu0 }
  0xf9   :  { %v147_v20 = vadd.f32 %v161_v18, %v128_v19  ;;  %v189_v21 = vpop.f32.mrb[1].mxu0 }
  0xfa   :  { %v131_v22 = vpop.f32.mrb[2].mxu0 }
  0xfb   :  { %148 = vst [vmem:[%s263_s3] sm:$0xff] %v147_v20  ;;  %v190_v23 = vpop.f32.mrb[3].mxu0 }

// kernel: _lambda_.10
= control target key start
LH: loop header
LB: loop body
LE: loop exit
PB: predicated region body
PF: predicated region fallthrough
CT: control target
= control target key end

     0   :  { %s1284_s18 = smov 0   ;;  %s1916_s0 = inlined_call_operand.vmem [shape: f32[2,256,64], index: 0, kind: input, shape index: {}]   ;;  %s1917_s1 = inlined_call_operand.vmem [shape: f32[1,64], index: 1, kind: input, shape index: {}]   ;;  %s1918_s2 = inlined_call_operand.vmem [shape: f32[1,64], index: 2, kind: input, shape index: {}]   ;;  %s1919_s3 = inlined_call_operand.vmem [shape: f32[64,64], index: 3, kind: input, shape index: {}]   ;;  %s1920_s4 = inlined_call_operand.vmem [shape: f32[2,1,64], index: 4, kind: input, shape index: {}]   ;;  %s1921_s5 = inlined_call_operand.vmem [shape: f32[2,256,64], index: 5, kind: output, shape index: {}]  }
   0x1 LB: > { %s1006_s19 = sadd.s32 4294967295, %s1249_s18   ;;  %p1010_p0 = scmp.ge.s32.totalorder %s1249_s18, 1  ;;  %s1249_s18 = sphi %s1284_s18, %s15_s18  }
   0x2   : > { %p195_p1 = scmp.lt.s32.totalorder %s1249_s18, 3 }
   0x4   : > { %p196_p2 = pnand %p1010_p0, %p195_p1 }
   0x6   : > { %199 = sbr.rel (%p196_p2) target bundleno = 439 (0x1b7), region = 40 }
   0xd   : > { %v481_v0 = vld [vmem:[%s1919_s3] sm:$0xff]  ;;  %v482_v1 = vld [vmem:[%s1919_s3 + $0x8] sm:$0xff]  ;;  %v483_v2 = vld [vmem:[%s1919_s3 + $0x10] sm:$0xff]  ;;  %v1251_v3 = vmov 0.0|0.0   ;;  %p226_p3 = scmp.lt.s32.totalorder %s1006_s19, 1  ;;  %vm1252_vm0 = vmmov 0  }
   0xe   : > { %1078 = vmatprep.subr.bf16.mxu0 %v1251_v3  ;;  %v1079_v4 = vpack.c.bf16 %v482_v1, %v481_v0  ;;  %1090 = vmatprep.subr.bf16.mxu1 %v1251_v3  ;;  %v484_v5 = vld [vmem:[%s1919_s3 + $0x18] sm:$0xff]  ;;  %v1253_v6 = vmov 0.0   ;;  %v485_v8 = vld [vmem:[%s1919_s3 + $0x20] sm:$0xff]  ;;  %v486_v9 = vld [vmem:[%s1919_s3 + $0x28] sm:$0xff]  ;;  %vm310_vm1 = vcmask 523264  }
   0xf   : > { %1056 = vmatprep.mubr.msk.f32.mxu0 %vm1252_vm0, %v1253_v6  ;;  %1075 = vmatprep.mubr.msk.f32.mxu1 %vm1252_vm0, %v1253_v6  ;;  %v1082_v7 = vpack.c.bf16 %v484_v5, %v483_v2  ;;  %s1932_s19 = smov (!%p226_p3, %s1006_s19), 1  ;;  %v1085_v11 = vpack.c.bf16 %v486_v9, %v485_v8  ;;  %v487_v15 = vld [vmem:[%s1919_s3 + $0x30] sm:$0xff]  ;;  %v488_v16 = vld [vmem:[%s1919_s3 + $0x38] sm:$0xff] }
  0x10   : > { %1080 = vmatpush3.bf16.msra.mxu0 %v1079_v4  ;;  %1092 = vmatpush3.bf16.msra.mxu1 %v1079_v4  ;;  %s1020_s7 = sshll.u32 %s1932_s19, 8  ;;  %s233_s10 = scalar_lea.vmem %s1920_s4, %s1932_s19  ;;  %v1088_v23 = vpack.c.bf16 %v488_v16, %v487_v15 }
  0x11   : > { %1081 = vmatprep.subr.bf16.mxu0 %v1251_v3  ;;  %1093 = vmatprep.subr.bf16.mxu1 %v1251_v3  ;;  %s1322_s13 = scalar_lea.vmem %s1916_s0, %s1020_s7  ;;  %v1324_v10 = vld [vmem:[%s233_s10] ss:$0 sm:$0xff]  ;;  %s1803_s26 = scalar_lea.vmem %s1921_s5, %s1020_s7 }
  0x12   : > { %v239_v12 = vld [vmem:[%s1322_s13] sm:$0xff]  ;;  %v240_v13 = vld [vmem:[%s1322_s13 + $0x8] sm:$0xff]  ;;  %v241_v14 = vld [vmem:[%s1322_s13 + $0x10] sm:$0xff] }
  0x13   : > { %v242_v17 = vld [vmem:[%s1322_s13 + $0x18] sm:$0xff]  ;;  %v1337_v18 = vadd.f32 %v1324_v10, %v239_v12  ;;  %v1340_v19 = vadd.f32 %v1324_v10, %v240_v13  ;;  %v1343_v20 = vadd.f32 %v1324_v10, %v241_v14  ;;  %v243_v21 = vld [vmem:[%s1322_s13 + $0x20] sm:$0xff]  ;;  %v244_v26 = vld [vmem:[%s1322_s13 + $0x28] sm:$0xff] }
  0x14   : > { %1083 = vmatpush3.bf16.msra.mxu0 %v1082_v7  ;;  %1095 = vmatpush3.bf16.msra.mxu1 %v1082_v7  ;;  %v1349_v24 = vadd.f32 %v1324_v10, %v242_v17  ;;  %v1355_v27 = vadd.f32 %v1324_v10, %v243_v21  ;;  %v245_v30 = vld [vmem:[%s1322_s13 + $0x30] sm:$0xff]  ;;  %v1361_v31 = vadd.f32 %v1324_v10, %v244_v26  ;;  %v246_v33 = vld [vmem:[%s1322_s13 + $0x38] sm:$0xff]  ;;  %v247_v37 = vld [vmem:[%s1322_s13 + $0x40] sm:$0xff] }
  0x15   : > { %1084 = vmatprep.subr.bf16.mxu0 %v1251_v3  ;;  %1096 = vmatprep.subr.bf16.mxu1 %v1251_v3  ;;  %v311_v22 = vsel %vm310_vm1, %v1337_v18, 0.0  ;;  %v312_v25 = vsel %vm310_vm1, %v1340_v19, 0.0  ;;  %v314_v29 = vsel %vm310_vm1, %v1343_v20, 0.0  ;;  %v1367_v35 = vadd.f32 %v1324_v10, %v245_v30  ;;  %v248_v41 = vld [vmem:[%s1322_s13 + $0x48] sm:$0xff]  ;;  %v249_v45 = vld [vmem:[%s1322_s13 + $0x50] sm:$0xff]  ;;  %v250_v49 = vld [vmem:[%s1322_s13 + $0x58] sm:$0xff] }
  0x16   : > { %v313_v28 = vadd.f32 %v312_v25, %v311_v22  ;;  %v316_v32 = vsel %vm310_vm1, %v1349_v24, 0.0  ;;  %v318_v36 = vsel %vm310_vm1, %v1355_v27, 0.0  ;;  %v1373_v39 = vadd.f32 %v1324_v10, %v246_v33  ;;  %v251_v53 = vld [vmem:[%s1322_s13 + $0x60] sm:$0xff]  ;;  %v252_v55 = vld [vmem:[%s1322_s13 + $0x68] sm:$0xff]  ;;  %v253_v61 = vld [vmem:[%s1322_s13 + $0x70] sm:$0xff] }
  0x17   : > { %v320_v40 = vsel %vm310_vm1, %v1361_v31, 0.0  ;;  %v1379_v43 = vadd.f32 %v1324_v10, %v247_v37  ;;  %v322_v44 = vsel %vm310_vm1, %v1367_v35, 0.0  ;;  %v1385_v47 = vadd.f32 %v1324_v10, %v248_v41  ;;  %v254_v0 = vld [vmem:[%s1322_s13 + $0x78] sm:$0xff]  ;;  %v255_v9 = vld [vmem:[%s1322_s13 + $0x80] sm:$0xff]  ;;  %v256_v21 = vld [vmem:[%s1322_s13 + $0x88] sm:$0xff] }
  0x18   : > { %1086 = vmatpush3.bf16.msra.mxu0 %v1085_v11  ;;  %1098 = vmatpush3.bf16.msra.mxu1 %v1085_v11  ;;  %v315_v34 = vadd.f32 %v314_v29, %v313_v28  ;;  %v324_v48 = vsel %vm310_vm1, %v1373_v39, 0.0  ;;  %v1391_v51 = vadd.f32 %v1324_v10, %v249_v45  ;;  %v1398_v56 = vadd.f32 %v1324_v10, %v250_v49  ;;  %v257_v30 = vld [vmem:[%s1322_s13 + $0x90] sm:$0xff]  ;;  %v259_v49 = vld [vmem:[%s1322_s13 + $0xa0] sm:$0xff] }
  0x19   : > { %1087 = vmatprep.subr.bf16.mxu0 %v1251_v3  ;;  %1099 = vmatprep.subr.bf16.mxu1 %v1251_v3  ;;  %v326_v52 = vsel %vm310_vm1, %v1379_v43, 0.0  ;;  %v328_v57 = vsel %vm310_vm1, %v1385_v47, 0.0  ;;  %v1403_v59 = vadd.f32 %v1324_v10, %v251_v53  ;;  %v1409_v62 = vadd.f32 %v1324_v10, %v252_v55 }
  0x1a   : > { %v317_v38 = vadd.f32 %v316_v32, %v315_v34  ;;  %v330_v60 = vsel %vm310_vm1, %v1391_v51, 0.0  ;;  %v332_v1 = vsel %vm310_vm1, %v1398_v56, 0.0  ;;  %v380_v2 = vmul.f32 %v1337_v18, %v1337_v18 }
  0x1b   : > { %v381_v3 = vmul.f32 %v1340_v19, %v1340_v19  ;;  %v382_v4 = vmul.f32 %v1343_v20, %v1343_v20  ;;  %v1421_v6 = vadd.f32 %v1324_v10, %v253_v61  ;;  %v334_v7 = vsel %vm310_vm1, %v1403_v59, 0.0 }
  0x1c   : > { %1089 = vmatpush3.bf16.msra.mxu0 %v1088_v23  ;;  %1101 = vmatpush3.bf16.msra.mxu1 %v1088_v23  ;;  %v319_v42 = vadd.f32 %v318_v36, %v317_v38  ;;  %v383_v8 = vmul.f32 %v1349_v24, %v1349_v24  ;;  %v1429_v11 = vadd.f32 %v1324_v10, %v254_v0  ;;  %v336_v13 = vsel %vm310_vm1, %v1409_v62, 0.0 }
  0x1d   : > { %v384_v14 = vmul.f32 %v1355_v27, %v1355_v27  ;;  %v412_v15 = vsel %vm310_vm1, %v380_v2, 0.0  ;;  %v413_v16 = vsel %vm310_vm1, %v381_v3, 0.0  ;;  %v415_v17 = vsel %vm310_vm1, %v382_v4, 0.0  ;;  %v261_v3 = vld [vmem:[%s1322_s13 + $0xb0] sm:$0xff] }
  0x1e   : > { %v321_v46 = vadd.f32 %v320_v40, %v319_v42  ;;  %v414_v23 = vadd.f32 %v413_v16, %v412_v15  ;;  %v1440_v25 = vadd.f32 %v1324_v10, %v255_v9  ;;  %v338_v26 = vsel %vm310_vm1, %v1421_v6, 0.0  ;;  %v258_v40 = vld [vmem:[%s1322_s13 + $0x98] sm:$0xff] }
  0x1f   : > { %v385_v28 = vmul.f32 %v1361_v31, %v1361_v31  ;;  %v417_v29 = vsel %vm310_vm1, %v383_v8, 0.0  ;;  %v1449_v34 = vadd.f32 %v1324_v10, %v256_v21  ;;  %v340_v36 = vsel %vm310_vm1, %v1429_v11, 0.0 }
  0x20   : > { %v323_v50 = vadd.f32 %v322_v44, %v321_v46  ;;  %v416_v33 = vadd.f32 %v415_v17, %v414_v23  ;;  %v386_v37 = vmul.f32 %v1367_v35, %v1367_v35  ;;  %v419_v38 = vsel %vm310_vm1, %v384_v14, 0.0  ;;  %v263_v23 = vld [vmem:[%s1322_s13 + $0xc0] sm:$0xff] }
  0x21   : > { %v1458_v44 = vadd.f32 %v1324_v10, %v257_v30  ;;  %v342_v45 = vsel %vm310_vm1, %v1440_v25, 0.0  ;;  %v387_v46 = vmul.f32 %v1373_v39, %v1373_v39  ;;  %v1467_v53 = vadd.f32 %v1324_v10, %v258_v40 }
  0x22   : > { %v325_v54 = vadd.f32 %v324_v48, %v323_v50  ;;  %v418_v42 = vadd.f32 %v417_v29, %v416_v33  ;;  %v421_v48 = vsel %vm310_vm1, %v385_v28, 0.0  ;;  %v388_v55 = vmul.f32 %v1379_v43, %v1379_v43 }
  0x23   : > { %v346_v0 = vsel %vm310_vm1, %v1458_v44, 0.0  ;;  %v425_v2 = vsel %vm310_vm1, %v387_v46, 0.0  ;;  %v348_v8 = vsel %vm310_vm1, %v1467_v53, 0.0  ;;  %v390_v9 = vmul.f32 %v1391_v51, %v1391_v51  ;;  %v265_v46 = vld [vmem:[%s1322_s13 + $0xd0] sm:$0xff] }
  0x24   : > { %v327_v58 = vadd.f32 %v326_v52, %v325_v54  ;;  %v420_v52 = vadd.f32 %v419_v38, %v418_v42  ;;  %v344_v54 = vsel %vm310_vm1, %v1449_v34, 0.0  ;;  %v1494_v16 = vadd.f32 %v1324_v10, %v261_v3  ;;  %v267_v3 = vld [vmem:[%s1322_s13 + $0xe0] sm:$0xff] }
  0x25   : > { %v391_v21 = vmul.f32 %v1398_v56, %v1398_v56  ;;  %v431_v33 = vsel %vm310_vm1, %v390_v9, 0.0  ;;  %v1512_v40 = vadd.f32 %v1324_v10, %v263_v23  ;;  %v393_v42 = vmul.f32 %v1409_v62, %v1409_v62 }
  0x26   : > { %v329_v63 = vadd.f32 %v328_v57, %v327_v58  ;;  %v423_v57 = vsel %vm310_vm1, %v386_v37, 0.0  ;;  %v260_v58 = vld [vmem:[%s1322_s13 + $0xa8] sm:$0xff]  ;;  %v422_v61 = vadd.f32 %v421_v48, %v420_v52  ;;  %v397_v23 = vmul.f32 %v1449_v34, %v1449_v34 }
  0x28   : > { %v331_v5 = vadd.f32 %v330_v60, %v329_v63  ;;  %v1476_v63 = vadd.f32 %v1324_v10, %v259_v49 }
  0x2a   : > { %v333_v12 = vadd.f32 %v332_v1, %v331_v5  ;;  %v389_v1 = vmul.f32 %v1385_v47, %v1385_v47  ;;  %v424_v5 = vadd.f32 %v423_v57, %v422_v61  ;;  %v350_v17 = vsel %vm310_vm1, %v1476_v63, 0.0  ;;  %v266_v57 = vld [vmem:[%s1322_s13 + $0xd8] sm:$0xff] }
  0x2b   : > { %v1530_v61 = vadd.f32 %v1324_v10, %v265_v46 }
  0x2c   : > { %v335_v22 = vadd.f32 %v334_v7, %v333_v12  ;;  %v1485_v7 = vadd.f32 %v1324_v10, %v260_v58  ;;  %v427_v12 = vsel %vm310_vm1, %v388_v55, 0.0  ;;  %v426_v15 = vadd.f32 %v425_v2, %v424_v5 }
  0x2d   : > { %v437_v2 = vsel %vm310_vm1, %v393_v42, 0.0 }
  0x2e   : > { %v337_v32 = vadd.f32 %v336_v13, %v335_v22  ;;  %v262_v13 = vld [vmem:[%s1322_s13 + $0xb8] sm:$0xff]  ;;  %v429_v22 = vsel %vm310_vm1, %v389_v1, 0.0  ;;  %v428_v28 = vadd.f32 %v427_v12, %v426_v15  ;;  %v352_v30 = vsel %vm310_vm1, %v1485_v7, 0.0 }
  0x2f   : > { %v1503_v29 = vadd.f32 %v1324_v10, %v262_v13  ;;  %v395_v1 = vmul.f32 %v1429_v11, %v1429_v11  ;;  %v396_v12 = vmul.f32 %v1440_v25, %v1440_v25 }
  0x30   : > { %v339_v41 = vadd.f32 %v338_v26, %v337_v32  ;;  %v392_v32 = vmul.f32 %v1403_v59, %v1403_v59  ;;  %v430_v38 = vadd.f32 %v429_v22, %v428_v28  ;;  %v362_v22 = vsel %vm310_vm1, %v1530_v61, 0.0  ;;  %v269_v28 = vld [vmem:[%s1322_s13 + $0xf0] sm:$0xff] }
  0x31   : > { %v356_v52 = vsel %vm310_vm1, %v1503_v29, 0.0  ;;  %v1566_v46 = vadd.f32 %v1324_v10, %v269_v28 }
  0x32   : > { %v341_v50 = vadd.f32 %v340_v36, %v339_v41  ;;  %v264_v36 = vld [vmem:[%s1322_s13 + $0xc8] sm:$0xff]  ;;  %v354_v41 = vsel %vm310_vm1, %v1494_v16, 0.0  ;;  %v432_v49 = vadd.f32 %v431_v33, %v430_v38  ;;  %v435_v55 = vsel %vm310_vm1, %v392_v32, 0.0 }
  0x33   : > { %v443_v38 = vsel %vm310_vm1, %v396_v12, 0.0 }
  0x34   : > { %v343_v60 = vadd.f32 %v342_v45, %v341_v50  ;;  %v433_v45 = vsel %vm310_vm1, %v391_v21, 0.0  ;;  %v1521_v50 = vadd.f32 %v1324_v10, %v264_v36  ;;  %v1548_v21 = vadd.f32 %v1324_v10, %v267_v3 }
  0x35   : > { %v370_v3 = vsel %vm310_vm1, %v1566_v46, 0.0 }
  0x36   : > { %v345_v4 = vadd.f32 %v344_v54, %v343_v60  ;;  %v394_v54 = vmul.f32 %v1421_v6, %v1421_v6  ;;  %v434_v60 = vadd.f32 %v433_v45, %v432_v49  ;;  %v360_v9 = vsel %vm310_vm1, %v1521_v50, 0.0 }
  0x37   : > { %v399_v49 = vmul.f32 %v1467_v53, %v1467_v53 }
  0x38   : > { %v347_v14 = vadd.f32 %v346_v0, %v345_v4  ;;  %v358_v0 = vsel %vm310_vm1, %v1512_v40, 0.0  ;;  %v436_v5 = vadd.f32 %v435_v55, %v434_v60  ;;  %v439_v13 = vsel %vm310_vm1, %v394_v54, 0.0 }
  0x39   : > { %v400_v60 = vmul.f32 %v1476_v63, %v1476_v63 }
  0x3a   : > { %v349_v26 = vadd.f32 %v348_v8, %v347_v14  ;;  %v1539_v8 = vadd.f32 %v1324_v10, %v266_v57  ;;  %v268_v14 = vld [vmem:[%s1322_s13 + $0xe8] sm:$0xff] }
  0x3b   : > { %v1557_v33 = vadd.f32 %v1324_v10, %v268_v14  ;;  %v451_v14 = vsel %vm310_vm1, %v400_v60, 0.0 }
  0x3c   : > { %v351_v37 = vadd.f32 %v350_v17, %v349_v26  ;;  %v438_v17 = vadd.f32 %v437_v2, %v436_v5  ;;  %v441_v26 = vsel %vm310_vm1, %v395_v1, 0.0  ;;  %v364_v36 = vsel %vm310_vm1, %v1539_v8, 0.0 }
  0x3d   : > { %v449_v5 = vsel %vm310_vm1, %v399_v49, 0.0 }
  0x3e   : > { %v353_v48 = vadd.f32 %v352_v30, %v351_v37  ;;  %v440_v32 = vadd.f32 %v439_v13, %v438_v17  ;;  %v398_v37 = vmul.f32 %v1458_v44, %v1458_v44  ;;  %v402_v13 = vmul.f32 %v1494_v16, %v1494_v16 }
  0x40   : > { %v355_v58 = vadd.f32 %v354_v41, %v353_v48  ;;  %v270_v41 = vld [vmem:[%s1322_s13 + $0xf8] sm:$0xff]  ;;  %v442_v45 = vadd.f32 %v441_v26, %v440_v32  ;;  %v366_v48 = vsel %vm310_vm1, %v1548_v21, 0.0  ;;  %v455_v32 = vsel %vm310_vm1, %v402_v13, 0.0 }
  0x41   : > { %v1574_v57 = vadd.f32 %v1324_v10, %v270_v41  ;;  %v410_v13 = vmul.f32 %v1566_v46, %v1566_v46 }
  0x42   : > { %v357_v4 = vadd.f32 %v356_v52, %v355_v58  ;;  %v445_v52 = vsel %vm310_vm1, %v397_v23, 0.0  ;;  %v444_v55 = vadd.f32 %v443_v38, %v442_v45  ;;  %v368_v58 = vsel %vm310_vm1, %v1557_v33, 0.0 }
  0x43   : > { %v372_v12 = vsel %vm310_vm1, %v1574_v57, 0.0  ;;  %v405_v38 = vmul.f32 %v1521_v50, %v1521_v50 }
  0x44   : > { %v359_v15 = vadd.f32 %v358_v0, %v357_v4  ;;  %v447_v0 = vsel %vm310_vm1, %v398_v37, 0.0  ;;  %v446_v2 = vadd.f32 %v445_v52, %v444_v55  ;;  %v401_v4 = vmul.f32 %v1485_v7, %v1485_v7 }
  0x45   : > { %v407_v55 = vmul.f32 %v1539_v8, %v1539_v8 }
  0x46   : > { %v361_v30 = vadd.f32 %v360_v9, %v359_v15  ;;  %v448_v9 = vadd.f32 %v447_v0, %v446_v2  ;;  %v453_v23 = vsel %vm310_vm1, %v401_v4, 0.0 }
  0x48   : > { %v363_v42 = vadd.f32 %v362_v22, %v361_v30  ;;  %v450_v17 = vadd.f32 %v449_v5, %v448_v9  ;;  %v403_v22 = vmul.f32 %v1503_v29, %v1503_v29  ;;  %v404_v30 = vmul.f32 %v1512_v40, %v1512_v40 }
  0x49   : > { %v409_v5 = vmul.f32 %v1557_v33, %v1557_v33 }
  0x4a   : > { %v365_v54 = vadd.f32 %v364_v36, %v363_v42  ;;  %v452_v28 = vadd.f32 %v451_v14, %v450_v17  ;;  %v457_v41 = vsel %vm310_vm1, %v403_v22, 0.0  ;;  %v459_v49 = vsel %vm310_vm1, %v404_v30, 0.0 }
  0x4b   : > { %v411_v17 = vmul.f32 %v1574_v57, %v1574_v57  ;;  %v469_v22 = vsel %vm310_vm1, %v409_v5, 0.0 }
  0x4c   : > { %v367_v1 = vadd.f32 %v366_v48, %v365_v54  ;;  %v454_v37 = vadd.f32 %v453_v23, %v452_v28  ;;  %v406_v48 = vmul.f32 %v1530_v61, %v1530_v61 }
  0x4d   : > { %v473_v30 = vsel %vm310_vm1, %v411_v17, 0.0 }
  0x4e   : > { %v369_v10 = vadd.f32 %v368_v58, %v367_v1  ;;  %v456_v45 = vadd.f32 %v455_v32, %v454_v37  ;;  %v461_v58 = vsel %vm310_vm1, %v405_v38, 0.0  ;;  %v408_v1 = vmul.f32 %v1548_v21, %v1548_v21 }
  0x4f   : > { %v463_v2 = vsel %vm310_vm1, %v406_v48, 0.0 }
  0x50   : > { %v371_v15 = vadd.f32 %v370_v3, %v369_v10  ;;  %v458_v54 = vadd.f32 %v457_v41, %v456_v45  ;;  %v465_v10 = vsel %vm310_vm1, %v407_v55, 0.0  ;;  %v467_v14 = vsel %vm310_vm1, %v408_v1, 0.0 }
  0x51   : > { %v644_v1 = vlaneseq }
  0x52   : > { %v373_v26 = vadd.f32 %v372_v12, %v371_v15  ;;  %v460_v0 = vadd.f32 %v459_v49, %v458_v54 }
  0x54   : > { %v374_v36 = vrot.slane %v373_v26, 4  ;;  %v462_v4 = vadd.f32 %v461_v58, %v460_v0 }
  0x56   : > { %v375_v42 = vadd.f32 %v374_v36, %v373_v26  ;;  %v464_v12 = vadd.f32 %v463_v2, %v462_v4  ;;  %v471_v26 = vsel %vm310_vm1, %v410_v13, 0.0  ;;  %v645_v2 = vshrl.u32 %v644_v1, 7 }
  0x58   : > { %v376_v52 = vrot.slane %v375_v42, 2  ;;  %v466_v15 = vadd.f32 %v465_v10, %v464_v12  ;;  %v646_v4 = vsub.s32 0, %v645_v2 }
  0x5a   : > { %v377_v60 = vadd.f32 %v376_v52, %v375_v42  ;;  %v468_v23 = vadd.f32 %v467_v14, %v466_v15 }
  0x5c   : > { %v378_v3 = vrot.slane %v377_v60, 1  ;;  %v470_v28 = vadd.f32 %v469_v22, %v468_v23 }
  0x5e   : > { %v379_v9 = vadd.f32 %v378_v3, %v377_v60  ;;  %v472_v32 = vadd.f32 %v471_v26, %v470_v28  ;;  %v639_v3 = vld [vmem:[%s1917_s1] sm:$0x1] }
  0x60   : > { %1057 = vmatmul.mubr.msk.f32.vlgmr.msra.gmra.mrb[0].mxu0 %vm310_vm1, %v379_v9  ;;  %v474_v36 = vadd.f32 %v473_v30, %v472_v32  ;;  %v641_v9 = vld [vmem:[%s1918_s2] sm:$0x1] }
  0x62   : > { %v475_v37 = vrot.slane %v474_v36, 4 }
  0x64   : > { %v476_v38 = vadd.f32 %v475_v37, %v474_v36 }
  0x66   : > { %v477_v41 = vrot.slane %v476_v38, 2 }
  0x68   : > { %v478_v42 = vadd.f32 %v477_v41, %v476_v38 }
  0x6a   : > { %v479_v45 = vrot.slane %v478_v42, 1 }
  0x6c   : > { %v480_v48 = vadd.f32 %v479_v45, %v478_v42 }
  0x6e   : > { %1076 = vmatmul.mubr.msk.f32.vlgmr.msra.gmra.mrb[0].mxu1 %vm310_vm1, %v480_v48 }
 0x133   : > { %v558_v49 = vpop.f32.mrb[0].mxu0 }
 0x134   : > { %v1058_v52 = vpop.f32.mrb[1].mxu0  ;;  %v635_v54 = vmul.f32 %v558_v49, %v558_v49 }
 0x141   : > { %v631_v55 = vpop.f32.mrb[0].mxu1 }
 0x142   : > { %v636_v58 = vsub.f32 %v631_v55, %v635_v54  ;;  %v1077_v60 = vpop.f32.mrb[1].mxu1 }
 0x144   : > { %v637_v0 = vadd.f32 1e-05, %v636_v58 }
 0x146   : > { %1113 = vrsqrt.f32 %v637_v0 }
 0x150   : > { %v1114_v5 = vpop.eup %1113 }
 0x151   : > { %v640_v10 = vmul.f32 %v1114_v5, %v639_v3 }
 0x153   : > { %v642_v12 = vmul.f32 %v640_v10, %v558_v49  ;;  %v647_v13 = vrot.slane %v640_v10, %v646_v4 }
 0x155   : > { %v643_v14 = vsub.f32 %v641_v9, %v642_v12  ;;  %v648_v15 = vmul.f32 %v647_v13, %v1337_v18  ;;  %v649_v17 = vmul.f32 %v647_v13, %v1340_v19  ;;  %v650_v22 = vmul.f32 %v647_v13, %v1343_v20 }
 0x156   : > { %v651_v23 = vmul.f32 %v647_v13, %v1349_v24  ;;  %v652_v26 = vmul.f32 %v647_v13, %v1355_v27  ;;  %v653_v28 = vmul.f32 %v647_v13, %v1361_v31  ;;  %v654_v30 = vmul.f32 %v647_v13, %v1367_v35 }
 0x157   : > { %v655_v32 = vmul.f32 %v647_v13, %v1373_v39  ;;  %v656_v36 = vmul.f32 %v647_v13, %v1379_v43  ;;  %v657_v37 = vmul.f32 %v647_v13, %v1385_v47  ;;  %v658_v18 = vmul.f32 %v647_v13, %v1391_v51 }
 0x158   : > { %v659_v19 = vmul.f32 %v647_v13, %v1398_v56  ;;  %v660_v20 = vmul.f32 %v647_v13, %v1403_v59  ;;  %v661_v24 = vmul.f32 %v647_v13, %v1409_v62  ;;  %v662_v27 = vmul.f32 %v647_v13, %v1421_v6 }
 0x159   : > { %v663_v31 = vmul.f32 %v647_v13, %v1429_v11  ;;  %v664_v35 = vmul.f32 %v647_v13, %v1440_v25  ;;  %v665_v39 = vmul.f32 %v647_v13, %v1449_v34  ;;  %v666_v43 = vmul.f32 %v647_v13, %v1458_v44 }
 0x15a   : > { %v667_v47 = vmul.f32 %v647_v13, %v1467_v53  ;;  %v668_v51 = vmul.f32 %v647_v13, %v1476_v63  ;;  %v669_v56 = vmul.f32 %v647_v13, %v1485_v7  ;;  %v670_v59 = vmul.f32 %v647_v13, %v1494_v16 }
 0x15b   : > { %v671_v62 = vmul.f32 %v647_v13, %v1503_v29  ;;  %v672_v6 = vmul.f32 %v647_v13, %v1512_v40  ;;  %v673_v11 = vmul.f32 %v647_v13, %v1521_v50  ;;  %v674_v25 = vmul.f32 %v647_v13, %v1530_v61 }
 0x15c   : > { %v675_v34 = vmul.f32 %v647_v13, %v1539_v8  ;;  %v684_v38 = vrot.slane %v643_v14, %v646_v4  ;;  %v676_v44 = vmul.f32 %v647_v13, %v1548_v21  ;;  %v677_v53 = vmul.f32 %v647_v13, %v1557_v33 }
 0x15d   : > { %v678_v63 = vmul.f32 %v647_v13, %v1566_v46  ;;  %v679_v7 = vmul.f32 %v647_v13, %v1574_v57 }
 0x15e   : > { %v1660_v16 = vadd.f32 %v684_v38, %v648_v15  ;;  %v1662_v29 = vadd.f32 %v684_v38, %v649_v17  ;;  %v1664_v40 = vadd.f32 %v684_v38, %v650_v22  ;;  %v1666_v50 = vadd.f32 %v684_v38, %v651_v23 }
 0x15f   : > { %v1668_v61 = vadd.f32 %v684_v38, %v652_v26  ;;  %v1670_v8 = vadd.f32 %v684_v38, %v653_v28  ;;  %v1672_v41 = vadd.f32 %v684_v38, %v654_v30  ;;  %v1674_v21 = vadd.f32 %v684_v38, %v655_v32 }
 0x160   : > { %v1676_v33 = vadd.f32 %v684_v38, %v656_v36  ;;  %v1678_v46 = vadd.f32 %v684_v38, %v657_v37  ;;  %v1680_v57 = vadd.f32 %v684_v38, %v658_v18  ;;  %v1682_v42 = vadd.f32 %v684_v38, %v659_v19 }
 0x161   : > { %v1684_v45 = vadd.f32 %v684_v38, %v660_v20  ;;  %v1686_v48 = vadd.f32 %v684_v38, %v661_v24  ;;  %v1688_v49 = vadd.f32 %v684_v38, %v662_v27  ;;  %v1690_v52 = vadd.f32 %v684_v38, %v663_v31 }
 0x162   : > { %v1692_v54 = vadd.f32 %v684_v38, %v664_v35  ;;  %v1694_v55 = vadd.f32 %v684_v38, %v665_v39  ;;  %v1696_v58 = vadd.f32 %v684_v38, %v666_v43  ;;  %v1698_v60 = vadd.f32 %v684_v38, %v667_v47 }
 0x163   : > { %v1700_v0 = vadd.f32 %v684_v38, %v668_v51  ;;  %v1702_v1 = vadd.f32 %v684_v38, %v669_v56  ;;  %v1704_v2 = vadd.f32 %v684_v38, %v670_v59  ;;  %v1706_v3 = vadd.f32 %v684_v38, %v671_v62 }
 0x164   : > { %v1708_v4 = vadd.f32 %v684_v38, %v672_v6  ;;  %v1710_v5 = vadd.f32 %v684_v38, %v673_v11  ;;  %v1712_v10 = vadd.f32 %v684_v38, %v674_v25  ;;  %v1714_v9 = vadd.f32 %v684_v38, %v675_v34 }
 0x165   : > { %v1716_v12 = vadd.f32 %v684_v38, %v676_v44  ;;  %v1718_v13 = vadd.f32 %v684_v38, %v677_v53  ;;  %v1720_v14 = vadd.f32 %v684_v38, %v678_v63  ;;  %v1722_v15 = vadd.f32 %v684_v38, %v679_v7 }
 0x166   : > { %v718_v17 = vsub.f32 0.0, %v1660_v16  ;;  %v719_v22 = vsub.f32 0.0, %v1662_v29  ;;  %v720_v23 = vsub.f32 0.0, %v1664_v40  ;;  %v721_v26 = vsub.f32 0.0, %v1666_v50 }
 0x167   : > { %1925 = vst [vmem:[#allocation2_spill] sm:$0xff] %v1716_v12  ;;  %1926 = vst [vmem:[#allocation3_spill] sm:$0xff] %v1718_v13  ;;  %v722_v28 = vsub.f32 0.0, %v1668_v61  ;;  %v723_v30 = vsub.f32 0.0, %v1670_v8  ;;  %v724_v32 = vsub.f32 0.0, %v1672_v41  ;;  %v725_v19 = vsub.f32 0.0, %v1674_v21 }
 0x168   : > { %1927 = vst [vmem:[#allocation4_spill] sm:$0xff] %v1720_v14  ;;  %v750_v36 = vmul.f32 1.442695, %v718_v17  ;;  %v752_v37 = vmul.f32 1.442695, %v719_v22  ;;  %v726_v24 = vsub.f32 0.0, %v1676_v33 }
 0x169   : > { %v754_v18 = vmul.f32 1.442695, %v720_v23  ;;  %v756_v20 = vmul.f32 1.442695, %v721_v26  ;;  %v758_v27 = vmul.f32 1.442695, %v722_v28 }
 0x16a   : > { %1115 = vpow2.f32 %v750_v36  ;;  %v727_v31 = vsub.f32 0.0, %v1678_v46  ;;  %v760_v35 = vmul.f32 1.442695, %v723_v30  ;;  %v728_v39 = vsub.f32 0.0, %v1680_v57 }
 0x16b   : > { %1117 = vpow2.f32 %v752_v37  ;;  %v762_v43 = vmul.f32 1.442695, %v724_v32  ;;  %v729_v47 = vsub.f32 0.0, %v1682_v42  ;;  %v764_v51 = vmul.f32 1.442695, %v725_v19 }
 0x16c   : > { %1119 = vpow2.f32 %v754_v18  ;;  %v730_v56 = vsub.f32 0.0, %v1684_v45  ;;  %v766_v59 = vmul.f32 1.442695, %v726_v24  ;;  %v731_v62 = vsub.f32 0.0, %v1686_v48 }
 0x16d   : > { %1121 = vpow2.f32 %v756_v20  ;;  %v768_v6 = vmul.f32 1.442695, %v727_v31  ;;  %v732_v11 = vsub.f32 0.0, %v1688_v49  ;;  %v770_v25 = vmul.f32 1.442695, %v728_v39 }
 0x16e   : > { %1123 = vpow2.f32 %v758_v27  ;;  %v733_v34 = vsub.f32 0.0, %v1690_v52  ;;  %v772_v38 = vmul.f32 1.442695, %v729_v47  ;;  %v734_v44 = vsub.f32 0.0, %v1692_v54 }
 0x16f   : > { %1125 = vpow2.f32 %v760_v35  ;;  %v774_v53 = vmul.f32 1.442695, %v730_v56  ;;  %v735_v63 = vsub.f32 0.0, %v1694_v55  ;;  %v776_v7 = vmul.f32 1.442695, %v731_v62 }
 0x170   : > { %1127 = vpow2.f32 %v762_v43  ;;  %v736_v22 = vsub.f32 0.0, %v1696_v58  ;;  %v778_v23 = vmul.f32 1.442695, %v732_v11  ;;  %v737_v28 = vsub.f32 0.0, %v1698_v60 }
 0x171   : > { %1129 = vpow2.f32 %v764_v51  ;;  %v780_v30 = vmul.f32 1.442695, %v733_v34  ;;  %v738_v36 = vsub.f32 0.0, %v1700_v0  ;;  %v782_v37 = vmul.f32 1.442695, %v734_v44 }
 0x172   : > { %1131 = vpow2.f32 %v766_v59  ;;  %v739_v19 = vsub.f32 0.0, %v1702_v1  ;;  %v784_v20 = vmul.f32 1.442695, %v735_v63  ;;  %v740_v27 = vsub.f32 0.0, %v1704_v2 }
 0x173   : > { %1133 = vpow2.f32 %v768_v6  ;;  %v786_v31 = vmul.f32 1.442695, %v736_v22  ;;  %v741_v39 = vsub.f32 0.0, %v1706_v3  ;;  %v788_v43 = vmul.f32 1.442695, %v737_v28 }
 0x174   : > { %v1742_v17 = vpop.eup %1115  ;;  %1135 = vpow2.f32 %v770_v25  ;;  %v742_v51 = vsub.f32 0.0, %v1708_v4  ;;  %v790_v56 = vmul.f32 1.442695, %v738_v36  ;;  %v743_v62 = vsub.f32 0.0, %v1710_v5 }
 0x175   : > { %v1745_v26 = vpop.eup %1117  ;;  %1137 = vpow2.f32 %v772_v38  ;;  %v792_v6 = vmul.f32 1.442695, %v739_v19  ;;  %v744_v25 = vsub.f32 0.0, %v1712_v10  ;;  %v794_v34 = vmul.f32 1.442695, %v740_v27 }
 0x176   : > { %v1748_v32 = vpop.eup %1119  ;;  %1139 = vpow2.f32 %v774_v53  ;;  %v745_v44 = vsub.f32 0.0, %v1714_v9  ;;  %v796_v53 = vmul.f32 1.442695, %v741_v39  ;;  %v798_v22 = vmul.f32 1.442695, %v742_v51 }
 0x177   : > { %v1751_v18 = vpop.eup %1121  ;;  %1141 = vpow2.f32 %v776_v7  ;;  %v746_v7 = vsub.f32 0.0, %v1716_v12  ;;  %v747_v28 = vsub.f32 0.0, %v1718_v13  ;;  %v802_v19 = vmul.f32 1.442695, %v744_v25 }
 0x178   : > { %v1754_v24 = vpop.eup %1123  ;;  %1143 = vpow2.f32 %v778_v23  ;;  %v749_v27 = vsub.f32 0.0, %v1722_v15  ;;  %v814_v25 = vadd.f32 1.0, %v1742_v17 }
 0x179   : > { %v1757_v35 = vpop.eup %1125  ;;  %1145 = vpow2.f32 %v780_v30  ;;  %v800_v30 = vmul.f32 1.442695, %v743_v62  ;;  %v808_v51 = vmul.f32 1.442695, %v747_v28  ;;  %v817_v28 = vadd.f32 1.0, %v1751_v18 }
 0x17a   : > { %v1128_v47 = vpop.eup %1127  ;;  %1147 = vpow2.f32 %v782_v37  ;;  %v748_v37 = vsub.f32 0.0, %v1720_v14  ;;  %v812_v13 = vmul.f32 1.442695, %v749_v27 }
 0x17b   : > { %v1130_v59 = vpop.eup %1129  ;;  %1149 = vpow2.f32 %v784_v20  ;;  %v820_v27 = vadd.f32 1.0, %v1128_v47 }
 0x17c   : > { %v1132_v11 = vpop.eup %1131  ;;  %1151 = vpow2.f32 %v786_v31  ;;  %v804_v31 = vmul.f32 1.442695, %v745_v44  ;;  %v815_v44 = vadd.f32 1.0, %v1745_v26 }
 0x17d   : > { %v1134_v38 = vpop.eup %1133  ;;  %1153 = vpow2.f32 %v788_v43  ;;  %v806_v43 = vmul.f32 1.442695, %v746_v7  ;;  %v816_v7 = vadd.f32 1.0, %v1748_v32  ;;  %v822_v18 = vadd.f32 1.0, %v1132_v11 }
 0x17e   : > { %v1136_v63 = vpop.eup %1135  ;;  %1155 = vpow2.f32 %v790_v56 }
 0x17f   : > { %v1138_v23 = vpop.eup %1137  ;;  %1157 = vpow2.f32 %v792_v6  ;;  %v810_v6 = vmul.f32 1.442695, %v748_v37  ;;  %v818_v37 = vadd.f32 1.0, %v1754_v24  ;;  %v823_v24 = vadd.f32 1.0, %v1134_v38 }
 0x180   : > { %v1140_v36 = vpop.eup %1139  ;;  %1159 = vpow2.f32 %v794_v34  ;;  %v825_v47 = vadd.f32 1.0, %v1138_v23 }
 0x181   : > { %v1142_v20 = vpop.eup %1141  ;;  %1161 = vpow2.f32 %v796_v53 }
 0x182   : > { %v1144_v39 = vpop.eup %1143  ;;  %1163 = vpow2.f32 %v798_v22  ;;  %v827_v11 = vadd.f32 1.0, %v1142_v20 }
 0x183   : > { %v1146_v56 = vpop.eup %1145  ;;  %1165 = vpow2.f32 %v800_v30  ;;  %v828_v38 = vadd.f32 1.0, %v1144_v39 }
 0x184   : > { %v1148_v12 = vpop.eup %1147  ;;  %1167 = vpow2.f32 %v802_v19  ;;  %v819_v19 = vadd.f32 1.0, %v1757_v35  ;;  %v824_v35 = vadd.f32 1.0, %v1136_v63  ;;  %v829_v23 = vadd.f32 1.0, %v1146_v56 }
 0x185   : > { %v1150_v62 = vpop.eup %1149  ;;  %1169 = vpow2.f32 %v804_v31  ;;  %v821_v31 = vadd.f32 1.0, %v1130_v59  ;;  %v826_v59 = vadd.f32 1.0, %v1140_v36 }
 0x186   : > { %v1152_v14 = vpop.eup %1151  ;;  %1171 = vpow2.f32 %v806_v43 }
 0x187   : > { %v1154_v34 = vpop.eup %1153  ;;  %1173 = vpow2.f32 %v808_v51  ;;  %v832_v56 = vadd.f32 1.0, %v1152_v14 }
 0x188   : > { %v1770_v53 = vpop.eup %1155  ;;  %1175 = vpow2.f32 %v810_v6 }
 0x189   : > { %v1773_v22 = vpop.eup %1157  ;;  %1177 = vpow2.f32 %v812_v13 }
 0x18a   : > { %v1776_v30 = vpop.eup %1159  ;;  %1179 = vrcp.f32 %v814_v25 }
 0x18b   : > { %v1779_v17 = vpop.eup %1161  ;;  %1181 = vrcp.f32 %v815_v44 }
 0x18c   : > { %v1782_v26 = vpop.eup %1163  ;;  %1183 = vrcp.f32 %v816_v7 }
 0x18d   : > { %v1784_v32 = vpop.eup %1165  ;;  %1185 = vrcp.f32 %v817_v28 }
 0x18e   : > { %v1786_v13 = vpop.eup %1167  ;;  %1187 = vrcp.f32 %v818_v37  ;;  %v830_v37 = vadd.f32 1.0, %v1148_v12  ;;  %v833_v12 = vadd.f32 1.0, %v1154_v34 }
 0x18f   : > { %v1788_v43 = vpop.eup %1169  ;;  %1189 = vrcp.f32 %v819_v19 }
 0x190   : > { %v1790_v51 = vpop.eup %1171  ;;  %1191 = vrcp.f32 %v820_v27  ;;  %v831_v27 = vadd.f32 1.0, %v1150_v62  ;;  %v834_v62 = vadd.f32 1.0, %v1770_v53 }
 0x191   : > { %v1792_v6 = vpop.eup %1173  ;;  %1193 = vrcp.f32 %v821_v31 }
 0x192   : > { %v1794_v25 = vpop.eup %1175  ;;  %1195 = vrcp.f32 %v822_v18 }
 0x193   : > { %v1796_v44 = vpop.eup %1177  ;;  %1197 = vrcp.f32 %v823_v24  ;;  %v835_v24 = vadd.f32 1.0, %v1773_v22 }
 0x194   : > { %v1180_v7 = vpop.eup %1179  ;;  %1199 = vrcp.f32 %v824_v35  ;;  %v836_v35 = vadd.f32 1.0, %v1776_v30 }
 0x195   : > { %v1182_v63 = vpop.eup %1181  ;;  %1201 = vrcp.f32 %v825_v47  ;;  %v878_v36 = vmul.f32 %v1180_v7, %v1660_v16  ;;  %v837_v47 = vadd.f32 1.0, %v1779_v17  ;;  %v840_v7 = vadd.f32 1.0, %v1786_v13 }
 0x196   : > { %v1184_v28 = vpop.eup %1183  ;;  %1203 = vrcp.f32 %v826_v59  ;;  %v879_v20 = vmul.f32 %v1182_v63, %v1662_v29  ;;  %v838_v59 = vadd.f32 1.0, %v1782_v26  ;;  %v842_v63 = vadd.f32 1.0, %v1790_v51 }
 0x197   : > { %v1186_v19 = vpop.eup %1185  ;;  %1205 = vrcp.f32 %v827_v11  ;;  %v880_v31 = vmul.f32 %v1184_v28, %v1664_v40  ;;  %910 = vst.msk [vmem:[%s1803_s26] sm:$0xff] %vm310_vm1, %v878_v36  ;;  %v839_v11 = vadd.f32 1.0, %v1784_v32  ;;  %v844_v36 = vadd.f32 1.0, %v1794_v25 }
 0x198   : > { %v1188_v39 = vpop.eup %1187  ;;  %1207 = vrcp.f32 %v828_v38  ;;  %v881_v18 = vmul.f32 %v1186_v19, %v1666_v50  ;;  %911 = vst.msk [vmem:[%s1803_s26 + $0x8] sm:$0xff] %vm310_vm1, %v879_v20  ;;  %v841_v38 = vadd.f32 1.0, %v1788_v43  ;;  %v845_v28 = vadd.f32 1.0, %v1796_v44 }
 0x199   : > { %v1190_v16 = vpop.eup %1189  ;;  %1209 = vrcp.f32 %v829_v23  ;;  %v882_v29 = vmul.f32 %v1188_v39, %v1668_v61  ;;  %912 = vst.msk [vmem:[%s1803_s26 + $0x10] sm:$0xff] %vm310_vm1, %v880_v31  ;;  %v843_v23 = vadd.f32 1.0, %v1792_v6 }
 0x19a   : > { %v1192_v40 = vpop.eup %1191  ;;  %1211 = vrcp.f32 %v830_v37  ;;  %v883_v14 = vmul.f32 %v1190_v16, %v1670_v8  ;;  %913 = vst.msk [vmem:[%s1803_s26 + $0x18] sm:$0xff] %vm310_vm1, %v881_v18 }
 0x19b   : > { %v1194_v50 = vpop.eup %1193  ;;  %1213 = vrcp.f32 %v831_v27  ;;  %v884_v34 = vmul.f32 %v1192_v40, %v1672_v41  ;;  %914 = vst.msk [vmem:[%s1803_s26 + $0x20] sm:$0xff] %vm310_vm1, %v882_v29  ;;  %v1928_v29 = vld [vmem:[#allocation2_spill] sm:$0xff] }
 0x19c   : > { %v1196_v61 = vpop.eup %1195  ;;  %1215 = vrcp.f32 %v832_v56  ;;  %v885_v53 = vmul.f32 %v1194_v50, %v1674_v21  ;;  %915 = vst.msk [vmem:[%s1803_s26 + $0x28] sm:$0xff] %vm310_vm1, %v883_v14  ;;  %v1930_v50 = vld [vmem:[#allocation4_spill] sm:$0xff] }
 0x19d   : > { %v1198_v8 = vpop.eup %1197  ;;  %1217 = vrcp.f32 %v833_v12  ;;  %v886_v22 = vmul.f32 %v1196_v61, %v1676_v33  ;;  %916 = vst.msk [vmem:[%s1803_s26 + $0x30] sm:$0xff] %vm310_vm1, %v884_v34 }
 0x19e   : > { %v1200_v41 = vpop.eup %1199  ;;  %1219 = vrcp.f32 %v834_v62  ;;  %v887_v30 = vmul.f32 %v1198_v8, %v1678_v46  ;;  %917 = vst.msk [vmem:[%s1803_s26 + $0x38] sm:$0xff] %vm310_vm1, %v885_v53  ;;  %v1929_v62 = vld [vmem:[#allocation3_spill] sm:$0xff] }
 0x19f   : > { %v1202_v21 = vpop.eup %1201  ;;  %1221 = vrcp.f32 %v835_v24  ;;  %v888_v17 = vmul.f32 %v1200_v41, %v1680_v57  ;;  %918 = vst.msk [vmem:[%s1803_s26 + $0x40] sm:$0xff] %vm310_vm1, %v886_v22 }
 0x1a0   : > { %v1204_v33 = vpop.eup %1203  ;;  %1223 = vrcp.f32 %v836_v35  ;;  %v889_v26 = vmul.f32 %v1202_v21, %v1682_v42  ;;  %919 = vst.msk [vmem:[%s1803_s26 + $0x48] sm:$0xff] %vm310_vm1, %v887_v30 }
 0x1a1   : > { %v1206_v46 = vpop.eup %1205  ;;  %1225 = vrcp.f32 %v837_v47  ;;  %v890_v32 = vmul.f32 %v1204_v33, %v1684_v45  ;;  %920 = vst.msk [vmem:[%s1803_s26 + $0x50] sm:$0xff] %vm310_vm1, %v888_v17 }
 0x1a2   : > { %v1208_v57 = vpop.eup %1207  ;;  %1227 = vrcp.f32 %v838_v59  ;;  %v891_v13 = vmul.f32 %v1206_v46, %v1686_v48  ;;  %921 = vst.msk [vmem:[%s1803_s26 + $0x58] sm:$0xff] %vm310_vm1, %v889_v26 }
 0x1a3   : > { %v1210_v42 = vpop.eup %1209  ;;  %1229 = vrcp.f32 %v839_v11  ;;  %v892_v43 = vmul.f32 %v1208_v57, %v1688_v49  ;;  %922 = vst.msk [vmem:[%s1803_s26 + $0x60] sm:$0xff] %vm310_vm1, %v890_v32 }
 0x1a4   : > { %v1212_v45 = vpop.eup %1211  ;;  %1231 = vrcp.f32 %v840_v7  ;;  %v893_v51 = vmul.f32 %v1210_v42, %v1690_v52  ;;  %923 = vst.msk [vmem:[%s1803_s26 + $0x68] sm:$0xff] %vm310_vm1, %v891_v13 }
 0x1a5   : > { %v1214_v48 = vpop.eup %1213  ;;  %1233 = vrcp.f32 %v841_v38  ;;  %v894_v6 = vmul.f32 %v1212_v45, %v1692_v54  ;;  %924 = vst.msk [vmem:[%s1803_s26 + $0x70] sm:$0xff] %vm310_vm1, %v892_v43 }
 0x1a6   : > { %v1216_v49 = vpop.eup %1215  ;;  %1235 = vrcp.f32 %v842_v63  ;;  %v895_v25 = vmul.f32 %v1214_v48, %v1694_v55  ;;  %925 = vst.msk [vmem:[%s1803_s26 + $0x78] sm:$0xff] %vm310_vm1, %v893_v51 }
 0x1a7   : > { %v1218_v52 = vpop.eup %1217  ;;  %1237 = vrcp.f32 %v843_v23  ;;  %v896_v37 = vmul.f32 %v1216_v49, %v1696_v58  ;;  %926 = vst.msk [vmem:[%s1803_s26 + $0x80] sm:$0xff] %vm310_vm1, %v894_v6 }
 0x1a8   : > { %v1220_v44 = vpop.eup %1219  ;;  %1239 = vrcp.f32 %v844_v36  ;;  %v897_v54 = vmul.f32 %v1218_v52, %v1698_v60  ;;  %927 = vst.msk [vmem:[%s1803_s26 + $0x88] sm:$0xff] %vm310_vm1, %v895_v25 }
 0x1a9   : > { %v1222_v20 = vpop.eup %1221  ;;  %1241 = vrcp.f32 %v845_v28  ;;  %v898_v55 = vmul.f32 %v1220_v44, %v1700_v0  ;;  %928 = vst.msk [vmem:[%s1803_s26 + $0x90] sm:$0xff] %vm310_vm1, %v896_v37 }
 0x1aa   : > { %v1224_v19 = vpop.eup %1223  ;;  %v899_v58 = vmul.f32 %v1222_v20, %v1702_v1  ;;  %929 = vst.msk [vmem:[%s1803_s26 + $0x98] sm:$0xff] %vm310_vm1, %v897_v54 }
 0x1ab   : > { %v1226_v27 = vpop.eup %1225  ;;  %v900_v31 = vmul.f32 %v1224_v19, %v1704_v2  ;;  %930 = vst.msk [vmem:[%s1803_s26 + $0xa0] sm:$0xff] %vm310_vm1, %v898_v55 }
 0x1ac   : > { %v1228_v60 = vpop.eup %1227  ;;  %v901_v39 = vmul.f32 %v1226_v27, %v1706_v3  ;;  %931 = vst.msk [vmem:[%s1803_s26 + $0xa8] sm:$0xff] %vm310_vm1, %v899_v58 }
 0x1ad   : > { %v1230_v0 = vpop.eup %1229  ;;  %v902_v56 = vmul.f32 %v1228_v60, %v1708_v4  ;;  %932 = vst.msk [vmem:[%s1803_s26 + $0xb0] sm:$0xff] %vm310_vm1, %v900_v31 }
 0x1ae   : > { %v1232_v1 = vpop.eup %1231  ;;  %v903_v18 = vmul.f32 %v1230_v0, %v1710_v5  ;;  %933 = vst.msk [vmem:[%s1803_s26 + $0xb8] sm:$0xff] %vm310_vm1, %v901_v39 }
 0x1af   : > { %v1234_v2 = vpop.eup %1233  ;;  %v904_v16 = vmul.f32 %v1232_v1, %v1712_v10  ;;  %934 = vst.msk [vmem:[%s1803_s26 + $0xc0] sm:$0xff] %vm310_vm1, %v902_v56 }
 0x1b0   : > { %v1236_v3 = vpop.eup %1235  ;;  %v905_v4 = vmul.f32 %v1234_v2, %v1714_v9  ;;  %935 = vst.msk [vmem:[%s1803_s26 + $0xc8] sm:$0xff] %vm310_vm1, %v903_v18 }
 0x1b1   : > { %v1238_v12 = vpop.eup %1237  ;;  %v906_v40 = vmul.f32 %v1236_v3, %v1928_v29  ;;  %936 = vst.msk [vmem:[%s1803_s26 + $0xd0] sm:$0xff] %vm310_vm1, %v904_v16 }
 0x1b2   : > { %v1240_v5 = vpop.eup %1239  ;;  %v907_v14 = vmul.f32 %v1238_v12, %v1929_v62  ;;  %937 = vst.msk [vmem:[%s1803_s26 + $0xd8] sm:$0xff] %vm310_vm1, %v905_v4 }
 0x1b3   : > { %v1242_v10 = vpop.eup %1241  ;;  %v908_v24 = vmul.f32 %v1240_v5, %v1930_v50  ;;  %938 = vst.msk [vmem:[%s1803_s26 + $0xe0] sm:$0xff] %vm310_vm1, %v906_v40 }
 0x1b4   : > { %v909_v34 = vmul.f32 %v1242_v10, %v1722_v15  ;;  %939 = vst.msk [vmem:[%s1803_s26 + $0xe8] sm:$0xff] %vm310_vm1, %v907_v14 }
 0x1b5   : > { %940 = vst.msk [vmem:[%s1803_s26 + $0xf0] sm:$0xff] %vm310_vm1, %v908_v24 }
 0x1b6   : > { %941 = vst.msk [vmem:[%s1803_s26 + $0xf8] sm:$0xff] %vm310_vm1, %v909_v34 }
 0x1b7 PF: > { %s15_s18 = sadd.s32 1, %s1249_s18  }
 0x1b8   : > { %p12_p4 = scmp.ge.s32.totalorder %s15_s18, 4  }
 0x1ba   :  { %14 = sbr.rel (!%p12_p4) target bundleno = 1 (0x1), region = 73 }

// kernel: _lambda_.9
= control target key start
LH: loop header
LB: loop body
LE: loop exit
PB: predicated region body
PF: predicated region fallthrough
CT: control target
= control target key end

     0   :  { %s1180_s12 = smov 0   ;;  %s1182_s13 = smov 0   ;;  %s1330_s0 = inlined_call_operand.vmem [shape: bf16[512,128], index: 0, kind: input, shape index: {}]   ;;  %s1331_s1 = inlined_call_operand.vmem [shape: bf16[128,128], index: 1, kind: input, shape index: {}]   ;;  %s1332_s2 = inlined_call_operand.vmem [shape: f32[1,128], index: 2, kind: input, shape index: {}]   ;;  %s1333_s3 = inlined_call_operand.vmem [shape: f32[512,128], index: 3, kind: output, shape index: {}]  }
   0x1   :  { %s1184_s14 = smov 0  }
   0x2 LB: > { %s32_s15 = sadd.s32 1, %s1154_s13  ;;  %p968_p0 = scmp.ge.s32.totalorder %s1158_s14, 1  ;;  %s1158_s14 = sphi %s1184_s14, %s13_s14   ;;  %s1154_s13 = sphi %s1182_s13, %s1335_s13   ;;  %s1150_s12 = sphi %s1180_s12, %s1334_s12  }
   0x3   : > { %p34_p1 = scmp.ge.s32.totalorder %s32_s15, 2  ;;  %p188_p2 = scmp.lt.s32.totalorder %s1158_s14, 3 }
   0x5   : > { %s1337_s15 = smov (%p34_p1, %s32_s15), 0  ;;  %p189_p3 = pnand %p968_p0, %p188_p2 }
   0x6   : > { %v1112_v0 = vld [vmem:[%s1331_s1] sm:$0xff] (!%p189_p3)   ;;  %s969_s18 = sshll.u32 (!%p189_p3), %s1150_s12, 5  ;;  %v1113_v1 = vld [vmem:[%s1331_s1 + $0x8] sm:$0xff] (!%p189_p3)   ;;  %v1114_v2 = vld [vmem:[%s1331_s1 + $0x10] sm:$0xff] (!%p189_p3)  }
   0x7   : > { %192 = sbr.rel (%p189_p3) target bundleno = 281 (0x119), region = 32  ;;  %p230_p4 = scmp.lt.s32.totalorder (!%p189_p3), %s969_s18, 63  ;;  %1024 = vmatprep.subr.bf16.mxu0 (!%p189_p3), %v1112_v0  ;;  %1072 = vmatprep.subr.bf16.mxu1 (!%p189_p3), %v1112_v0  ;;  %v1115_v3 = vld [vmem:[%s1331_s1 + $0x18] sm:$0xff] (!%p189_p3)   ;;  %v1116_v6 = vld [vmem:[%s1331_s1 + $0x20] sm:$0xff] (!%p189_p3)   ;;  %v1117_v7 = vld [vmem:[%s1331_s1 + $0x28] sm:$0xff] (!%p189_p3)  }
   0x8   : > { %1025 = vmatpush3.bf16.msra.mxu0 (!%p189_p3), %v1112_v0  ;;  %1080 = vmatpush3.bf16.msra.mxu1 (!%p189_p3), %v1112_v0  ;;  %v1118_v8 = vld [vmem:[%s1331_s1 + $0x30] sm:$0xff] (!%p189_p3)   ;;  %v1119_v9 = vld [vmem:[%s1331_s1 + $0x38] sm:$0xff] (!%p189_p3)   ;;  %v1250_v24 = vld [vmem:[%s1332_s2] ss:$0 sm:$0xff] (!%p189_p3) }
   0x9   : > { %1026 = vmatprep.subr.bf16.mxu0 (!%p189_p3), %v1113_v1  ;;  %1073 = vmatprep.subr.bf16.mxu1 (!%p189_p3), %v1113_v1 }
   0xc   : > { %1027 = vmatpush3.bf16.msra.mxu0 (!%p189_p3), %v1113_v1  ;;  %1081 = vmatpush3.bf16.msra.mxu1 (!%p189_p3), %v1113_v1 }
   0xd   : > { %1028 = vmatprep.subr.bf16.mxu0 (!%p189_p3), %v1114_v2  ;;  %1074 = vmatprep.subr.bf16.mxu1 (!%p189_p3), %v1114_v2 }
   0xe   : > { %s1339_s18 = smov (!%p230_p4, %s969_s18), 63 }
   0xf   : > { %s970_s23 = sshll.u32 %s1339_s18, 2  ;;  %s972_s10 = sshll.u32 %s1339_s18, 3 }
  0x10   : > { %s1213_s26 = scalar_lea.vmem %s1330_s0, %s970_s23  ;;  %1029 = vmatpush3.bf16.msra.mxu0 %v1114_v2  ;;  %1082 = vmatpush3.bf16.msra.mxu1 %v1114_v2  ;;  %s1255_s19 = scalar_lea.vmem %s1333_s3, %s972_s10 }
  0x11   : > { %v1120_v4 = vld [vmem:[%s1213_s26] sm:$0xff]   ;;  %1030 = vmatprep.subr.bf16.mxu0 %v1115_v3  ;;  %1075 = vmatprep.subr.bf16.mxu1 %v1115_v3  ;;  %v1122_v10 = vld [vmem:[%s1213_s26 + $0x8] sm:$0xff]   ;;  %v1124_v12 = vld [vmem:[%s1213_s26 + $0x10] sm:$0xff]  }
  0x12   : > { %v1121_v5 = vld [vmem:[%s1213_s26 + $0x40] sm:$0xff]   ;;  %1040 = vmatprep.mubr.bf16.mxu0 %v1120_v4  ;;  %v1123_v11 = vld [vmem:[%s1213_s26 + $0x48] sm:$0xff]   ;;  %v1125_v13 = vld [vmem:[%s1213_s26 + $0x50] sm:$0xff]  }
  0x13   : > { %1056 = vmatprep.mubr.bf16.mxu1 %v1121_v5  ;;  %v1126_v14 = vld [vmem:[%s1213_s26 + $0x18] sm:$0xff]   ;;  %v1128_v16 = vld [vmem:[%s1213_s26 + $0x20] sm:$0xff]   ;;  %v1130_v18 = vld [vmem:[%s1213_s26 + $0x28] sm:$0xff]  }
  0x14   : > { %1031 = vmatpush3.bf16.msra.mxu0 %v1115_v3  ;;  %1083 = vmatpush3.bf16.msra.mxu1 %v1115_v3  ;;  %v1127_v15 = vld [vmem:[%s1213_s26 + $0x58] sm:$0xff]   ;;  %v1129_v17 = vld [vmem:[%s1213_s26 + $0x60] sm:$0xff]   ;;  %v1131_v19 = vld [vmem:[%s1213_s26 + $0x68] sm:$0xff]  }
  0x15   : > { %1032 = vmatprep.subr.bf16.mxu0 %v1116_v6  ;;  %1076 = vmatprep.subr.bf16.mxu1 %v1116_v6  ;;  %v1132_v20 = vld [vmem:[%s1213_s26 + $0x30] sm:$0xff]   ;;  %v1134_v22 = vld [vmem:[%s1213_s26 + $0x38] sm:$0xff]  }
  0x16   : > { %v1133_v21 = vld [vmem:[%s1213_s26 + $0x70] sm:$0xff]   ;;  %v1135_v23 = vld [vmem:[%s1213_s26 + $0x78] sm:$0xff]  }
  0x18   : > { %1033 = vmatpush3.bf16.msra.mxu0 %v1116_v6  ;;  %1084 = vmatpush3.bf16.msra.mxu1 %v1116_v6 }
  0x19   : > { %1034 = vmatprep.subr.bf16.mxu0 %v1117_v7  ;;  %1077 = vmatprep.subr.bf16.mxu1 %v1117_v7 }
  0x1c   : > { %1035 = vmatpush3.bf16.msra.mxu0 %v1117_v7  ;;  %1085 = vmatpush3.bf16.msra.mxu1 %v1117_v7 }
  0x1d   : > { %1036 = vmatprep.subr.bf16.mxu0 %v1118_v8  ;;  %1078 = vmatprep.subr.bf16.mxu1 %v1118_v8 }
  0x20   : > { %1037 = vmatpush3.bf16.msra.mxu0 %v1118_v8  ;;  %1086 = vmatpush3.bf16.msra.mxu1 %v1118_v8 }
  0x21   : > { %1038 = vmatprep.subr.bf16.mxu0 %v1119_v9  ;;  %1079 = vmatprep.subr.bf16.mxu1 %v1119_v9 }
  0x24   : > { %1039 = vmatpush3.bf16.msra.mxu0 %v1119_v9  ;;  %1087 = vmatpush3.bf16.msra.mxu1 %v1119_v9 }
  0x27   : > { %1041 = vmatmul.mubr.bf16.vlgmr.msra.gmra.mrb[0].mxu0 %v1122_v10  ;;  %1057 = vmatmul.mubr.bf16.vlgmr.msra.gmra.mrb[0].mxu1 %v1123_v11 }
  0x28   : > { %1044 = vmatprep.mubr.bf16.mxu0 %v1124_v12  ;;  %1060 = vmatprep.mubr.bf16.mxu1 %v1125_v13 }
  0x2f   : > { %1045 = vmatmul.mubr.bf16.gmra.mrb[4].mxu0 %v1126_v14  ;;  %1061 = vmatmul.mubr.bf16.gmra.mrb[4].mxu1 %v1127_v15 }
  0x30   : > { %1048 = vmatprep.mubr.bf16.mxu0 %v1128_v16  ;;  %1064 = vmatprep.mubr.bf16.mxu1 %v1129_v17 }
  0x37   : > { %1049 = vmatmul.mubr.bf16.gmra.mrb[8].mxu0 %v1130_v18  ;;  %1065 = vmatmul.mubr.bf16.gmra.mrb[8].mxu1 %v1131_v19 }
  0x38   : > { %1052 = vmatprep.mubr.bf16.mxu0 %v1132_v20  ;;  %1068 = vmatprep.mubr.bf16.mxu1 %v1133_v21 }
  0x3f   : > { %1053 = vmatmul.mubr.bf16.gmra.mrb[12].mxu0 %v1134_v22  ;;  %1069 = vmatmul.mubr.bf16.gmra.mrb[12].mxu1 %v1135_v23 }
  0xfa   : > { %v1042_v25 = vpop.f32.mrb[0].mxu0  ;;  %v1058_v26 = vpop.f32.mrb[0].mxu1 }
  0xfb   : > { %v789_v27 = vadd.f32 %v1042_v25, %v1250_v24  ;;  %v805_v28 = vadd.f32 %v1058_v26, %v1250_v24  ;;  %v554_v29 = vpop.f32.mrb[1].mxu0  ;;  %v618_v30 = vpop.f32.mrb[1].mxu1 }
  0xfc   : > { %v787_v31 = vadd.f32 %v1250_v24, %v554_v29  ;;  %v803_v32 = vadd.f32 %v1250_v24, %v618_v30  ;;  %v1043_v33 = vpop.f32.mrb[2].mxu0  ;;  %v1059_v34 = vpop.f32.mrb[2].mxu1 }
  0xfd   : > { %821 = vst [vmem:[%s1255_s19 + $0x10] sm:$0xff] %v789_v27  ;;  %837 = vst [vmem:[%s1255_s19 + $0x90] sm:$0xff] %v805_v28  ;;  %v790_v35 = vadd.f32 %v1043_v33, %v1250_v24  ;;  %v806_v36 = vadd.f32 %v1059_v34, %v1250_v24  ;;  %v557_v37 = vpop.f32.mrb[3].mxu0  ;;  %v621_v38 = vpop.f32.mrb[3].mxu1 }
  0xfe   : > { %819 = vst [vmem:[%s1255_s19] sm:$0xff] %v787_v31  ;;  %835 = vst [vmem:[%s1255_s19 + $0x80] sm:$0xff] %v803_v32  ;;  %v788_v39 = vadd.f32 %v1250_v24, %v557_v37  ;;  %v804_v40 = vadd.f32 %v1250_v24, %v621_v38 }
  0xff   : > { %822 = vst [vmem:[%s1255_s19 + $0x18] sm:$0xff] %v790_v35  ;;  %838 = vst [vmem:[%s1255_s19 + $0x98] sm:$0xff] %v806_v36 }
 0x100   : > { %820 = vst [vmem:[%s1255_s19 + $0x8] sm:$0xff] %v788_v39  ;;  %836 = vst [vmem:[%s1255_s19 + $0x88] sm:$0xff] %v804_v40 }
 0x102   : > { %v1046_v41 = vpop.f32.mrb[4].mxu0  ;;  %v1062_v42 = vpop.f32.mrb[4].mxu1 }
 0x103   : > { %v793_v43 = vadd.f32 %v1046_v41, %v1250_v24  ;;  %v809_v44 = vadd.f32 %v1062_v42, %v1250_v24  ;;  %v570_v45 = vpop.f32.mrb[5].mxu0  ;;  %v634_v46 = vpop.f32.mrb[5].mxu1 }
 0x104   : > { %v791_v47 = vadd.f32 %v1250_v24, %v570_v45  ;;  %v807_v48 = vadd.f32 %v1250_v24, %v634_v46  ;;  %v1047_v49 = vpop.f32.mrb[6].mxu0  ;;  %v1063_v50 = vpop.f32.mrb[6].mxu1 }
 0x105   : > { %825 = vst [vmem:[%s1255_s19 + $0x30] sm:$0xff] %v793_v43  ;;  %841 = vst [vmem:[%s1255_s19 + $0xb0] sm:$0xff] %v809_v44  ;;  %v794_v51 = vadd.f32 %v1047_v49, %v1250_v24  ;;  %v810_v52 = vadd.f32 %v1063_v50, %v1250_v24  ;;  %v573_v53 = vpop.f32.mrb[7].mxu0  ;;  %v637_v54 = vpop.f32.mrb[7].mxu1 }
 0x106   : > { %823 = vst [vmem:[%s1255_s19 + $0x20] sm:$0xff] %v791_v47  ;;  %839 = vst [vmem:[%s1255_s19 + $0xa0] sm:$0xff] %v807_v48  ;;  %v792_v55 = vadd.f32 %v1250_v24, %v573_v53  ;;  %v808_v56 = vadd.f32 %v1250_v24, %v637_v54 }
 0x107   : > { %826 = vst [vmem:[%s1255_s19 + $0x38] sm:$0xff] %v794_v51  ;;  %842 = vst [vmem:[%s1255_s19 + $0xb8] sm:$0xff] %v810_v52 }
 0x108   : > { %824 = vst [vmem:[%s1255_s19 + $0x28] sm:$0xff] %v792_v55  ;;  %840 = vst [vmem:[%s1255_s19 + $0xa8] sm:$0xff] %v808_v56 }
 0x10a   : > { %v1050_v57 = vpop.f32.mrb[8].mxu0  ;;  %v1066_v58 = vpop.f32.mrb[8].mxu1 }
 0x10b   : > { %v797_v59 = vadd.f32 %v1050_v57, %v1250_v24  ;;  %v813_v60 = vadd.f32 %v1066_v58, %v1250_v24  ;;  %v586_v61 = vpop.f32.mrb[9].mxu0  ;;  %v650_v62 = vpop.f32.mrb[9].mxu1 }
 0x10c   : > { %v795_v63 = vadd.f32 %v1250_v24, %v586_v61  ;;  %v811_v0 = vadd.f32 %v1250_v24, %v650_v62  ;;  %v1051_v1 = vpop.f32.mrb[10].mxu0  ;;  %v1067_v2 = vpop.f32.mrb[10].mxu1 }
 0x10d   : > { %829 = vst [vmem:[%s1255_s19 + $0x50] sm:$0xff] %v797_v59  ;;  %845 = vst [vmem:[%s1255_s19 + $0xd0] sm:$0xff] %v813_v60  ;;  %v798_v3 = vadd.f32 %v1051_v1, %v1250_v24  ;;  %v814_v4 = vadd.f32 %v1067_v2, %v1250_v24  ;;  %v589_v5 = vpop.f32.mrb[11].mxu0  ;;  %v653_v6 = vpop.f32.mrb[11].mxu1 }
 0x10e   : > { %827 = vst [vmem:[%s1255_s19 + $0x40] sm:$0xff] %v795_v63  ;;  %843 = vst [vmem:[%s1255_s19 + $0xc0] sm:$0xff] %v811_v0  ;;  %v796_v7 = vadd.f32 %v1250_v24, %v589_v5  ;;  %v812_v8 = vadd.f32 %v1250_v24, %v653_v6 }
 0x10f   : > { %830 = vst [vmem:[%s1255_s19 + $0x58] sm:$0xff] %v798_v3  ;;  %846 = vst [vmem:[%s1255_s19 + $0xd8] sm:$0xff] %v814_v4 }
 0x110   : > { %828 = vst [vmem:[%s1255_s19 + $0x48] sm:$0xff] %v796_v7  ;;  %844 = vst [vmem:[%s1255_s19 + $0xc8] sm:$0xff] %v812_v8 }
 0x112   : > { %v1054_v9 = vpop.f32.mrb[12].mxu0  ;;  %v1070_v10 = vpop.f32.mrb[12].mxu1 }
 0x113   : > { %v801_v11 = vadd.f32 %v1054_v9, %v1250_v24  ;;  %v817_v12 = vadd.f32 %v1070_v10, %v1250_v24  ;;  %v602_v13 = vpop.f32.mrb[13].mxu0  ;;  %v666_v14 = vpop.f32.mrb[13].mxu1 }
 0x114   : > { %v799_v15 = vadd.f32 %v1250_v24, %v602_v13  ;;  %v815_v16 = vadd.f32 %v1250_v24, %v666_v14  ;;  %v1055_v17 = vpop.f32.mrb[14].mxu0  ;;  %v1071_v18 = vpop.f32.mrb[14].mxu1 }
 0x115   : > { %833 = vst [vmem:[%s1255_s19 + $0x70] sm:$0xff] %v801_v11  ;;  %849 = vst [vmem:[%s1255_s19 + $0xf0] sm:$0xff] %v817_v12  ;;  %v802_v19 = vadd.f32 %v1055_v17, %v1250_v24  ;;  %v818_v20 = vadd.f32 %v1071_v18, %v1250_v24  ;;  %v605_v21 = vpop.f32.mrb[15].mxu0  ;;  %v669_v22 = vpop.f32.mrb[15].mxu1 }
 0x116   : > { %831 = vst [vmem:[%s1255_s19 + $0x60] sm:$0xff] %v799_v15  ;;  %847 = vst [vmem:[%s1255_s19 + $0xe0] sm:$0xff] %v815_v16  ;;  %v800_v23 = vadd.f32 %v1250_v24, %v605_v21  ;;  %v816_v25 = vadd.f32 %v1250_v24, %v669_v22 }
 0x117   : > { %834 = vst [vmem:[%s1255_s19 + $0x78] sm:$0xff] %v802_v19  ;;  %850 = vst [vmem:[%s1255_s19 + $0xf8] sm:$0xff] %v818_v20 }
 0x118   : > { %832 = vst [vmem:[%s1255_s19 + $0x68] sm:$0xff] %v800_v23  ;;  %848 = vst [vmem:[%s1255_s19 + $0xe8] sm:$0xff] %v816_v25 }
 0x119 PF: > { %s13_s14 = sadd.s32 1, %s1158_s14   ;;  %s1334_s12 = smov %s1154_s13 }
 0x11a   : > { %p10_p5 = scmp.ge.s32.totalorder %s13_s14, 4   ;;  %s1335_s13 = smov %s1337_s15 }
 0x11c   :  { %12 = sbr.rel (!%p10_p5) target bundleno = 2 (0x2), region = 76 }

// kernel: _lambda_.11
= control target key start
LH: loop header
LB: loop body
LE: loop exit
PB: predicated region body
PF: predicated region fallthrough
CT: control target
= control target key end

     0   :  { %s2047_s0 = inlined_call_operand.vmem [shape: bf16[512,640], index: 0, kind: input, shape index: {}]   ;;  %s2048_s1 = inlined_call_operand.vmem [shape: bf16[640,128], index: 1, kind: input, shape index: {}]   ;;  %s2049_s2 = inlined_call_operand.vmem [shape: f32[1,128], index: 2, kind: input, shape index: {}]   ;;  %s2050_s3 = inlined_call_operand.vmem [shape: f32[512,128], index: 3, kind: input, shape index: {}]   ;;  %s2051_s4 = inlined_call_operand.hbm [shape: f32[512,128], index: 4, kind: output, shape index: {}]  }
   0x1   :  { %2055 = sst [smem:[#allocation9_spill]] %s2047_s0 }
   0x2   :  { %9 = vsyncpa [#allocation5], 0 }
   0x3   :  { %11 = vsyncpa [#allocation5 + $0x1], 0  ;;  %s1662_s15 = smov 0   ;;  %s1664_s16 = smov 0  }
   0x4   :  { %s1666_s17 = smov 0   ;;  %s1668_s18 = smov 0  }
   0x5   :  { %s1670_s19 = smov 0   ;;  %s1672_s20 = smov 0  }
   0x6   :  { %s1674_s21 = smov 0   ;;  %s1676_s22 = smov 0  }
   0x7   :  { %s1678_s23 = smov 0   ;;  %s1680_s24 = smov 0  }
   0x8 LB: > { %s1269_s25 = sadd.s32 4294967295, %s1631_s24   ;;  %s1270_s26 = sadd.s32 4294967294, %s1631_s24   ;;  %s1631_s24 = sphi %s1680_s24, %s17_s24   ;;  %s1627_s23 = sphi %s1678_s23, %s2073_s23   ;;  %s1623_s22 = sphi %s1676_s22, %s2072_s22   ;;  %s1619_s21 = sphi %s1674_s21, %s2071_s21   ;;  %s1615_s20 = sphi %s1672_s20, %s2070_s20   ;;  %s1611_s19 = sphi %s1670_s19, %s2069_s19   ;;  %s1607_s18 = sphi %s1668_s18, %s2068_s18   ;;  %s1603_s17 = sphi %s1666_s17, %s2067_s17   ;;  %s1599_s16 = sphi %s1664_s16, %s2066_s16   ;;  %s1595_s15 = sphi %s1662_s15, %s2065_s15  }
   0x9   : > { %s29_s27 = sadd.s32 1, %s1623_s22  ;;  %s36_s28 = sadd.s32 1, %s1627_s23 }
   0xa   : > { %p30_p0 = scmp.ge.s32.totalorder %s29_s27, 5  ;;  %s45_s29 = sadd.s32 1, %s1611_s19 }
   0xb   : > { %p52_p1 = scmp.ne.s32.totalorder %s1611_s19, %s1607_s18  ;;  %p53_p2 = scmp.eq.s32.totalorder %s1631_s24, 0 }
   0xc   : > { %s2075_s27 = smov (%p30_p0, %s29_s27), 0  ;;  %s2077_s28 = smov (!%p30_p0, %s36_s28), %s1627_s23 }
   0xd   : > { %2056 = sst [smem:[#allocation7_spill]] %s2075_s27  ;;  %s41_s30 = ssub.s32 %s1623_s22, %s2075_s27 }
   0xe   : > { %p1725_p3 = por %p53_p2, %p52_p1  ;;  %p38_p4 = scmp.ge.s32.totalorder %s2077_s28, 2 }
   0xf   : > { %s155_s6 = sadd.s32 1, %s1603_s17  ;;  %p165_p5 = scmp.ne.s32.totalorder %s1603_s17, %s1599_s16 }
  0x10   : > { %p166_p6 = scmp.eq.s32.totalorder %s1269_s25, 9  ;;  %s2079_s28 = smov (%p38_p4, %s2077_s28), 0 }
  0x11   : > { %2058 = sst [smem:[#allocation8_spill]] %s2079_s28  ;;  %p171_p8 = scmp.ne.s32.totalorder %s1599_s16, %s1595_s15 }
  0x12   : > { %p1734_p7 = por %p166_p6, %p165_p5  ;;  %s40_s8 = ssub.s32 %s1627_s23, %s2079_s28 }
  0x13   : > { %p172_p9 = scmp.eq.s32.totalorder %s1270_s26, 9  ;;  %s42_s9 = sor.u32 %s41_s30, %s40_s8 }
  0x14   : > { %p153_p10 = scmp.eq.s32.totalorder %s40_s8, 0  ;;  %p43_p11 = scmp.eq.s32.totalorder %s42_s9, 0 }
  0x15   : > { %p1742_p12 = por %p172_p9, %p171_p8  ;;  %p1273_p13 = scmp.ge.s32.totalorder %s1631_s24, 10 }
  0x16   : > { %s1747_s11 = scalar_select %p153_p10, %s1603_s17, %s155_s6  }
  0x17   : > { %s1750_s12 = scalar_select %p43_p11, %s1611_s19, %s45_s29  }
  0x18   : > { %194 = sbr.rel (%p1273_p13) target bundleno = 62 (0x3e), region = 20 }
  0x1f   : > { %197 = sbr.rel (!%p1725_p3) target bundleno = 62 (0x3e), region = 24  ;;  %s199_s13 = sand.u32 (%p1725_p3), 1, %s1611_s19  }
  0x20   : > { %s1406_s14 = smul.u32 (%p1725_p3), 160, %s1627_s23  ;;  %s1274_s25 = sshll.u32 (%p1725_p3), %s199_s13, 7 }
  0x21   : > { %s2061_s0 = sld [smem:[#allocation9_spill]] (%p1725_p3)  ;;  %s1766_s29 = scalar_lea.vmem (%p1725_p3), [#allocation3], %s1274_s25 }
  0x22   : > { %s204_s26 = sadd.s32 (%p1725_p3), %s1623_s22, %s1406_s14 }
  0x23   : > { %s1277_s30 = sshll.u32 (%p1725_p3), %s204_s26, 2 }
  0x27   : > { %s1761_s6 = scalar_lea.vmem %s2061_s0, %s1277_s30 }
  0x28   : > { %v222_v0 = vld [vmem:[%s1761_s6] sm:$0xf]  ;;  %v224_v1 = vld [vmem:[%s1761_s6 + $0x14] sm:$0xf]  ;;  %v226_v2 = vld [vmem:[%s1761_s6 + $0x28] sm:$0xf] }
  0x29   : > { %223 = vst [vmem:[%s1766_s29] sm:$0xf] %v222_v0  ;;  %225 = vst [vmem:[%s1766_s29 + $0x4] sm:$0xf] %v224_v1  ;;  %v228_v3 = vld [vmem:[%s1761_s6 + $0x3c] sm:$0xf] }
  0x2a   : > { %227 = vst [vmem:[%s1766_s29 + $0x8] sm:$0xf] %v226_v2  ;;  %v230_v4 = vld [vmem:[%s1761_s6 + $0x50] sm:$0xf]  ;;  %v232_v5 = vld [vmem:[%s1761_s6 + $0x64] sm:$0xf] }
  0x2b   : > { %229 = vst [vmem:[%s1766_s29 + $0xc] sm:$0xf] %v228_v3  ;;  %231 = vst [vmem:[%s1766_s29 + $0x10] sm:$0xf] %v230_v4  ;;  %v234_v6 = vld [vmem:[%s1761_s6 + $0x78] sm:$0xf] }
  0x2c   : > { %233 = vst [vmem:[%s1766_s29 + $0x14] sm:$0xf] %v232_v5  ;;  %v236_v7 = vld [vmem:[%s1761_s6 + $0x8c] sm:$0xf]  ;;  %v238_v8 = vld [vmem:[%s1761_s6 + $0xa0] sm:$0xf] }
  0x2d   : > { %235 = vst [vmem:[%s1766_s29 + $0x18] sm:$0xf] %v234_v6  ;;  %237 = vst [vmem:[%s1766_s29 + $0x1c] sm:$0xf] %v236_v7  ;;  %v240_v9 = vld [vmem:[%s1761_s6 + $0xb4] sm:$0xf] }
  0x2e   : > { %239 = vst [vmem:[%s1766_s29 + $0x20] sm:$0xf] %v238_v8  ;;  %v242_v10 = vld [vmem:[%s1761_s6 + $0xc8] sm:$0xf]  ;;  %v244_v11 = vld [vmem:[%s1761_s6 + $0xdc] sm:$0xf] }
  0x2f   : > { %241 = vst [vmem:[%s1766_s29 + $0x24] sm:$0xf] %v240_v9  ;;  %243 = vst [vmem:[%s1766_s29 + $0x28] sm:$0xf] %v242_v10  ;;  %v246_v12 = vld [vmem:[%s1761_s6 + $0xf0] sm:$0xf] }
  0x30   : > { %245 = vst [vmem:[%s1766_s29 + $0x2c] sm:$0xf] %v244_v11  ;;  %v248_v13 = vld [vmem:[%s1761_s6 + $0x104] sm:$0xf]  ;;  %v250_v14 = vld [vmem:[%s1761_s6 + $0x118] sm:$0xf] }
  0x31   : > { %247 = vst [vmem:[%s1766_s29 + $0x30] sm:$0xf] %v246_v12  ;;  %249 = vst [vmem:[%s1766_s29 + $0x34] sm:$0xf] %v248_v13  ;;  %v252_v15 = vld [vmem:[%s1761_s6 + $0x12c] sm:$0xf] }
  0x32   : > { %251 = vst [vmem:[%s1766_s29 + $0x38] sm:$0xf] %v250_v14  ;;  %v254_v16 = vld [vmem:[%s1761_s6 + $0x140] sm:$0xf]  ;;  %v256_v17 = vld [vmem:[%s1761_s6 + $0x154] sm:$0xf] }
  0x33   : > { %253 = vst [vmem:[%s1766_s29 + $0x3c] sm:$0xf] %v252_v15  ;;  %255 = vst [vmem:[%s1766_s29 + $0x40] sm:$0xf] %v254_v16  ;;  %v258_v18 = vld [vmem:[%s1761_s6 + $0x168] sm:$0xf] }
  0x34   : > { %257 = vst [vmem:[%s1766_s29 + $0x44] sm:$0xf] %v256_v17  ;;  %v260_v19 = vld [vmem:[%s1761_s6 + $0x17c] sm:$0xf]  ;;  %v262_v20 = vld [vmem:[%s1761_s6 + $0x190] sm:$0xf] }
  0x35   : > { %259 = vst [vmem:[%s1766_s29 + $0x48] sm:$0xf] %v258_v18  ;;  %261 = vst [vmem:[%s1766_s29 + $0x4c] sm:$0xf] %v260_v19  ;;  %v264_v21 = vld [vmem:[%s1761_s6 + $0x1a4] sm:$0xf] }
  0x36   : > { %263 = vst [vmem:[%s1766_s29 + $0x50] sm:$0xf] %v262_v20  ;;  %v266_v22 = vld [vmem:[%s1761_s6 + $0x1b8] sm:$0xf]  ;;  %v268_v23 = vld [vmem:[%s1761_s6 + $0x1cc] sm:$0xf] }
  0x37   : > { %265 = vst [vmem:[%s1766_s29 + $0x54] sm:$0xf] %v264_v21  ;;  %267 = vst [vmem:[%s1766_s29 + $0x58] sm:$0xf] %v266_v22  ;;  %v270_v24 = vld [vmem:[%s1761_s6 + $0x1e0] sm:$0xf] }
  0x38   : > { %269 = vst [vmem:[%s1766_s29 + $0x5c] sm:$0xf] %v268_v23  ;;  %v272_v25 = vld [vmem:[%s1761_s6 + $0x1f4] sm:$0xf]  ;;  %v274_v26 = vld [vmem:[%s1761_s6 + $0x208] sm:$0xf] }
  0x39   : > { %271 = vst [vmem:[%s1766_s29 + $0x60] sm:$0xf] %v270_v24  ;;  %273 = vst [vmem:[%s1766_s29 + $0x64] sm:$0xf] %v272_v25  ;;  %v276_v27 = vld [vmem:[%s1761_s6 + $0x21c] sm:$0xf] }
  0x3a   : > { %275 = vst [vmem:[%s1766_s29 + $0x68] sm:$0xf] %v274_v26  ;;  %v278_v28 = vld [vmem:[%s1761_s6 + $0x230] sm:$0xf]  ;;  %v280_v29 = vld [vmem:[%s1761_s6 + $0x244] sm:$0xf] }
  0x3b   : > { %277 = vst [vmem:[%s1766_s29 + $0x6c] sm:$0xf] %v276_v27  ;;  %279 = vst [vmem:[%s1766_s29 + $0x70] sm:$0xf] %v278_v28  ;;  %v282_v30 = vld [vmem:[%s1761_s6 + $0x258] sm:$0xf] }
  0x3c   : > { %281 = vst [vmem:[%s1766_s29 + $0x74] sm:$0xf] %v280_v29  ;;  %v284_v31 = vld [vmem:[%s1761_s6 + $0x26c] sm:$0xf]  ;;  %283 = vst [vmem:[%s1766_s29 + $0x78] sm:$0xf] %v282_v30 }
  0x3d   : > { %285 = vst [vmem:[%s1766_s29 + $0x7c] sm:$0xf] %v284_v31 }
  0x3e PF: > { %p1278_p0 = scmp.ge.s32.totalorder %s1631_s24, 1  ;;  %p395_p1 = scmp.lt.s32.totalorder %s1631_s24, 11 }
  0x40   : > { %p396_p2 = pnand %p1278_p0, %p395_p1 }
  0x41   : > { %s402_s5 = sand.u32 (!%p396_p2), 1, %s1607_s18   ;;  %s2054_s13 = sand.u32 (!%p396_p2), 1, %s1599_s16  }
  0x42   : > { %399 = sbr.rel (%p396_p2) target bundleno = 407 (0x197), region = 73  ;;  %s1279_s14 = sshll.u32 (!%p396_p2), %s402_s5, 7 }
  0x43   : > { %s1280_s25 = sshll.u32 (!%p396_p2), %s2054_s13, 8  ;;  %s1281_s26 = sshll.u32 (!%p396_p2), %s1615_s20, 4 }
  0x44   : > { %s1283_s30 = sshll.u32 (!%p396_p2), %s1619_s21, 5  ;;  %p448_p3 = scmp.lt.s32.totalorder (!%p396_p2), %s1281_s26, 79 }
  0x45   : > { %p460_p4 = scmp.lt.s32.totalorder (!%p396_p2), %s1283_s30, 63  ;;  %s1847_s5 = scalar_lea.vmem (!%p396_p2), [#allocation3], %s1279_s14 }
  0x46   : > { %s1849_s13 = scalar_lea.vmem (!%p396_p2), [#allocation4], %s1280_s25  ;;  %p1285_p5 = scmp.ne.s32.totalorder (!%p396_p2), %s1615_s20, 0 }
  0x49   : > { %s2081_s26 = smov (!%p448_p3, %s1281_s26), 79  ;;  %s2083_s30 = smov (!%p460_p4, %s1283_s30), 63 }
  0x4a   : > { %s1282_s8 = sshll.u32 %s2081_s26, 2  ;;  %s1284_s0 = sshll.u32 %s2083_s30, 3  ;;  %v1633_v32 = vmov (!%p1285_p5), 0.0  }
  0x4b   : > { %s1840_s29 = scalar_lea.vmem %s2048_s1, %s1282_s8  ;;  %s1845_s18 = scalar_lea.vmem %s2050_s3, %s1284_s0  ;;  %474 = vst [vmem:[#allocation2] sm:$0xff] (!%p1285_p5), %v1633_v32  ;;  %475 = vst [vmem:[#allocation2 + $0x8] sm:$0xff] (!%p1285_p5), %v1633_v32 }
  0x4c   : > { %473 = sbr.rel (%p1285_p5) target bundleno = 91 (0x5b), region = 81  ;;  %476 = vst [vmem:[#allocation2 + $0x10] sm:$0xff] (!%p1285_p5), %v1633_v32  ;;  %477 = vst [vmem:[#allocation2 + $0x18] sm:$0xff] (!%p1285_p5), %v1633_v32 }
  0x4d   : > { %478 = vst [vmem:[#allocation2 + $0x20] sm:$0xff] (!%p1285_p5), %v1633_v32  ;;  %479 = vst [vmem:[#allocation2 + $0x28] sm:$0xff] (!%p1285_p5), %v1633_v32 }
  0x4e   : > { %480 = vst [vmem:[#allocation2 + $0x30] sm:$0xff] (!%p1285_p5), %v1633_v32  ;;  %481 = vst [vmem:[#allocation2 + $0x38] sm:$0xff] (!%p1285_p5), %v1633_v32 }
  0x4f   : > { %482 = vst [vmem:[#allocation2 + $0x40] sm:$0xff] (!%p1285_p5), %v1633_v32  ;;  %483 = vst [vmem:[#allocation2 + $0x48] sm:$0xff] (!%p1285_p5), %v1633_v32 }
  0x50   : > { %484 = vst [vmem:[#allocation2 + $0x50] sm:$0xff] (!%p1285_p5), %v1633_v32  ;;  %485 = vst [vmem:[#allocation2 + $0x58] sm:$0xff] (!%p1285_p5), %v1633_v32 }
  0x51   : > { %486 = vst [vmem:[#allocation2 + $0x60] sm:$0xff] (!%p1285_p5), %v1633_v32  ;;  %487 = vst [vmem:[#allocation2 + $0x68] sm:$0xff] (!%p1285_p5), %v1633_v32 }
  0x52   : > { %488 = vst [vmem:[#allocation2 + $0x70] sm:$0xff] (!%p1285_p5), %v1633_v32  ;;  %489 = vst [vmem:[#allocation2 + $0x78] sm:$0xff] (!%p1285_p5), %v1633_v32 }
  0x53   : > { %490 = vst [vmem:[#allocation2 + $0x80] sm:$0xff] %v1633_v32  ;;  %491 = vst [vmem:[#allocation2 + $0x88] sm:$0xff] %v1633_v32 }
  0x54   : > { %492 = vst [vmem:[#allocation2 + $0x90] sm:$0xff] %v1633_v32  ;;  %493 = vst [vmem:[#allocation2 + $0x98] sm:$0xff] %v1633_v32 }
  0x55   : > { %494 = vst [vmem:[#allocation2 + $0xa0] sm:$0xff] %v1633_v32  ;;  %495 = vst [vmem:[#allocation2 + $0xa8] sm:$0xff] %v1633_v32 }
  0x56   : > { %496 = vst [vmem:[#allocation2 + $0xb0] sm:$0xff] %v1633_v32  ;;  %497 = vst [vmem:[#allocation2 + $0xb8] sm:$0xff] %v1633_v32 }
  0x57   : > { %498 = vst [vmem:[#allocation2 + $0xc0] sm:$0xff] %v1633_v32  ;;  %499 = vst [vmem:[#allocation2 + $0xc8] sm:$0xff] %v1633_v32 }
  0x58   : > { %500 = vst [vmem:[#allocation2 + $0xd0] sm:$0xff] %v1633_v32  ;;  %501 = vst [vmem:[#allocation2 + $0xd8] sm:$0xff] %v1633_v32 }
  0x59   : > { %502 = vst [vmem:[#allocation2 + $0xe0] sm:$0xff] %v1633_v32  ;;  %503 = vst [vmem:[#allocation2 + $0xe8] sm:$0xff] %v1633_v32 }
  0x5a   : > { %504 = vst [vmem:[#allocation2 + $0xf0] sm:$0xff] %v1633_v32  ;;  %505 = vst [vmem:[#allocation2 + $0xf8] sm:$0xff] %v1633_v32 }
  0x5b PF: > { %v1497_v33 = vld [vmem:[%s1840_s29] sm:$0xff]   ;;  %v1498_v34 = vld [vmem:[%s1840_s29 + $0x8] sm:$0xff]   ;;  %v1499_v35 = vld [vmem:[%s1840_s29 + $0x10] sm:$0xff]   ;;  %p1310_p6 = scmp.ne.s32.totalorder %s1615_s20, 4 }
  0x5c   : > { %1342 = vmatprep.subr.bf16.mxu0 %v1497_v33  ;;  %1390 = vmatprep.subr.bf16.mxu1 %v1497_v33  ;;  %v1500_v36 = vld [vmem:[%s1840_s29 + $0x18] sm:$0xff]   ;;  %v1505_v37 = vld [vmem:[%s1847_s5] sm:$0xff]   ;;  %v1502_v40 = vld [vmem:[%s1840_s29 + $0x28] sm:$0xff]  }
  0x5d   : > { %1343 = vmatpush3.bf16.msra.mxu0 %v1497_v33  ;;  %1398 = vmatpush3.bf16.msra.mxu1 %v1497_v33  ;;  %v1506_v38 = vld [vmem:[%s1847_s5 + $0x40] sm:$0xff]   ;;  %v1503_v41 = vld [vmem:[%s1840_s29 + $0x30] sm:$0xff]   ;;  %v1504_v42 = vld [vmem:[%s1840_s29 + $0x38] sm:$0xff]  }
  0x5e   : > { %1344 = vmatprep.subr.bf16.mxu0 %v1498_v34  ;;  %1391 = vmatprep.subr.bf16.mxu1 %v1498_v34  ;;  %v1501_v39 = vld [vmem:[%s1840_s29 + $0x20] sm:$0xff]   ;;  %v1507_v43 = vld [vmem:[%s1847_s5 + $0x8] sm:$0xff]   ;;  %v1509_v45 = vld [vmem:[%s1847_s5 + $0x10] sm:$0xff]  }
  0x5f   : > { %1358 = vmatprep.mubr.bf16.mxu0 %v1505_v37  ;;  %1374 = vmatprep.mubr.bf16.mxu1 %v1506_v38  ;;  %v1508_v44 = vld [vmem:[%s1847_s5 + $0x48] sm:$0xff]   ;;  %v1510_v46 = vld [vmem:[%s1847_s5 + $0x50] sm:$0xff]   ;;  %v1511_v47 = vld [vmem:[%s1847_s5 + $0x18] sm:$0xff]  }
  0x60   : > { %v1512_v48 = vld [vmem:[%s1847_s5 + $0x58] sm:$0xff]   ;;  %v1513_v49 = vld [vmem:[%s1847_s5 + $0x20] sm:$0xff]   ;;  %v1515_v51 = vld [vmem:[%s1847_s5 + $0x28] sm:$0xff]  }
  0x61   : > { %1345 = vmatpush3.bf16.msra.mxu0 %v1498_v34  ;;  %1399 = vmatpush3.bf16.msra.mxu1 %v1498_v34  ;;  %v1514_v50 = vld [vmem:[%s1847_s5 + $0x60] sm:$0xff]   ;;  %v1516_v52 = vld [vmem:[%s1847_s5 + $0x68] sm:$0xff]   ;;  %v1517_v53 = vld [vmem:[%s1847_s5 + $0x30] sm:$0xff]  }
  0x62   : > { %1346 = vmatprep.subr.bf16.mxu0 %v1499_v35  ;;  %1392 = vmatprep.subr.bf16.mxu1 %v1499_v35  ;;  %v1518_v54 = vld [vmem:[%s1847_s5 + $0x70] sm:$0xff]   ;;  %v1519_v55 = vld [vmem:[%s1847_s5 + $0x38] sm:$0xff]   ;;  %v538_v59 = vld [vmem:[#allocation2] sm:$0xff] }
  0x63   : > { %v1520_v56 = vld [vmem:[%s1847_s5 + $0x78] sm:$0xff]   ;;  %v540_v57 = vld [vmem:[#allocation2 + $0x10] sm:$0xff]  ;;  %v554_v60 = vld [vmem:[#allocation2 + $0x80] sm:$0xff] }
  0x64   : > { %v556_v58 = vld [vmem:[#allocation2 + $0x90] sm:$0xff]  ;;  %v541_v63 = vld [vmem:[#allocation2 + $0x18] sm:$0xff]  ;;  %v539_v5 = vld [vmem:[#allocation2 + $0x8] sm:$0xff] }
  0x65   : > { %1347 = vmatpush3.bf16.msra.mxu0 %v1499_v35  ;;  %1400 = vmatpush3.bf16.msra.mxu1 %v1499_v35  ;;  %v557_v0 = vld [vmem:[#allocation2 + $0x98] sm:$0xff]  ;;  %v555_v6 = vld [vmem:[#allocation2 + $0x88] sm:$0xff]  ;;  %v544_v17 = vld [vmem:[#allocation2 + $0x30] sm:$0xff] }
  0x66   : > { %1348 = vmatprep.subr.bf16.mxu0 %v1500_v36  ;;  %1393 = vmatprep.subr.bf16.mxu1 %v1500_v36  ;;  %v560_v18 = vld [vmem:[#allocation2 + $0xb0] sm:$0xff]  ;;  %v542_v19 = vld [vmem:[#allocation2 + $0x20] sm:$0xff]  ;;  %v545_v23 = vld [vmem:[#allocation2 + $0x38] sm:$0xff] }
  0x67   : > { %v558_v20 = vld [vmem:[#allocation2 + $0xa0] sm:$0xff]  ;;  %v561_v24 = vld [vmem:[#allocation2 + $0xb8] sm:$0xff]  ;;  %v543_v29 = vld [vmem:[#allocation2 + $0x28] sm:$0xff] }
  0x68   : > { %v559_v30 = vld [vmem:[#allocation2 + $0xa8] sm:$0xff] }
  0x69   : > { %1349 = vmatpush3.bf16.msra.mxu0 %v1500_v36  ;;  %1401 = vmatpush3.bf16.msra.mxu1 %v1500_v36 }
  0x6a   : > { %1350 = vmatprep.subr.bf16.mxu0 %v1501_v39  ;;  %1394 = vmatprep.subr.bf16.mxu1 %v1501_v39 }
  0x6d   : > { %1351 = vmatpush3.bf16.msra.mxu0 %v1501_v39  ;;  %1402 = vmatpush3.bf16.msra.mxu1 %v1501_v39 }
  0x6e   : > { %1352 = vmatprep.subr.bf16.mxu0 %v1502_v40  ;;  %1395 = vmatprep.subr.bf16.mxu1 %v1502_v40 }
  0x71   : > { %1353 = vmatpush3.bf16.msra.mxu0 %v1502_v40  ;;  %1403 = vmatpush3.bf16.msra.mxu1 %v1502_v40 }
  0x72   : > { %1354 = vmatprep.subr.bf16.mxu0 %v1503_v41  ;;  %1396 = vmatprep.subr.bf16.mxu1 %v1503_v41 }
  0x75   : > { %1355 = vmatpush3.bf16.msra.mxu0 %v1503_v41  ;;  %1404 = vmatpush3.bf16.msra.mxu1 %v1503_v41  ;;  %v548_v41 = vld [vmem:[#allocation2 + $0x50] sm:$0xff] }
  0x76   : > { %1356 = vmatprep.subr.bf16.mxu0 %v1504_v42  ;;  %1397 = vmatprep.subr.bf16.mxu1 %v1504_v42 }
  0x79   : > { %1357 = vmatpush3.bf16.msra.mxu0 %v1504_v42  ;;  %1405 = vmatpush3.bf16.msra.mxu1 %v1504_v42  ;;  %v564_v42 = vld [vmem:[#allocation2 + $0xd0] sm:$0xff] }
  0x7c   : > { %1359 = vmatmul.mubr.bf16.vlgmr.msra.gmra.mrb[0].mxu0 %v1507_v43  ;;  %1375 = vmatmul.mubr.bf16.vlgmr.msra.gmra.mrb[0].mxu1 %v1508_v44  ;;  %v546_v43 = vld [vmem:[#allocation2 + $0x40] sm:$0xff] }
  0x7d   : > { %1362 = vmatprep.mubr.bf16.mxu0 %v1509_v45  ;;  %1378 = vmatprep.mubr.bf16.mxu1 %v1510_v46  ;;  %v562_v44 = vld [vmem:[#allocation2 + $0xc0] sm:$0xff] }
  0x84   : > { %1363 = vmatmul.mubr.bf16.gmra.mrb[4].mxu0 %v1511_v47  ;;  %1379 = vmatmul.mubr.bf16.gmra.mrb[4].mxu1 %v1512_v48  ;;  %v549_v47 = vld [vmem:[#allocation2 + $0x58] sm:$0xff] }
  0x85   : > { %1366 = vmatprep.mubr.bf16.mxu0 %v1513_v49  ;;  %1382 = vmatprep.mubr.bf16.mxu1 %v1514_v50  ;;  %v565_v48 = vld [vmem:[#allocation2 + $0xd8] sm:$0xff] }
  0x8c   : > { %1367 = vmatmul.mubr.bf16.gmra.mrb[8].mxu0 %v1515_v51  ;;  %1383 = vmatmul.mubr.bf16.gmra.mrb[8].mxu1 %v1516_v52 }
  0x8d   : > { %1370 = vmatprep.mubr.bf16.mxu0 %v1517_v53  ;;  %1386 = vmatprep.mubr.bf16.mxu1 %v1518_v54  ;;  %v547_v53 = vld [vmem:[#allocation2 + $0x48] sm:$0xff] }
  0x8e   : > { %v563_v54 = vld [vmem:[#allocation2 + $0xc8] sm:$0xff] }
  0x94   : > { %1371 = vmatmul.mubr.bf16.gmra.mrb[12].mxu0 %v1519_v55  ;;  %1387 = vmatmul.mubr.bf16.gmra.mrb[12].mxu1 %v1520_v56 }
 0x14f   : > { %v1360_v61 = vpop.f32.mrb[0].mxu0  ;;  %v1376_v62 = vpop.f32.mrb[0].mxu1 }
 0x150   : > { %v893_v1 = vadd.f32 %v1360_v61, %v540_v57  ;;  %v909_v2 = vadd.f32 %v1376_v62, %v556_v58  ;;  %v764_v3 = vpop.f32.mrb[1].mxu0  ;;  %v828_v4 = vpop.f32.mrb[1].mxu1 }
 0x151   : > { %v891_v7 = vadd.f32 %v764_v3, %v538_v59  ;;  %v907_v8 = vadd.f32 %v828_v4, %v554_v60  ;;  %v1361_v9 = vpop.f32.mrb[2].mxu0  ;;  %v1377_v10 = vpop.f32.mrb[2].mxu1  ;;  %v550_v3 = vld [vmem:[#allocation2 + $0x60] sm:$0xff] }
 0x152   : > { %925 = vst [vmem:[#allocation2 + $0x10] sm:$0xff] %v893_v1  ;;  %941 = vst [vmem:[#allocation2 + $0x90] sm:$0xff] %v909_v2  ;;  %v894_v11 = vadd.f32 %v1361_v9, %v541_v63  ;;  %v910_v12 = vadd.f32 %v1377_v10, %v557_v0  ;;  %v767_v13 = vpop.f32.mrb[3].mxu0  ;;  %v831_v14 = vpop.f32.mrb[3].mxu1  ;;  %v552_v1 = vld [vmem:[#allocation2 + $0x70] sm:$0xff]  ;;  %v566_v4 = vld [vmem:[#allocation2 + $0xe0] sm:$0xff] }
 0x153   : > { %923 = vst [vmem:[#allocation2] sm:$0xff] %v891_v7  ;;  %939 = vst [vmem:[#allocation2 + $0x80] sm:$0xff] %v907_v8  ;;  %v892_v15 = vadd.f32 %v767_v13, %v539_v5  ;;  %v908_v16 = vadd.f32 %v831_v14, %v555_v6  ;;  %v568_v2 = vld [vmem:[#allocation2 + $0xf0] sm:$0xff]  ;;  %v553_v7 = vld [vmem:[#allocation2 + $0x78] sm:$0xff] }
 0x154   : > { %926 = vst [vmem:[#allocation2 + $0x18] sm:$0xff] %v894_v11  ;;  %942 = vst [vmem:[#allocation2 + $0x98] sm:$0xff] %v910_v12  ;;  %v569_v8 = vld [vmem:[#allocation2 + $0xf8] sm:$0xff]  ;;  %v551_v13 = vld [vmem:[#allocation2 + $0x68] sm:$0xff] }
 0x155   : > { %924 = vst [vmem:[#allocation2 + $0x8] sm:$0xff] %v892_v15  ;;  %940 = vst [vmem:[#allocation2 + $0x88] sm:$0xff] %v908_v16  ;;  %v567_v14 = vld [vmem:[#allocation2 + $0xe8] sm:$0xff] }
 0x157   : > { %v1364_v21 = vpop.f32.mrb[4].mxu0  ;;  %v1380_v22 = vpop.f32.mrb[4].mxu1 }
 0x158   : > { %v897_v25 = vadd.f32 %v1364_v21, %v544_v17  ;;  %v913_v26 = vadd.f32 %v1380_v22, %v560_v18  ;;  %v780_v27 = vpop.f32.mrb[5].mxu0  ;;  %v844_v28 = vpop.f32.mrb[5].mxu1 }
 0x159   : > { %v895_v31 = vadd.f32 %v780_v27, %v542_v19  ;;  %v911_v32 = vadd.f32 %v844_v28, %v558_v20  ;;  %v1365_v33 = vpop.f32.mrb[6].mxu0  ;;  %v1381_v34 = vpop.f32.mrb[6].mxu1  ;;  %v1030_v27 = vld [vmem:[%s1845_s18] sm:$0xff] (!%p1310_p6) }
 0x15a   : > { %929 = vst [vmem:[#allocation2 + $0x30] sm:$0xff] %v897_v25  ;;  %945 = vst [vmem:[#allocation2 + $0xb0] sm:$0xff] %v913_v26  ;;  %v898_v35 = vadd.f32 %v1365_v33, %v545_v23  ;;  %v914_v36 = vadd.f32 %v1381_v34, %v561_v24  ;;  %v783_v37 = vpop.f32.mrb[7].mxu0  ;;  %v847_v38 = vpop.f32.mrb[7].mxu1  ;;  %v959_v25 = vld [vmem:[#allocation2] sm:$0xff] (!%p1310_p6)  ;;  %v1032_v34 = vld [vmem:[%s1845_s18 + $0x10] sm:$0xff] (!%p1310_p6) }
 0x15b   : > { %927 = vst [vmem:[#allocation2 + $0x20] sm:$0xff] %v895_v31  ;;  %943 = vst [vmem:[#allocation2 + $0xa0] sm:$0xff] %v911_v32  ;;  %v896_v39 = vadd.f32 %v783_v37, %v543_v29  ;;  %v912_v40 = vadd.f32 %v847_v38, %v559_v30  ;;  %v1880_v26 = vld [vmem:[%s2049_s2] ss:$0 sm:$0xff] (!%p1310_p6)  ;;  %v1031_v30 = vld [vmem:[%s1845_s18 + $0x8] sm:$0xff] (!%p1310_p6) }
 0x15c   : > { %930 = vst [vmem:[#allocation2 + $0x38] sm:$0xff] %v898_v35  ;;  %946 = vst [vmem:[#allocation2 + $0xb8] sm:$0xff] %v914_v36  ;;  %v998_v28 = vadd.f32 (!%p1310_p6), %v1880_v26, %v959_v25  ;;  %v960_v29 = vld [vmem:[#allocation2 + $0x8] sm:$0xff] (!%p1310_p6)  ;;  %v961_v31 = vld [vmem:[#allocation2 + $0x10] sm:$0xff] (!%p1310_p6) }
 0x15d   : > { %928 = vst [vmem:[#allocation2 + $0x28] sm:$0xff] %v896_v39  ;;  %944 = vst [vmem:[#allocation2 + $0xa8] sm:$0xff] %v912_v40  ;;  %v999_v32 = vadd.f32 (!%p1310_p6), %v1880_v26, %v960_v29  ;;  %v1000_v33 = vadd.f32 (!%p1310_p6), %v1880_v26, %v961_v31  ;;  %v962_v35 = vld [vmem:[#allocation2 + $0x18] sm:$0xff] (!%p1310_p6)  ;;  %v1034_v40 = vld [vmem:[%s1845_s18 + $0x20] sm:$0xff] (!%p1310_p6) }
 0x15e   : > { %v1033_v36 = vld [vmem:[%s1845_s18 + $0x18] sm:$0xff] (!%p1310_p6)  ;;  %v1062_v37 = vadd.f32 (!%p1310_p6), %v1030_v27, %v998_v28  ;;  %v1001_v38 = vadd.f32 (!%p1310_p6), %v1880_v26, %v962_v35  ;;  %v976_v25 = vld [vmem:[#allocation2 + $0x88] sm:$0xff] (!%p1310_p6) }
 0x15f   : > { %v1368_v45 = vpop.f32.mrb[8].mxu0  ;;  %v1384_v46 = vpop.f32.mrb[8].mxu1  ;;  %v1047_v31 = vld [vmem:[%s1845_s18 + $0x88] sm:$0xff] (!%p1310_p6) }
 0x160   : > { %v901_v49 = vadd.f32 %v1368_v45, %v548_v41  ;;  %v917_v50 = vadd.f32 %v1384_v46, %v564_v42  ;;  %v796_v51 = vpop.f32.mrb[9].mxu0  ;;  %v860_v52 = vpop.f32.mrb[9].mxu1  ;;  %v1063_v42 = vadd.f32 (!%p1310_p6), %v1031_v30, %v999_v32  ;;  %v1035_v46 = vld [vmem:[%s1845_s18 + $0x28] sm:$0xff] (!%p1310_p6)  ;;  %1094 = vst [vmem:[%s1849_s13] sm:$0xff] (!%p1310_p6), %v1062_v37  ;;  %v1015_v30 = vadd.f32 (!%p1310_p6), %v1880_v26, %v976_v25  ;;  %v977_v32 = vld [vmem:[#allocation2 + $0x90] sm:$0xff] (!%p1310_p6)  ;;  %v1049_v37 = vld [vmem:[%s1845_s18 + $0x98] sm:$0xff] (!%p1310_p6) }
 0x161   : > { %v899_v55 = vadd.f32 %v796_v51, %v546_v43  ;;  %v915_v56 = vadd.f32 %v860_v52, %v562_v44  ;;  %v1369_v57 = vpop.f32.mrb[10].mxu0  ;;  %v1385_v58 = vpop.f32.mrb[10].mxu1  ;;  %v1064_v43 = vadd.f32 (!%p1310_p6), %v1032_v34, %v1000_v33  ;;  %v1037_v52 = vld [vmem:[%s1845_s18 + $0x38] sm:$0xff] (!%p1310_p6)  ;;  %v1048_v33 = vld [vmem:[%s1845_s18 + $0x90] sm:$0xff] (!%p1310_p6)  ;;  %v1016_v35 = vadd.f32 (!%p1310_p6), %v1880_v26, %v977_v32 }
 0x162   : > { %933 = vst [vmem:[#allocation2 + $0x50] sm:$0xff] %v901_v49  ;;  %949 = vst [vmem:[#allocation2 + $0xd0] sm:$0xff] %v917_v50  ;;  %v902_v59 = vadd.f32 %v1369_v57, %v549_v47  ;;  %v918_v60 = vadd.f32 %v1385_v58, %v565_v48  ;;  %v799_v61 = vpop.f32.mrb[11].mxu0  ;;  %v863_v62 = vpop.f32.mrb[11].mxu1  ;;  %v963_v39 = vld [vmem:[#allocation2 + $0x20] sm:$0xff] (!%p1310_p6)  ;;  %v965_v47 = vld [vmem:[#allocation2 + $0x30] sm:$0xff] (!%p1310_p6)  ;;  %v1065_v49 = vadd.f32 (!%p1310_p6), %v1033_v36, %v1001_v38 }
 0x163   : > { %931 = vst [vmem:[#allocation2 + $0x40] sm:$0xff] %v899_v55  ;;  %947 = vst [vmem:[#allocation2 + $0xc0] sm:$0xff] %v915_v56  ;;  %v900_v63 = vadd.f32 %v799_v61, %v547_v53  ;;  %v916_v0 = vadd.f32 %v863_v62, %v563_v54  ;;  %v1002_v44 = vadd.f32 (!%p1310_p6), %v1880_v26, %v963_v39  ;;  %v1036_v48 = vld [vmem:[%s1845_s18 + $0x30] sm:$0xff] (!%p1310_p6)  ;;  %v966_v51 = vld [vmem:[#allocation2 + $0x38] sm:$0xff] (!%p1310_p6) }
 0x164   : > { %934 = vst [vmem:[#allocation2 + $0x58] sm:$0xff] %v902_v59  ;;  %950 = vst [vmem:[#allocation2 + $0xd8] sm:$0xff] %v918_v60  ;;  %v964_v41 = vld [vmem:[#allocation2 + $0x28] sm:$0xff] (!%p1310_p6)  ;;  %v1004_v50 = vadd.f32 (!%p1310_p6), %v1880_v26, %v965_v47  ;;  %v1005_v56 = vadd.f32 (!%p1310_p6), %v1880_v26, %v966_v51  ;;  %v1038_v58 = vld [vmem:[%s1845_s18 + $0x40] sm:$0xff] (!%p1310_p6) }
 0x165   : > { %932 = vst [vmem:[#allocation2 + $0x48] sm:$0xff] %v900_v63  ;;  %948 = vst [vmem:[#allocation2 + $0xc8] sm:$0xff] %v916_v0  ;;  %v1003_v45 = vadd.f32 (!%p1310_p6), %v1880_v26, %v964_v41  ;;  %v1066_v54 = vadd.f32 (!%p1310_p6), %v1034_v40, %v1002_v44  ;;  %v1039_v60 = vld [vmem:[%s1845_s18 + $0x48] sm:$0xff] (!%p1310_p6)  ;;  %v1040_v0 = vld [vmem:[%s1845_s18 + $0x50] sm:$0xff] (!%p1310_p6)  ;;  %v1079_v40 = vadd.f32 (!%p1310_p6), %v1047_v31, %v1015_v30 }
 0x166   : > { %1095 = vst [vmem:[%s1849_s13 + $0x8] sm:$0xff] (!%p1310_p6), %v1063_v42  ;;  %1096 = vst [vmem:[%s1849_s13 + $0x10] sm:$0xff] (!%p1310_p6), %v1064_v43  ;;  %v1068_v61 = vadd.f32 (!%p1310_p6), %v1036_v48, %v1004_v50  ;;  %v978_v36 = vld [vmem:[#allocation2 + $0x98] sm:$0xff] (!%p1310_p6)  ;;  %v979_v38 = vld [vmem:[#allocation2 + $0xa0] sm:$0xff] (!%p1310_p6) }
 0x167   : > { %v1372_v5 = vpop.f32.mrb[12].mxu0  ;;  %v1388_v6 = vpop.f32.mrb[12].mxu1  ;;  %958 = sbr.rel (%p1310_p6) target bundleno = 381 (0x17d), region = 85  ;;  %v1067_v55 = vadd.f32 (!%p1310_p6), %v1035_v46, %v1003_v45  ;;  %1097 = vst [vmem:[%s1849_s13 + $0x18] sm:$0xff] (!%p1310_p6), %v1065_v49  ;;  %1098 = vst [vmem:[%s1849_s13 + $0x20] sm:$0xff] (!%p1310_p6), %v1066_v54  ;;  %v1017_v41 = vadd.f32 (!%p1310_p6), %v1880_v26, %v978_v36  ;;  %v1018_v42 = vadd.f32 (!%p1310_p6), %v1880_v26, %v979_v38  ;;  %v1050_v43 = vld [vmem:[%s1845_s18 + $0xa0] sm:$0xff] (!%p1310_p6) }
 0x168   : > { %v905_v9 = vadd.f32 %v1372_v5, %v552_v1  ;;  %v921_v10 = vadd.f32 %v1388_v6, %v568_v2  ;;  %v812_v11 = vpop.f32.mrb[13].mxu0  ;;  %v876_v12 = vpop.f32.mrb[13].mxu1  ;;  %v1069_v2 = vadd.f32 (!%p1310_p6), %v1037_v52, %v1005_v56  ;;  %v1041_v6 = vld [vmem:[%s1845_s18 + $0x58] sm:$0xff] (!%p1310_p6)  ;;  %1100 = vst [vmem:[%s1849_s13 + $0x30] sm:$0xff] (!%p1310_p6), %v1068_v61  ;;  %v980_v44 = vld [vmem:[#allocation2 + $0xa8] sm:$0xff] (!%p1310_p6)  ;;  %v1080_v46 = vadd.f32 (!%p1310_p6), %v1048_v33, %v1016_v35  ;;  %v981_v48 = vld [vmem:[#allocation2 + $0xb0] sm:$0xff] (!%p1310_p6) }
 0x169   : > { %v903_v15 = vadd.f32 %v812_v11, %v550_v3  ;;  %v919_v16 = vadd.f32 %v876_v12, %v566_v4  ;;  %v1373_v17 = vpop.f32.mrb[14].mxu0  ;;  %v1389_v18 = vpop.f32.mrb[14].mxu1  ;;  %v969_v63 = vld [vmem:[#allocation2 + $0x50] sm:$0xff] (!%p1310_p6)  ;;  %1099 = vst [vmem:[%s1849_s13 + $0x28] sm:$0xff] (!%p1310_p6), %v1067_v55  ;;  %v1043_v12 = vld [vmem:[%s1845_s18 + $0x68] sm:$0xff] (!%p1310_p6)  ;;  %v1019_v47 = vadd.f32 (!%p1310_p6), %v1880_v26, %v980_v44  ;;  %v982_v50 = vld [vmem:[#allocation2 + $0xb8] sm:$0xff] (!%p1310_p6)  ;;  %v1081_v51 = vadd.f32 (!%p1310_p6), %v1049_v37, %v1017_v41 }
 0x16a   : > { %937 = vst [vmem:[#allocation2 + $0x70] sm:$0xff] %v905_v9  ;;  %953 = vst [vmem:[#allocation2 + $0xf0] sm:$0xff] %v921_v10  ;;  %v906_v19 = vadd.f32 %v1373_v17, %v553_v7  ;;  %v922_v20 = vadd.f32 %v1389_v18, %v569_v8  ;;  %v815_v21 = vpop.f32.mrb[15].mxu0  ;;  %v879_v22 = vpop.f32.mrb[15].mxu1  ;;  %v967_v53 = vld [vmem:[#allocation2 + $0x40] sm:$0xff] (!%p1310_p6)  ;;  %v1008_v4 = vadd.f32 (!%p1310_p6), %v1880_v26, %v969_v63  ;;  %v1044_v18 = vld [vmem:[%s1845_s18 + $0x70] sm:$0xff] (!%p1310_p6) }
 0x16b   : > { %935 = vst [vmem:[#allocation2 + $0x60] sm:$0xff] %v903_v15  ;;  %951 = vst [vmem:[#allocation2 + $0xe0] sm:$0xff] %v919_v16  ;;  %v904_v23 = vadd.f32 %v815_v21, %v551_v13  ;;  %v920_v24 = vadd.f32 %v879_v22, %v567_v14  ;;  %v1006_v57 = vadd.f32 (!%p1310_p6), %v1880_v26, %v967_v53  ;;  %v970_v1 = vld [vmem:[#allocation2 + $0x58] sm:$0xff] (!%p1310_p6)  ;;  %v1042_v8 = vld [vmem:[%s1845_s18 + $0x60] sm:$0xff] (!%p1310_p6) }
 0x16c   : > { %938 = vst [vmem:[#allocation2 + $0x78] sm:$0xff] %v906_v19  ;;  %954 = vst [vmem:[#allocation2 + $0xf8] sm:$0xff] %v922_v20  ;;  %v968_v59 = vld [vmem:[#allocation2 + $0x48] sm:$0xff] (!%p1310_p6)  ;;  %v1009_v5 = vadd.f32 (!%p1310_p6), %v1880_v26, %v970_v1  ;;  %v1072_v14 = vadd.f32 (!%p1310_p6), %v1040_v0, %v1008_v4  ;;  %v1045_v20 = vld [vmem:[%s1845_s18 + $0x78] sm:$0xff] (!%p1310_p6)  ;;  %v1082_v52 = vadd.f32 (!%p1310_p6), %v1050_v43, %v1018_v42 }
 0x16d   : > { %936 = vst [vmem:[#allocation2 + $0x68] sm:$0xff] %v904_v23  ;;  %952 = vst [vmem:[#allocation2 + $0xe8] sm:$0xff] %v920_v24  ;;  %v1007_v62 = vadd.f32 (!%p1310_p6), %v1880_v26, %v968_v59  ;;  %v1070_v3 = vadd.f32 (!%p1310_p6), %v1038_v58, %v1006_v57  ;;  %v975_v23 = vld [vmem:[#allocation2 + $0x80] sm:$0xff] (!%p1310_p6)  ;;  %v1051_v45 = vld [vmem:[%s1845_s18 + $0xa8] sm:$0xff] (!%p1310_p6)  ;;  %v1020_v53 = vadd.f32 (!%p1310_p6), %v1880_v26, %v981_v48 }
 0x16e   : > { %1101 = vst [vmem:[%s1849_s13 + $0x38] sm:$0xff] %v1069_v2  ;;  %v1073_v15 = vadd.f32 %v1041_v6, %v1009_v5  ;;  %v1046_v24 = vld [vmem:[%s1845_s18 + $0x80] sm:$0xff]  ;;  %1104 = vst [vmem:[%s1849_s13 + $0x50] sm:$0xff] %v1072_v14  ;;  %v1014_v29 = vadd.f32 %v1880_v26, %v975_v23  ;;  %v1052_v49 = vld [vmem:[%s1845_s18 + $0xb0] sm:$0xff]  ;;  %v1021_v54 = vadd.f32 %v1880_v26, %v982_v50 }
 0x16f   : > { %v1071_v9 = vadd.f32 %v1039_v60, %v1007_v62  ;;  %1102 = vst [vmem:[%s1849_s13 + $0x40] sm:$0xff] %v1070_v3  ;;  %1111 = vst [vmem:[%s1849_s13 + $0x88] sm:$0xff] %v1079_v40  ;;  %v1053_v55 = vld [vmem:[%s1845_s18 + $0xb8] sm:$0xff]  ;;  %v983_v56 = vld [vmem:[#allocation2 + $0xc0] sm:$0xff]  ;;  %v1083_v58 = vadd.f32 %v1051_v45, %v1019_v47  ;;  %v1084_v63 = vadd.f32 %v1052_v49, %v1020_v53 }
 0x170   : > { %1105 = vst [vmem:[%s1849_s13 + $0x58] sm:$0xff] %v1073_v15  ;;  %v1078_v39 = vadd.f32 %v1046_v24, %v1014_v29  ;;  %v1054_v57 = vld [vmem:[%s1845_s18 + $0xc0] sm:$0xff]  ;;  %1112 = vst [vmem:[%s1849_s13 + $0x90] sm:$0xff] %v1080_v46  ;;  %v1022_v59 = vadd.f32 %v1880_v26, %v983_v56  ;;  %v984_v60 = vld [vmem:[#allocation2 + $0xc8] sm:$0xff]  ;;  %v1085_v0 = vadd.f32 %v1053_v55, %v1021_v54 }
 0x171   : > { %v973_v13 = vld [vmem:[#allocation2 + $0x70] sm:$0xff]  ;;  %1103 = vst [vmem:[%s1849_s13 + $0x48] sm:$0xff] %v1071_v9  ;;  %v1055_v61 = vld [vmem:[%s1845_s18 + $0xc8] sm:$0xff]  ;;  %1113 = vst [vmem:[%s1849_s13 + $0x98] sm:$0xff] %v1081_v51  ;;  %v1023_v1 = vadd.f32 %v1880_v26, %v984_v60 }
 0x172   : > { %v971_v7 = vld [vmem:[#allocation2 + $0x60] sm:$0xff]  ;;  %v1012_v17 = vadd.f32 %v1880_v26, %v973_v13  ;;  %1110 = vst [vmem:[%s1849_s13 + $0x80] sm:$0xff] %v1078_v39  ;;  %v985_v62 = vld [vmem:[#allocation2 + $0xd0] sm:$0xff]  ;;  %1114 = vst [vmem:[%s1849_s13 + $0xa0] sm:$0xff] %v1082_v52  ;;  %v1086_v6 = vadd.f32 %v1054_v57, %v1022_v59 }
 0x173   : > { %v1010_v10 = vadd.f32 %v1880_v26, %v971_v7  ;;  %v974_v19 = vld [vmem:[#allocation2 + $0x78] sm:$0xff]  ;;  %v1024_v2 = vadd.f32 %v1880_v26, %v985_v62  ;;  %v1056_v3 = vld [vmem:[%s1845_s18 + $0xd0] sm:$0xff]  ;;  %1115 = vst [vmem:[%s1849_s13 + $0xa8] sm:$0xff] %v1083_v58  ;;  %v1058_v9 = vld [vmem:[%s1845_s18 + $0xe0] sm:$0xff] }
 0x174   : > { %v972_v11 = vld [vmem:[#allocation2 + $0x68] sm:$0xff]  ;;  %v1013_v22 = vadd.f32 %v1880_v26, %v974_v19  ;;  %v1076_v28 = vadd.f32 %v1044_v18, %v1012_v17  ;;  %v986_v4 = vld [vmem:[#allocation2 + $0xd8] sm:$0xff]  ;;  %1116 = vst [vmem:[%s1849_s13 + $0xb0] sm:$0xff] %v1084_v63  ;;  %1117 = vst [vmem:[%s1849_s13 + $0xb8] sm:$0xff] %v1085_v0 }
 0x175   : > { %v1011_v16 = vadd.f32 %v1880_v26, %v972_v11  ;;  %v1074_v21 = vadd.f32 %v1042_v8, %v1010_v10  ;;  %v1057_v5 = vld [vmem:[%s1845_s18 + $0xd8] sm:$0xff]  ;;  %v1025_v7 = vadd.f32 %v1880_v26, %v986_v4  ;;  %v987_v8 = vld [vmem:[#allocation2 + $0xe0] sm:$0xff]  ;;  %v988_v10 = vld [vmem:[#allocation2 + $0xe8] sm:$0xff]  ;;  %v1087_v11 = vadd.f32 %v1055_v61, %v1023_v1  ;;  %1118 = vst [vmem:[%s1849_s13 + $0xc0] sm:$0xff] %v1086_v6 }
 0x176   : > { %v1077_v34 = vadd.f32 %v1045_v20, %v1013_v22  ;;  %1108 = vst [vmem:[%s1849_s13 + $0x70] sm:$0xff] %v1076_v28  ;;  %v1026_v13 = vadd.f32 %v1880_v26, %v987_v8  ;;  %v1027_v14 = vadd.f32 %v1880_v26, %v988_v10  ;;  %v1059_v15 = vld [vmem:[%s1845_s18 + $0xe8] sm:$0xff]  ;;  %v1060_v17 = vld [vmem:[%s1845_s18 + $0xf0] sm:$0xff]  ;;  %v990_v20 = vld [vmem:[#allocation2 + $0xf8] sm:$0xff] }
 0x177   : > { %v1075_v27 = vadd.f32 %v1043_v12, %v1011_v16  ;;  %1106 = vst [vmem:[%s1849_s13 + $0x60] sm:$0xff] %v1074_v21  ;;  %v1088_v12 = vadd.f32 %v1056_v3, %v1024_v2  ;;  %v989_v16 = vld [vmem:[#allocation2 + $0xf0] sm:$0xff]  ;;  %v1089_v18 = vadd.f32 %v1057_v5, %v1025_v7  ;;  %v1061_v21 = vld [vmem:[%s1845_s18 + $0xf8] sm:$0xff]  ;;  %1119 = vst [vmem:[%s1849_s13 + $0xc8] sm:$0xff] %v1087_v11 }
 0x178   : > { %1109 = vst [vmem:[%s1849_s13 + $0x78] sm:$0xff] %v1077_v34  ;;  %v1028_v19 = vadd.f32 %v1880_v26, %v989_v16  ;;  %v1090_v22 = vadd.f32 %v1058_v9, %v1026_v13  ;;  %v1091_v23 = vadd.f32 %v1059_v15, %v1027_v14  ;;  %v1029_v24 = vadd.f32 %v1880_v26, %v990_v20 }
 0x179   : > { %1107 = vst [vmem:[%s1849_s13 + $0x68] sm:$0xff] %v1075_v27  ;;  %1120 = vst [vmem:[%s1849_s13 + $0xd0] sm:$0xff] %v1088_v12 }
 0x17a   : > { %1121 = vst [vmem:[%s1849_s13 + $0xd8] sm:$0xff] %v1089_v18  ;;  %v1092_v25 = vadd.f32 %v1060_v17, %v1028_v19  ;;  %1122 = vst [vmem:[%s1849_s13 + $0xe0] sm:$0xff] %v1090_v22  ;;  %v1093_v27 = vadd.f32 %v1061_v21, %v1029_v24 }
 0x17b   : > { %1123 = vst [vmem:[%s1849_s13 + $0xe8] sm:$0xff] %v1091_v23 }
 0x17c   : > { %1124 = vst [vmem:[%s1849_s13 + $0xf0] sm:$0xff] %v1092_v25  ;;  %1125 = vst [vmem:[%s1849_s13 + $0xf8] sm:$0xff] %v1093_v27 }
 0x17d PF: > { %s1317_s20 = sshll.u32 %s1619_s21, 12  ;;  %s1141_s26 = sshll.u32 %s1849_s13, 4  ;;  %s1985_s26 = int_to_ptr.vmem [resolvable:$true] %s1141_s26 }
 0x17e   : > { %s1982_s25 = scalar_lea.hbm %s2051_s4, %s1317_s20  ;;  %s2062_s30 = sand.u32 1, %s1599_s16  }
 0x17f   : > { %s1989_s8 = scalar_lea.sflag [#allocation5], %s2062_s30  ;;  %s1521_s9 = scalar_lea.vmem %s1985_s26, 4096 }
 0x180   : > { %p1522_p8 = scmp.ne.s32.totalorder %s1985_s26, %s1521_s9  ;;  %s1634_s21 = smov [#allocation4]  }
 0x181   : > { %s1525_s6 = sshll.u32 %s1634_s21, 4  ;;  %s1526_s6 = int_to_ptr.vmem [resolvable:$false] %s1525_s6 }
 0x182   : > { %p1523_p9 = pnand %p1522_p8, %p1734_p7  ;;  %s1527_s29 = scalar_lea.vmem %s1526_s6, 8192 }
 0x183   : > { %p1528_p11 = scmp.lt.s32.totalorder %s1985_s26, %s1526_s6  ;;  %p1529_p13 = scmp.lt.s32.totalorder %s1527_s29, %s1521_s9 }
 0x184   : > { %p1524_p10 = pneg %p1523_p9 }
 0x185   : > { %p1530_p0 = por %p1529_p13, %p1528_p11 }
 0x187   : > { %p1531_p1 = pnand %p1530_p0, %p1524_p10 }
 0x189   : > { %1534 = shalt.err (!%p1531_p1)
}
 0x18a   : > { %s1535_s13 = scalar_lea.hbm %s1982_s25, 4096  ;;  %s1539_s0 = scalar_lea.hbm %s2051_s4, 8192 }
 0x18b   : > { %p1536_p2 = scmp.ne.s32.totalorder %s1982_s25, %s1535_s13  ;;  %p1540_p5 = scmp.lt.u32.totalorder %s1982_s25, %s2051_s4 }
 0x18c   : > { %p1541_p6 = scmp.lt.u32.totalorder %s1539_s0, %s1535_s13  ;;  %p1543_p9 = scmp.lt.u32.totalorder %s1535_s13, %s1982_s25 }
 0x18d   : > { %p1537_p3 = pnand %p1536_p2, %p1734_p7 }
 0x18e   : > { %p1542_p8 = por %p1541_p6, %p1540_p5 }
 0x18f   : > { %p1538_p4 = pneg %p1537_p3 }
 0x190   : > { %p1544_p10 = por %p1543_p9, %p1542_p8 }
 0x192   : > { %p1545_p11 = pnand %p1544_p10, %p1538_p4 }
 0x194   : > { %1548 = shalt.err (!%p1545_p11)
}
 0x195   : > { %s1635_s28 = smov 128   ;;  %s1636_s14 = smov 8  }
 0x196   : > { %1407 = dma.vmem_to_hbm [thread:$0]  (%p1734_p7), %s1985_s26, 4096, %s1982_s25, %s1989_s8, %s1635_s28, %s1635_s28, %s1636_s14  }
 0x197 PF: > { %p1413_p13 = scmp.ge.s32.totalorder %s1631_s24, 2  ;;  %s1156_s30 = sand.u32 1, %s1595_s15  }
 0x198   : > { %s1157_s9 = scalar_lea.sflag [#allocation5], %s1156_s30 }
 0x199   : > { %p1410_p0 = pnand %p1413_p13, %p1742_p12 }
 0x19b   : > { %1590 = dma.done.wait (!%p1410_p0), %s1157_s9, 4096  }
 0x19c   : > { %1592 = vsyncadd (!%p1410_p0), %s1157_s9, 4294963200  ;;  %s17_s24 = sadd.s32 1, %s1631_s24   ;;  %s2063_s7 = sld [smem:[#allocation7_spill]] }
 0x19d   : > { %p14_p1 = scmp.ge.s32.totalorder %s17_s24, 12   ;;  %s2064_s25 = sld [smem:[#allocation8_spill]] }
 0x19e   : > { %s2065_s15 = smov %s1599_s16  ;;  %s2066_s16 = smov %s1603_s17 }
 0x19f   : > { %s2067_s17 = smov %s1747_s11  ;;  %s2068_s18 = smov %s1611_s19 }
 0x1a0   : > { %s2069_s19 = smov %s1750_s12  ;;  %s2070_s20 = smov %s1623_s22 }
 0x1a1   : > { %s2071_s21 = smov %s1627_s23  ;;  %16 = sbr.rel (!%p14_p1) target bundleno = 8 (0x8), region = 134 }
 0x1a2   : > { %s2072_s22 = smov %s2063_s7 }
 0x1a3   : > { %s2073_s23 = smov %s2064_s25 }
 0x1a8   :  { %1162 = vsyncpa [#allocation5], 1 }
 0x1a9   :  { %1164 = vsyncpa [#allocation5 + $0x1], 1 }

</bundles_post_ra>
